<compile_context>
chip_gen: v7x
topology: tpu7x:2x2x1
jax: 0.10.0
libtpu: 0.0.40
codegen_flags: <defaults>
</compile_context>

<pallas_src>
import functools

import jax
import jax.numpy as jnp
from jax.experimental import pallas as pl
from jax.experimental.pallas import tpu as pltpu


LP = 8  # left-pad columns of the activation strip scratch (sublane-aligned interior stores)


def _round_up(x, m):
    return (x + m - 1) // m * m


def _vmem_limit_bytes():
    cap = 64 * 1024 * 1024
    try:
        cap = int(pltpu.get_tpu_info().vmem_capacity_bytes)
    except Exception:
        pass
    return int(cap * 3 // 4)


def _sepconv_kernel(xm_ref, xw_ref, w1_ref, dw_ref, w2_ref, s_ref, b_ref,
                    o_ref, act_ref, conv_ref, *, ksize, pad, tile_rows, width):
    # xm_ref:  (T, W, dim_p)   input rows [r*T + pad, r*T + T + pad) (rows >= H are zeros)
    # xw_ref:  (pad, W, dim_p) input rows [0, pad)  (only used on the first tile of each image)
    # w1_ref:  (dim_p, med_p)  pwconv1 weight (compute dtype)
    # dw_ref:  (K*K, 8, med_p) f32, tap (kh,kw) splatted across 8 sublanes
    # w2_ref:  (med_p, dim_p)  pwconv2 weight (compute dtype)
    # s_ref, b_ref: (1,) f32 SMEM  StarReLU scale / bias
    # o_ref:   (T, W, dim_p)   output row strip
    # act_ref: VMEM (T + 2*pad, W + 2*LP, med_p) f32  persistent padded activation strip
    # conv_ref: VMEM (T, W, med_p) f32  depthwise output for this strip
    K, P, T, W = ksize, pad, tile_rows, width
    r = pl.program_id(1)
    n_r = pl.num_programs(1)
    dim_p = w1_ref.shape[0]
    med_p = w1_ref.shape[1]
    wp = act_ref.shape[1]
    scale = s_ref[0]
    bias = b_ref[0]

    def pw1_act(xv, rows):
        h = jnp.dot(xv.reshape(rows * W, dim_p), w1_ref[...],
                    preferred_element_type=jnp.float32)
        rl = jnp.maximum(h, 0.0)
        return (scale * rl * rl + bias).reshape(rows, W, med_p)

    # ---- first row-tile of each image: (re)initialize the strip ---------------------------
    @pl.when(r == 0)
    def _():
        # zero everything once per image: top conv-pad rows, pad columns, round-up slack.
        act_ref[...] = jnp.zeros_like(act_ref)
        # warm-up: activations for image rows [0, pad)
        act_ref[P:2 * P, LP:LP + W, :] = pw1_act(xw_ref[...], P)

    # ---- later tiles: carry the last 2*pad activation rows of the previous strip ----------
    @pl.when(r > 0)
    def _():
        act_ref[0:2 * P, LP:LP + W, :] = act_ref[T:T + 2 * P, LP:LP + W, :]

    # ---- pwconv1 + StarReLU on the T new rows (image rows [r*T + pad, r*T + T + pad)) -----
    act_ref[2 * P:2 * P + T, LP:LP + W, :] = pw1_act(xm_ref[...], T)

    # bottom conv-pad rows (image rows >= H) must hold zero activations, not StarReLU(0)=bias.
    @pl.when(r == n_r - 1)
    def _():
        act_ref[T + P:T + 2 * P, :, :] = jnp.zeros((P, wp, med_p), jnp.float32)

    # ---- depthwise KxK conv: register-resident (8 col x 128 ch) accumulator per chunk -----
    n_cg = med_p // 128
    n_cc = W // 8

    def row_body(i, carry):
        for mg in range(n_cg):                                   # static unroll
            lanes = pl.ds(mg * 128, 128)
            for cc in range(n_cc):                               # static unroll
                acc = jnp.zeros((8, 128), jnp.float32)
                for kh in range(K):                              # static unroll
                    # aligned 24-sublane load covering every kw window for this chunk
                    src = act_ref[i + kh, pl.ds(cc * 8, 24), lanes]
                    lo = src[0:16]
                    hi = src[8:24]
                    for kw in range(K):                          # static unroll
                        off = LP + kw - P                        # window start within src
                        if off == 8:
                            win = src[8:16]
                        elif off < 8:
                            win = pltpu.roll(lo, 16 - off, axis=0)[0:8]
                        else:
                            win = pltpu.roll(hi, 16 - (off - 8), axis=0)[0:8]
                        acc = acc + win * dw_ref[kh * K + kw, :, lanes]
                conv_ref[i, pl.ds(cc * 8, 8), lanes] = acc
        return carry

    jax.lax.fori_loop(0, T, row_body, 0)

    # ---- pwconv2 ---------------------------------------------------------------------------
    cv = conv_ref[...].reshape(T * W, med_p).astype(w2_ref.dtype)
    y = jnp.dot(cv, w2_ref[...], preferred_element_type=jnp.float32)
    o_ref[...] = y.reshape(T, W, dim_p).astype(o_ref.dtype)


def sepconv(x, w1, dw, w2, scale, bias, *, ksize=7, pad=3, row_tile=16,
            compute_dtype=jnp.bfloat16):
    """SepConv forward.

    x:  (B, H, W, dim) NHWC
    w1: (dim, med)   pwconv1 (== torch pwconv1.weight.T)
    dw: (med, K, K)  depthwise conv weight (torch weight squeezed over the in-channel dim)
    w2: (med, dim)   pwconv2 (== torch pwconv2.weight.T)
    scale, bias: (1,) StarReLU parameters.

    `compute_dtype` is the operand dtype of the two pointwise matmuls (bf16 = fast MXU path on
    every TPU generation; accumulation is always f32).  StarReLU and the depthwise taps are f32.
    """
    B, H, W, dim = x.shape
    med = w1.shape[1]
    K, P = ksize, pad
    assert w1.shape == (dim, med)
    assert dw.shape == (med, K, K)
    assert w2.shape == (med, dim)
    assert K == 2 * P + 1, "same-size output requires kernel_size == 2*padding + 1"
    assert P <= LP
    assert W % 8 == 0, "W must be a multiple of 8 (TPU sublane tile); pad W in the caller"

    T = min(row_tile, H)
    assert H % T == 0, "H must be divisible by the row tile"
    assert T >= 2 * P, "row tile must be >= 2*padding (carried-halo scheme)"
    n_r = H // T
    strip = T + 2 * P
    wp = W + 2 * LP

    dim_p = _round_up(dim, 128)
    med_p = _round_up(med, 128)
    out_dtype = x.dtype

    # ---- channel-padded, compute-dtype weights ---------------------------------------------
    w1p = jnp.zeros((dim_p, med_p), compute_dtype).at[:dim, :med].set(w1.astype(compute_dtype))
    w2p = jnp.zeros((med_p, dim_p), compute_dtype).at[:med, :dim].set(w2.astype(compute_dtype))
    # depthwise taps: (med, K, K) -> (K*K, 8, med_p) f32, each tap splatted across 8 sublanes
    dwt = jnp.transpose(dw, (1, 2, 0)).reshape(K * K, 1, med).astype(jnp.float32)
    dwp = jnp.zeros((K * K, 8, med_p), jnp.float32).at[:, :, :med].set(
        jnp.broadcast_to(dwt, (K * K, 8, med)))
    s = jnp.reshape(scale, (1,)).astype(jnp.float32)
    b = jnp.reshape(bias, (1,)).astype(jnp.float32)

    # ---- channel-padded input, split into warm-up rows and the row stream shifted by pad ---
    xc = jnp.zeros((B, H, W, dim_p), compute_dtype).at[..., :dim].set(x.astype(compute_dtype))
    xw = xc[:, :P]                                                   # image rows [0, pad)
    xm = jnp.concatenate(                                            # row j == image row j + pad
        [xc[:, P:], jnp.zeros((B, P, W, dim_p), compute_dtype)], axis=1)

    kernel = functools.partial(_sepconv_kernel, ksize=K, pad=P, tile_rows=T, width=W)

    out = pl.pallas_call(
        kernel,
        out_shape=jax.ShapeDtypeStruct((B, H, W, dim_p), out_dtype),
        grid=(B, n_r),
        in_specs=[
            pl.BlockSpec((None, T, W, dim_p), lambda bb, rr: (bb, rr, 0, 0)),   # streamed rows
            pl.BlockSpec((None, P, W, dim_p), lambda bb, rr: (bb, 0, 0, 0)),    # warm-up rows
            pl.BlockSpec((dim_p, med_p), lambda bb, rr: (0, 0)),                # w1
            pl.BlockSpec((K * K, 8, med_p), lambda bb, rr: (0, 0, 0)),          # dw (splatted)
            pl.BlockSpec((med_p, dim_p), lambda bb, rr: (0, 0)),                # w2
            pl.BlockSpec(memory_space=pltpu.MemorySpace.SMEM),                  # StarReLU scale
            pl.BlockSpec(memory_space=pltpu.MemorySpace.SMEM),                  # StarReLU bias
        ],
        out_specs=pl.BlockSpec((None, T, W, dim_p), lambda bb, rr: (bb, rr, 0, 0)),
        scratch_shapes=[
            pltpu.VMEM((strip, wp, med_p), jnp.float32),   # persistent activation strip
            pltpu.VMEM((T, W, med_p), jnp.float32),        # depthwise output for this strip
        ],
        compiler_params=pltpu.CompilerParams(
            # row-tile axis carries the halo across steps -> must stay sequential;
            # batch axis stays parallel so v7x's two TensorCores shard work (B >= 2).
            dimension_semantics=("parallel", "arbitrary"),
            vmem_limit_bytes=_vmem_limit_bytes(),
        ),
    )(xm, xw, w1p, dwp, w2p, s, b)

    return out[..., :dim]


def sepconv_reference(x, w1, dw, w2, scale, bias, *, pad=3):
    """Pure-JAX reference matching the PyTorch SepConv forward."""
    med = w1.shape[1]
    h = jnp.einsum("bhwc,cm->bhwm", x, w1)
    h = scale[0] * jnp.maximum(h, 0.0) ** 2 + bias[0]
    k = jnp.transpose(dw, (1, 2, 0))[:, :, None, :]          # (K, K, 1, med) HWIO
    h = jax.lax.conv_general_dilated(
        h, k, window_strides=(1, 1), padding=((pad, pad), (pad, pad)),
        dimension_numbers=("NHWC", "HWIO", "NHWC"), feature_group_count=med)
    return jnp.einsum("bhwm,md->bhwd", h, w2)


if __name__ == "__main__":
    B, H, W, dim = 2, 16, 16, 4
    expansion_ratio = 2
    med = expansion_ratio * dim
    ksize, pad = 7, 3

    key = jax.random.PRNGKey(0)
    kx, k1, k2, k3 = jax.random.split(key, 4)

    x = jax.random.normal(kx, (B, H, W, dim), dtype=jnp.float32)
    # pwconv1: Linear(dim -> med), no bias, stored (dim, med) so y = x @ w1.
    w1 = jax.random.normal(k1, (dim, med), dtype=jnp.float32) * 0.1
    # dwconv: Conv2d(med, med, 7, padding=3, groups=med), weight (med, 1, 7, 7) -> (med, 7, 7).
    dw = jax.random.normal(k2, (med, ksize, ksize), dtype=jnp.float32) * 0.1
    # pwconv2: Linear(med -> dim), no bias, stored (med, dim).
    w2 = jax.random.normal(k3, (med, dim), dtype=jnp.float32) * 0.1
    # StarReLU parameters (non-default to exercise scale/bias and the halo zeroing).
    scale = 1.5 * jnp.ones((1,), dtype=jnp.float32)
    bias = 0.3 * jnp.ones((1,), dtype=jnp.float32)

    ref = sepconv_reference(x, w1, dw, w2, scale, bias, pad=pad)

    # f32 matmul path, single row tile (no carry path): tight tolerance.
    out_a = sepconv(x, w1, dw, w2, scale, bias, ksize=ksize, pad=pad,
                    row_tile=16, compute_dtype=jnp.float32)
    out_a = jax.block_until_ready(out_a)
    assert out_a.shape == (B, H, W, dim)
    err_a = float(jnp.max(jnp.abs(out_a - ref)))
    assert jnp.allclose(out_a, ref, atol=1e-4, rtol=1e-4), err_a

    # f32 matmul path, two row tiles: exercises the carried-halo (sequential rr) path.
    out_b = sepconv(x, w1, dw, w2, scale, bias, ksize=ksize, pad=pad,
                    row_tile=8, compute_dtype=jnp.float32)
    out_b = jax.block_until_ready(out_b)
    err_b = float(jnp.max(jnp.abs(out_b - ref)))
    assert jnp.allclose(out_b, ref, atol=1e-4, rtol=1e-4), err_b

    # bf16 matmul path (fast MXU path on every generation): looser tolerance.
    out_c = sepconv(x, w1, dw, w2, scale, bias, ksize=ksize, pad=pad,
                    row_tile=8, compute_dtype=jnp.bfloat16)
    out_c = jax.block_until_ready(out_c)
    err_c = float(jnp.max(jnp.abs(out_c - ref)))
    assert jnp.allclose(out_c, ref, atol=2e-2, rtol=2e-2), err_c

    print("KERNEL_OK")
</pallas_src>

<mosaic_0001>
module attributes {stable_mosaic.version = 11 : i64} {
  func.func @_sepconv_kernel(%arg0: i32, %arg1: i32, %arg2: memref<1x16x16x128xf32, #tpu.memory_space<vmem>>, %arg3: memref<1x3x16x128xf32, #tpu.memory_space<vmem>>, %arg4: memref<128x128xf32, #tpu.memory_space<vmem>>, %arg5: memref<49x8x128xf32, #tpu.memory_space<vmem>>, %arg6: memref<128x128xf32, #tpu.memory_space<vmem>>, %arg7: memref<1xf32, #tpu.memory_space<smem>>, %arg8: memref<1xf32, #tpu.memory_space<smem>>, %arg9: memref<1x16x16x128xf32, #tpu.memory_space<vmem>>, %arg10: memref<22x32x128xf32, #tpu.memory_space<vmem>>, %arg11: memref<16x16x128xf32, #tpu.memory_space<vmem>>) attributes {dimension_semantics = [#tpu.dimension_semantics<parallel>, #tpu.dimension_semantics<arbitrary>], iteration_bounds = array<i64: 2, 1>, scalar_prefetch = 0 : i64, scratch_operands = 2 : i64, tpu.core_type = #tpu.core_type<tc>, window_params = [{transform_indices = @transform_0, window_bounds = array<i64: 1, 16, 16, 128>}, {transform_indices = @transform_1, window_bounds = array<i64: 1, 3, 16, 128>}, {pipeline_mode = #tpu.pipeline_mode<synchronous>, transform_indices = @transform_2, window_bounds = array<i64: 128, 128>}, {pipeline_mode = #tpu.pipeline_mode<synchronous>, transform_indices = @transform_3, window_bounds = array<i64: 49, 8, 128>}, {pipeline_mode = #tpu.pipeline_mode<synchronous>, transform_indices = @transform_4, window_bounds = array<i64: 128, 128>}, {transform_indices = @transform_5, window_bounds = array<i64: 1>}, {transform_indices = @transform_6, window_bounds = array<i64: 1>}, {transform_indices = @transform_7, window_bounds = array<i64: 1, 16, 16, 128>}]} {
    %c0 = arith.constant 0 : index
    %0 = memref.load %arg7[%c0] : memref<1xf32, #tpu.memory_space<smem>>
    %c0_0 = arith.constant 0 : index
    %1 = memref.load %arg8[%c0_0] : memref<1xf32, #tpu.memory_space<smem>>
    %c0_i32 = arith.constant 0 : i32
    %2 = arith.cmpi eq, %arg1, %c0_i32 : i32
    %3 = arith.extui %2 : i1 to i32
    %c0_i32_1 = arith.constant 0 : i32
    %4 = arith.cmpi ne, %3, %c0_i32_1 : i32
    scf.if %4 {
      %cst_26 = arith.constant 0.000000e+00 : f32
      %34 = vector.broadcast %cst_26 : f32 to vector<22x32x128xf32>
      %c0_27 = arith.constant 0 : index
      %c0_28 = arith.constant 0 : index
      %c0_29 = arith.constant 0 : index
      %35 = vector.load %arg10[%c0_27, %c0_28, %c0_29] : memref<22x32x128xf32, #tpu.memory_space<vmem>>, vector<22x32x128xf32>
      tpu.vector_store %arg10[%c0_27, %c0_28, %c0_29], %34 {strides = array<i32>} : memref<22x32x128xf32, #tpu.memory_space<vmem>>, vector<22x32x128xf32>,
      %c0_30 = arith.constant 0 : index
      %c0_31 = arith.constant 0 : index
      %c0_32 = arith.constant 0 : index
      %c0_33 = arith.constant 0 : index
      %36 = vector.load %arg3[%c0_30, %c0_31, %c0_32, %c0_33] : memref<1x3x16x128xf32, #tpu.memory_space<vmem>>, vector<1x3x16x128xf32>
      %37 = vector.shape_cast %36 : vector<1x3x16x128xf32> to vector<3x16x128xf32>
      %38 = vector.shape_cast %37 : vector<3x16x128xf32> to vector<48x128xf32>
      %c0_34 = arith.constant 0 : index
      %c0_35 = arith.constant 0 : index
      %39 = vector.load %arg4[%c0_34, %c0_35] : memref<128x128xf32, #tpu.memory_space<vmem>>, vector<128x128xf32>
      %cst_36 = arith.constant dense<0.000000e+00> : vector<48x128xf32>
      %40 = tpu.matmul %38, %39, %cst_36 {dimension_numbers = #tpu.dot_dimension_numbers<[1], [0], [0], [1], [0, 0, 1, 1], [], []>} : vector<48x128xf32>, vector<128x128xf32>, vector<48x128xf32> -> vector<48x128xf32>
      %cst_37 = arith.constant 0.000000e+00 : f32
      %41 = vector.broadcast %cst_37 : f32 to vector<48x128xf32>
      %42 = arith.maximumf %40, %41 : vector<48x128xf32>
      %43 = vector.broadcast %0 : f32 to vector<48x128xf32>
      %44 = arith.mulf %43, %42 : vector<48x128xf32>
      %45 = arith.mulf %44, %42 : vector<48x128xf32>
      %46 = vector.broadcast %1 : f32 to vector<48x128xf32>
      %47 = arith.addf %45, %46 : vector<48x128xf32>
      %48 = vector.shape_cast %47 : vector<48x128xf32> to vector<3x16x128xf32>
      %c3 = arith.constant 3 : index
      %c8_38 = arith.constant 8 : index
      %c0_39 = arith.constant 0 : index
      %49 = vector.load %arg10[%c3, %c8_38, %c0_39] : memref<22x32x128xf32, #tpu.memory_space<vmem>>, vector<3x16x128xf32>
      tpu.vector_store %arg10[%c3, %c8_38, %c0_39], %48 {strides = array<i32>} : memref<22x32x128xf32, #tpu.memory_space<vmem>>, vector<3x16x128xf32>,
    } else {
    }
    %c0_i32_2 = arith.constant 0 : i32
    %5 = arith.cmpi sgt, %arg1, %c0_i32_2 : i32
    %6 = arith.extui %5 : i1 to i32
    %c0_i32_3 = arith.constant 0 : i32
    %7 = arith.cmpi ne, %6, %c0_i32_3 : i32
    scf.if %7 {
      %c16 = arith.constant 16 : index
      %c8_26 = arith.constant 8 : index
      %c0_27 = arith.constant 0 : index
      %34 = vector.load %arg10[%c16, %c8_26, %c0_27] : memref<22x32x128xf32, #tpu.memory_space<vmem>>, vector<6x16x128xf32>
      %c0_28 = arith.constant 0 : index
      %c8_29 = arith.constant 8 : index
      %c0_30 = arith.constant 0 : index
      %35 = vector.load %arg10[%c0_28, %c8_29, %c0_30] : memref<22x32x128xf32, #tpu.memory_space<vmem>>, vector<6x16x128xf32>
      tpu.vector_store %arg10[%c0_28, %c8_29, %c0_30], %34 {strides = array<i32>} : memref<22x32x128xf32, #tpu.memory_space<vmem>>, vector<6x16x128xf32>,
    } else {
    }
    %c0_4 = arith.constant 0 : index
    %c0_5 = arith.constant 0 : index
    %c0_6 = arith.constant 0 : index
    %c0_7 = arith.constant 0 : index
    %8 = vector.load %arg2[%c0_4, %c0_5, %c0_6, %c0_7] : memref<1x16x16x128xf32, #tpu.memory_space<vmem>>, vector<1x16x16x128xf32>
    %9 = vector.shape_cast %8 : vector<1x16x16x128xf32> to vector<16x16x128xf32>
    %10 = vector.shape_cast %9 : vector<16x16x128xf32> to vector<256x128xf32>
    %c0_8 = arith.constant 0 : index
    %c0_9 = arith.constant 0 : index
    %11 = vector.load %arg4[%c0_8, %c0_9] : memref<128x128xf32, #tpu.memory_space<vmem>>, vector<128x128xf32>
    %cst = arith.constant dense<0.000000e+00> : vector<256x128xf32>
    %12 = tpu.matmul %10, %11, %cst {dimension_numbers = #tpu.dot_dimension_numbers<[1], [0], [0], [1], [0, 0, 1, 1], [], []>} : vector<256x128xf32>, vector<128x128xf32>, vector<256x128xf32> -> vector<256x128xf32>
    %cst_10 = arith.constant 0.000000e+00 : f32
    %13 = vector.broadcast %cst_10 : f32 to vector<256x128xf32>
    %14 = arith.maximumf %12, %13 : vector<256x128xf32>
    %15 = vector.broadcast %0 : f32 to vector<256x128xf32>
    %16 = arith.mulf %15, %14 : vector<256x128xf32>
    %17 = arith.mulf %16, %14 : vector<256x128xf32>
    %18 = vector.broadcast %1 : f32 to vector<256x128xf32>
    %19 = arith.addf %17, %18 : vector<256x128xf32>
    %20 = vector.shape_cast %19 : vector<256x128xf32> to vector<16x16x128xf32>
    %c6 = arith.constant 6 : index
    %c8 = arith.constant 8 : index
    %c0_11 = arith.constant 0 : index
    %21 = vector.load %arg10[%c6, %c8, %c0_11] : memref<22x32x128xf32, #tpu.memory_space<vmem>>, vector<16x16x128xf32>
    tpu.vector_store %arg10[%c6, %c8, %c0_11], %20 {strides = array<i32>} : memref<22x32x128xf32, #tpu.memory_space<vmem>>, vector<16x16x128xf32>,
    %c0_i32_12 = arith.constant 0 : i32
    %22 = arith.cmpi eq, %arg1, %c0_i32_12 : i32
    %23 = arith.extui %22 : i1 to i32
    %c0_i32_13 = arith.constant 0 : i32
    %24 = arith.cmpi ne, %23, %c0_i32_13 : i32
    scf.if %24 {
      %cst_26 = arith.constant 0.000000e+00 : f32
      %34 = vector.broadcast %cst_26 : f32 to vector<3x32x128xf32>
      %c19 = arith.constant 19 : index
      %c0_27 = arith.constant 0 : index
      %c0_28 = arith.constant 0 : index
      %35 = vector.load %arg10[%c19, %c0_27, %c0_28] : memref<22x32x128xf32, #tpu.memory_space<vmem>>, vector<3x32x128xf32>
      tpu.vector_store %arg10[%c19, %c0_27, %c0_28], %34 {strides = array<i32>} : memref<22x32x128xf32, #tpu.memory_space<vmem>>, vector<3x32x128xf32>,
    } else {
    }
    %c0_i32_14 = arith.constant 0 : i32
    %c16_i32 = arith.constant 16 : i32
    %25 = arith.addi %c0_i32_14, %c16_i32 : i32
    %c1_i32 = arith.constant 1 : i32
    scf.for %arg12 = %c0_i32_14 to %25 step %c1_i32  : i32 {
      %cst_26 = arith.constant 0.000000e+00 : f32
      %34 = vector.broadcast %cst_26 : f32 to vector<8x128xf32>
      %c0_i32_27 = arith.constant 0 : i32
      %35 = arith.addi %arg12, %c0_i32_27 : i32
      %36 = arith.index_cast %35 : i32 to index
      %c0_28 = arith.constant 0 : index
      %c0_29 = arith.constant 0 : index
      %37 = vector.load %arg10[%36, %c0_28, %c0_29] : memref<22x32x128xf32, #tpu.memory_space<vmem>>, vector<1x24x128xf32>
      %38 = vector.shape_cast %37 : vector<1x24x128xf32> to vector<24x128xf32>
      %39 = vector.extract_strided_slice %38 {offsets = [0, 0], sizes = [16, 128], strides = [1, 1]} : vector<24x128xf32> to vector<16x128xf32>
      %40 = vector.extract_strided_slice %38 {offsets = [8, 0], sizes = [16, 128], strides = [1, 1]} : vector<24x128xf32> to vector<16x128xf32>
      %c11_i32 = arith.constant 11 : i32
      %41 = tpu.dynamic_rotate %39 by %c11_i32 dim 0 : vector<16x128xf32>, i32 -> vector<16x128xf32>
      %42 = vector.extract_strided_slice %41 {offsets = [0, 0], sizes = [8, 128], strides = [1, 1]} : vector<16x128xf32> to vector<8x128xf32>
      %c0_30 = arith.constant 0 : index
      %c0_31 = arith.constant 0 : index
      %c0_32 = arith.constant 0 : index
      %43 = vector.load %arg5[%c0_30, %c0_31, %c0_32] : memref<49x8x128xf32, #tpu.memory_space<vmem>>, vector<1x8x128xf32>
      %44 = vector.shape_cast %43 : vector<1x8x128xf32> to vector<8x128xf32>
      %45 = arith.mulf %42, %44 : vector<8x128xf32>
      %46 = arith.addf %34, %45 : vector<8x128xf32>
      %c10_i32 = arith.constant 10 : i32
      %47 = tpu.dynamic_rotate %39 by %c10_i32 dim 0 : vector<16x128xf32>, i32 -> vector<16x128xf32>
      %48 = vector.extract_strided_slice %47 {offsets = [0, 0], sizes = [8, 128], strides = [1, 1]} : vector<16x128xf32> to vector<8x128xf32>
      %c1 = arith.constant 1 : index
      %c0_33 = arith.constant 0 : index
      %c0_34 = arith.constant 0 : index
      %49 = vector.load %arg5[%c1, %c0_33, %c0_34] : memref<49x8x128xf32, #tpu.memory_space<vmem>>, vector<1x8x128xf32>
      %50 = vector.shape_cast %49 : vector<1x8x128xf32> to vector<8x128xf32>
      %51 = arith.mulf %48, %50 : vector<8x128xf32>
      %52 = arith.addf %46, %51 : vector<8x128xf32>
      %c9_i32 = arith.constant 9 : i32
      %53 = tpu.dynamic_rotate %39 by %c9_i32 dim 0 : vector<16x128xf32>, i32 -> vector<16x128xf32>
      %54 = vector.extract_strided_slice %53 {offsets = [0, 0], sizes = [8, 128], strides = [1, 1]} : vector<16x128xf32> to vector<8x128xf32>
      %c2 = arith.constant 2 : index
      %c0_35 = arith.constant 0 : index
      %c0_36 = arith.constant 0 : index
      %55 = vector.load %arg5[%c2, %c0_35, %c0_36] : memref<49x8x128xf32, #tpu.memory_space<vmem>>, vector<1x8x128xf32>
      %56 = vector.shape_cast %55 : vector<1x8x128xf32> to vector<8x128xf32>
      %57 = arith.mulf %54, %56 : vector<8x128xf32>
      %58 = arith.addf %52, %57 : vector<8x128xf32>
      %59 = vector.extract_strided_slice %38 {offsets = [8, 0], sizes = [8, 128], strides = [1, 1]} : vector<24x128xf32> to vector<8x128xf32>
      %c3 = arith.constant 3 : index
      %c0_37 = arith.constant 0 : index
      %c0_38 = arith.constant 0 : index
      %60 = vector.load %arg5[%c3, %c0_37, %c0_38] : memref<49x8x128xf32, #tpu.memory_space<vmem>>, vector<1x8x128xf32>
      %61 = vector.shape_cast %60 : vector<1x8x128xf32> to vector<8x128xf32>
      %62 = arith.mulf %59, %61 : vector<8x128xf32>
      %63 = arith.addf %58, %62 : vector<8x128xf32>
      %c15_i32 = arith.constant 15 : i32
      %64 = tpu.dynamic_rotate %40 by %c15_i32 dim 0 : vector<16x128xf32>, i32 -> vector<16x128xf32>
      %65 = vector.extract_strided_slice %64 {offsets = [0, 0], sizes = [8, 128], strides = [1, 1]} : vector<16x128xf32> to vector<8x128xf32>
      %c4 = arith.constant 4 : index
      %c0_39 = arith.constant 0 : index
      %c0_40 = arith.constant 0 : index
      %66 = vector.load %arg5[%c4, %c0_39, %c0_40] : memref<49x8x128xf32, #tpu.memory_space<vmem>>, vector<1x8x128xf32>
      %67 = vector.shape_cast %66 : vector<1x8x128xf32> to vector<8x128xf32>
      %68 = arith.mulf %65, %67 : vector<8x128xf32>
      %69 = arith.addf %63, %68 : vector<8x128xf32>
      %c14_i32 = arith.constant 14 : i32
      %70 = tpu.dynamic_rotate %40 by %c14_i32 dim 0 : vector<16x128xf32>, i32 -> vector<16x128xf32>
      %71 = vector.extract_strided_slice %70 {offsets = [0, 0], sizes = [8, 128], strides = [1, 1]} : vector<16x128xf32> to vector<8x128xf32>
      %c5 = arith.constant 5 : index
      %c0_41 = arith.constant 0 : index
      %c0_42 = arith.constant 0 : index
      %72 = vector.load %arg5[%c5, %c0_41, %c0_42] : memref<49x8x128xf32, #tpu.memory_space<vmem>>, vector<1x8x128xf32>
      %73 = vector.shape_cast %72 : vector<1x8x128xf32> to vector<8x128xf32>
      %74 = arith.mulf %71, %73 : vector<8x128xf32>
      %75 = arith.addf %69, %74 : vector<8x128xf32>
      %c13_i32 = arith.constant 13 : i32
      %76 = tpu.dynamic_rotate %40 by %c13_i32 dim 0 : vector<16x128xf32>, i32 -> vector<16x128xf32>
      %77 = vector.extract_strided_slice %76 {offsets = [0, 0], sizes = [8, 128], strides = [1, 1]} : vector<16x128xf32> to vector<8x128xf32>
      %c6_43 = arith.constant 6 : index
      %c0_44 = arith.constant 0 : index
      %c0_45 = arith.constant 0 : index
      %78 = vector.load %arg5[%c6_43, %c0_44, %c0_45] : memref<49x8x128xf32, #tpu.memory_space<vmem>>, vector<1x8x128xf32>
      %79 = vector.shape_cast %78 : vector<1x8x128xf32> to vector<8x128xf32>
      %80 = arith.mulf %77, %79 : vector<8x128xf32>
      %81 = arith.addf %75, %80 : vector<8x128xf32>
      %c1_i32_46 = arith.constant 1 : i32
      %82 = arith.addi %arg12, %c1_i32_46 : i32
      %83 = arith.index_cast %82 : i32 to index
      %c0_47 = arith.constant 0 : index
      %c0_48 = arith.constant 0 : index
      %84 = vector.load %arg10[%83, %c0_47, %c0_48] : memref<22x32x128xf32, #tpu.memory_space<vmem>>, vector<1x24x128xf32>
      %85 = vector.shape_cast %84 : vector<1x24x128xf32> to vector<24x128xf32>
      %86 = vector.extract_strided_slice %85 {offsets = [0, 0], sizes = [16, 128], strides = [1, 1]} : vector<24x128xf32> to vector<16x128xf32>
      %87 = vector.extract_strided_slice %85 {offsets = [8, 0], sizes = [16, 128], strides = [1, 1]} : vector<24x128xf32> to vector<16x128xf32>
      %c11_i32_49 = arith.constant 11 : i32
      %88 = tpu.dynamic_rotate %86 by %c11_i32_49 dim 0 : vector<16x128xf32>, i32 -> vector<16x128xf32>
      %89 = vector.extract_strided_slice %88 {offsets = [0, 0], sizes = [8, 128], strides = [1, 1]} : vector<16x128xf32> to vector<8x128xf32>
      %c7 = arith.constant 7 : index
      %c0_50 = arith.constant 0 : index
      %c0_51 = arith.constant 0 : index
      %90 = vector.load %arg5[%c7, %c0_50, %c0_51] : memref<49x8x128xf32, #tpu.memory_space<vmem>>, vector<1x8x128xf32>
      %91 = vector.shape_cast %90 : vector<1x8x128xf32> to vector<8x128xf32>
      %92 = arith.mulf %89, %91 : vector<8x128xf32>
      %93 = arith.addf %81, %92 : vector<8x128xf32>
      %c10_i32_52 = arith.constant 10 : i32
      %94 = tpu.dynamic_rotate %86 by %c10_i32_52 dim 0 : vector<16x128xf32>, i32 -> vector<16x128xf32>
      %95 = vector.extract_strided_slice %94 {offsets = [0, 0], sizes = [8, 128], strides = [1, 1]} : vector<16x128xf32> to vector<8x128xf32>
      %c8_53 = arith.constant 8 : index
      %c0_54 = arith.constant 0 : index
      %c0_55 = arith.constant 0 : index
      %96 = vector.load %arg5[%c8_53, %c0_54, %c0_55] : memref<49x8x128xf32, #tpu.memory_space<vmem>>, vector<1x8x128xf32>
      %97 = vector.shape_cast %96 : vector<1x8x128xf32> to vector<8x128xf32>
      %98 = arith.mulf %95, %97 : vector<8x128xf32>
      %99 = arith.addf %93, %98 : vector<8x128xf32>
      %c9_i32_56 = arith.constant 9 : i32
      %100 = tpu.dynamic_rotate %86 by %c9_i32_56 dim 0 : vector<16x128xf32>, i32 -> vector<16x128xf32>
      %101 = vector.extract_strided_slice %100 {offsets = [0, 0], sizes = [8, 128], strides = [1, 1]} : vector<16x128xf32> to vector<8x128xf32>
      %c9 = arith.constant 9 : index
      %c0_57 = arith.constant 0 : index
      %c0_58 = arith.constant 0 : index
      %102 = vector.load %arg5[%c9, %c0_57, %c0_58] : memref<49x8x128xf32, #tpu.memory_space<vmem>>, vector<1x8x128xf32>
      %103 = vector.shape_cast %102 : vector<1x8x128xf32> to vector<8x128xf32>
      %104 = arith.mulf %101, %103 : vector<8x128xf32>
      %105 = arith.addf %99, %104 : vector<8x128xf32>
      %106 = vector.extract_strided_slice %85 {offsets = [8, 0], sizes = [8, 128], strides = [1, 1]} : vector<24x128xf32> to vector<8x128xf32>
      %c10 = arith.constant 10 : index
      %c0_59 = arith.constant 0 : index
      %c0_60 = arith.constant 0 : index
      %107 = vector.load %arg5[%c10, %c0_59, %c0_60] : memref<49x8x128xf32, #tpu.memory_space<vmem>>, vector<1x8x128xf32>
      %108 = vector.shape_cast %107 : vector<1x8x128xf32> to vector<8x128xf32>
      %109 = arith.mulf %106, %108 : vector<8x128xf32>
      %110 = arith.addf %105, %109 : vector<8x128xf32>
      %c15_i32_61 = arith.constant 15 : i32
      %111 = tpu.dynamic_rotate %87 by %c15_i32_61 dim 0 : vector<16x128xf32>, i32 -> vector<16x128xf32>
      %112 = vector.extract_strided_slice %111 {offsets = [0, 0], sizes = [8, 128], strides = [1, 1]} : vector<16x128xf32> to vector<8x128xf32>
      %c11 = arith.constant 11 : index
      %c0_62 = arith.constant 0 : index
      %c0_63 = arith.constant 0 : index
      %113 = vector.load %arg5[%c11, %c0_62, %c0_63] : memref<49x8x128xf32, #tpu.memory_space<vmem>>, vector<1x8x128xf32>
      %114 = vector.shape_cast %113 : vector<1x8x128xf32> to vector<8x128xf32>
      %115 = arith.mulf %112, %114 : vector<8x128xf32>
      %116 = arith.addf %110, %115 : vector<8x128xf32>
      %c14_i32_64 = arith.constant 14 : i32
      %117 = tpu.dynamic_rotate %87 by %c14_i32_64 dim 0 : vector<16x128xf32>, i32 -> vector<16x128xf32>
      %118 = vector.extract_strided_slice %117 {offsets = [0, 0], sizes = [8, 128], strides = [1, 1]} : vector<16x128xf32> to vector<8x128xf32>
      %c12 = arith.constant 12 : index
      %c0_65 = arith.constant 0 : index
      %c0_66 = arith.constant 0 : index
      %119 = vector.load %arg5[%c12, %c0_65, %c0_66] : memref<49x8x128xf32, #tpu.memory_space<vmem>>, vector<1x8x128xf32>
      %120 = vector.shape_cast %119 : vector<1x8x128xf32> to vector<8x128xf32>
      %121 = arith.mulf %118, %120 : vector<8x128xf32>
      %122 = arith.addf %116, %121 : vector<8x128xf32>
      %c13_i32_67 = arith.constant 13 : i32
      %123 = tpu.dynamic_rotate %87 by %c13_i32_67 dim 0 : vector<16x128xf32>, i32 -> vector<16x128xf32>
      %124 = vector.extract_strided_slice %123 {offsets = [0, 0], sizes = [8, 128], strides = [1, 1]} : vector<16x128xf32> to vector<8x128xf32>
      %c13 = arith.constant 13 : index
      %c0_68 = arith.constant 0 : index
      %c0_69 = arith.constant 0 : index
      %125 = vector.load %arg5[%c13, %c0_68, %c0_69] : memref<49x8x128xf32, #tpu.memory_space<vmem>>, vector<1x8x128xf32>
      %126 = vector.shape_cast %125 : vector<1x8x128xf32> to vector<8x128xf32>
      %127 = arith.mulf %124, %126 : vector<8x128xf32>
      %128 = arith.addf %122, %127 : vector<8x128xf32>
      %c2_i32 = arith.constant 2 : i32
      %129 = arith.addi %arg12, %c2_i32 : i32
      %130 = arith.index_cast %129 : i32 to index
      %c0_70 = arith.constant 0 : index
      %c0_71 = arith.constant 0 : index
      %131 = vector.load %arg10[%130, %c0_70, %c0_71] : memref<22x32x128xf32, #tpu.memory_space<vmem>>, vector<1x24x128xf32>
      %132 = vector.shape_cast %131 : vector<1x24x128xf32> to vector<24x128xf32>
      %133 = vector.extract_strided_slice %132 {offsets = [0, 0], sizes = [16, 128], strides = [1, 1]} : vector<24x128xf32> to vector<16x128xf32>
      %134 = vector.extract_strided_slice %132 {offsets = [8, 0], sizes = [16, 128], strides = [1, 1]} : vector<24x128xf32> to vector<16x128xf32>
      %c11_i32_72 = arith.constant 11 : i32
      %135 = tpu.dynamic_rotate %133 by %c11_i32_72 dim 0 : vector<16x128xf32>, i32 -> vector<16x128xf32>
      %136 = vector.extract_strided_slice %135 {offsets = [0, 0], sizes = [8, 128], strides = [1, 1]} : vector<16x128xf32> to vector<8x128xf32>
      %c14 = arith.constant 14 : index
      %c0_73 = arith.constant 0 : index
      %c0_74 = arith.constant 0 : index
      %137 = vector.load %arg5[%c14, %c0_73, %c0_74] : memref<49x8x128xf32, #tpu.memory_space<vmem>>, vector<1x8x128xf32>
      %138 = vector.shape_cast %137 : vector<1x8x128xf32> to vector<8x128xf32>
      %139 = arith.mulf %136, %138 : vector<8x128xf32>
      %140 = arith.addf %128, %139 : vector<8x128xf32>
      %c10_i32_75 = arith.constant 10 : i32
      %141 = tpu.dynamic_rotate %133 by %c10_i32_75 dim 0 : vector<16x128xf32>, i32 -> vector<16x128xf32>
      %142 = vector.extract_strided_slice %141 {offsets = [0, 0], sizes = [8, 128], strides = [1, 1]} : vector<16x128xf32> to vector<8x128xf32>
      %c15 = arith.constant 15 : index
      %c0_76 = arith.constant 0 : index
      %c0_77 = arith.constant 0 : index
      %143 = vector.load %arg5[%c15, %c0_76, %c0_77] : memref<49x8x128xf32, #tpu.memory_space<vmem>>, vector<1x8x128xf32>
      %144 = vector.shape_cast %143 : vector<1x8x128xf32> to vector<8x128xf32>
      %145 = arith.mulf %142, %144 : vector<8x128xf32>
      %146 = arith.addf %140, %145 : vector<8x128xf32>
      %c9_i32_78 = arith.constant 9 : i32
      %147 = tpu.dynamic_rotate %133 by %c9_i32_78 dim 0 : vector<16x128xf32>, i32 -> vector<16x128xf32>
      %148 = vector.extract_strided_slice %147 {offsets = [0, 0], sizes = [8, 128], strides = [1, 1]} : vector<16x128xf32> to vector<8x128xf32>
      %c16 = arith.constant 16 : index
      %c0_79 = arith.constant 0 : index
      %c0_80 = arith.constant 0 : index
      %149 = vector.load %arg5[%c16, %c0_79, %c0_80] : memref<49x8x128xf32, #tpu.memory_space<vmem>>, vector<1x8x128xf32>
      %150 = vector.shape_cast %149 : vector<1x8x128xf32> to vector<8x128xf32>
      %151 = arith.mulf %148, %150 : vector<8x128xf32>
      %152 = arith.addf %146, %151 : vector<8x128xf32>
      %153 = vector.extract_strided_slice %132 {offsets = [8, 0], sizes = [8, 128], strides = [1, 1]} : vector<24x128xf32> to vector<8x128xf32>
      %c17 = arith.constant 17 : index
      %c0_81 = arith.constant 0 : index
      %c0_82 = arith.constant 0 : index
      %154 = vector.load %arg5[%c17, %c0_81, %c0_82] : memref<49x8x128xf32, #tpu.memory_space<vmem>>, vector<1x8x128xf32>
      %155 = vector.shape_cast %154 : vector<1x8x128xf32> to vector<8x128xf32>
      %156 = arith.mulf %153, %155 : vector<8x128xf32>
      %157 = arith.addf %152, %156 : vector<8x128xf32>
      %c15_i32_83 = arith.constant 15 : i32
      %158 = tpu.dynamic_rotate %134 by %c15_i32_83 dim 0 : vector<16x128xf32>, i32 -> vector<16x128xf32>
      %159 = vector.extract_strided_slice %158 {offsets = [0, 0], sizes = [8, 128], strides = [1, 1]} : vector<16x128xf32> to vector<8x128xf32>
      %c18 = arith.constant 18 : index
      %c0_84 = arith.constant 0 : index
      %c0_85 = arith.constant 0 : index
      %160 = vector.load %arg5[%c18, %c0_84, %c0_85] : memref<49x8x128xf32, #tpu.memory_space<vmem>>, vector<1x8x128xf32>
      %161 = vector.shape_cast %160 : vector<1x8x128xf32> to vector<8x128xf32>
      %162 = arith.mulf %159, %161 : vector<8x128xf32>
      %163 = arith.addf %157, %162 : vector<8x128xf32>
      %c14_i32_86 = arith.constant 14 : i32
      %164 = tpu.dynamic_rotate %134 by %c14_i32_86 dim 0 : vector<16x128xf32>, i32 -> vector<16x128xf32>
      %165 = vector.extract_strided_slice %164 {offsets = [0, 0], sizes = [8, 128], strides = [1, 1]} : vector<16x128xf32> to vector<8x128xf32>
      %c19 = arith.constant 19 : index
      %c0_87 = arith.constant 0 : index
      %c0_88 = arith.constant 0 : index
      %166 = vector.load %arg5[%c19, %c0_87, %c0_88] : memref<49x8x128xf32, #tpu.memory_space<vmem>>, vector<1x8x128xf32>
      %167 = vector.shape_cast %166 : vector<1x8x128xf32> to vector<8x128xf32>
      %168 = arith.mulf %165, %167 : vector<8x128xf32>
      %169 = arith.addf %163, %168 : vector<8x128xf32>
      %c13_i32_89 = arith.constant 13 : i32
      %170 = tpu.dynamic_rotate %134 by %c13_i32_89 dim 0 : vector<16x128xf32>, i32 -> vector<16x128xf32>
      %171 = vector.extract_strided_slice %170 {offsets = [0, 0], sizes = [8, 128], strides = [1, 1]} : vector<16x128xf32> to vector<8x128xf32>
      %c20 = arith.constant 20 : index
      %c0_90 = arith.constant 0 : index
      %c0_91 = arith.constant 0 : index
      %172 = vector.load %arg5[%c20, %c0_90, %c0_91] : memref<49x8x128xf32, #tpu.memory_space<vmem>>, vector<1x8x128xf32>
      %173 = vector.shape_cast %172 : vector<1x8x128xf32> to vector<8x128xf32>
      %174 = arith.mulf %171, %173 : vector<8x128xf32>
      %175 = arith.addf %169, %174 : vector<8x128xf32>
      %c3_i32 = arith.constant 3 : i32
      %176 = arith.addi %arg12, %c3_i32 : i32
      %177 = arith.index_cast %176 : i32 to index
      %c0_92 = arith.constant 0 : index
      %c0_93 = arith.constant 0 : index
      %178 = vector.load %arg10[%177, %c0_92, %c0_93] : memref<22x32x128xf32, #tpu.memory_space<vmem>>, vector<1x24x128xf32>
      %179 = vector.shape_cast %178 : vector<1x24x128xf32> to vector<24x128xf32>
      %180 = vector.extract_strided_slice %179 {offsets = [0, 0], sizes = [16, 128], strides = [1, 1]} : vector<24x128xf32> to vector<16x128xf32>
      %181 = vector.extract_strided_slice %179 {offsets = [8, 0], sizes = [16, 128], strides = [1, 1]} : vector<24x128xf32> to vector<16x128xf32>
      %c11_i32_94 = arith.constant 11 : i32
      %182 = tpu.dynamic_rotate %180 by %c11_i32_94 dim 0 : vector<16x128xf32>, i32 -> vector<16x128xf32>
      %183 = vector.extract_strided_slice %182 {offsets = [0, 0], sizes = [8, 128], strides = [1, 1]} : vector<16x128xf32> to vector<8x128xf32>
      %c21 = arith.constant 21 : index
      %c0_95 = arith.constant 0 : index
      %c0_96 = arith.constant 0 : index
      %184 = vector.load %arg5[%c21, %c0_95, %c0_96] : memref<49x8x128xf32, #tpu.memory_space<vmem>>, vector<1x8x128xf32>
      %185 = vector.shape_cast %184 : vector<1x8x128xf32> to vector<8x128xf32>
      %186 = arith.mulf %183, %185 : vector<8x128xf32>
      %187 = arith.addf %175, %186 : vector<8x128xf32>
      %c10_i32_97 = arith.constant 10 : i32
      %188 = tpu.dynamic_rotate %180 by %c10_i32_97 dim 0 : vector<16x128xf32>, i32 -> vector<16x128xf32>
      %189 = vector.extract_strided_slice %188 {offsets = [0, 0], sizes = [8, 128], strides = [1, 1]} : vector<16x128xf32> to vector<8x128xf32>
      %c22 = arith.constant 22 : index
      %c0_98 = arith.constant 0 : index
      %c0_99 = arith.constant 0 : index
      %190 = vector.load %arg5[%c22, %c0_98, %c0_99] : memref<49x8x128xf32, #tpu.memory_space<vmem>>, vector<1x8x128xf32>
      %191 = vector.shape_cast %190 : vector<1x8x128xf32> to vector<8x128xf32>
      %192 = arith.mulf %189, %191 : vector<8x128xf32>
      %193 = arith.addf %187, %192 : vector<8x128xf32>
      %c9_i32_100 = arith.constant 9 : i32
      %194 = tpu.dynamic_rotate %180 by %c9_i32_100 dim 0 : vector<16x128xf32>, i32 -> vector<16x128xf32>
      %195 = vector.extract_strided_slice %194 {offsets = [0, 0], sizes = [8, 128], strides = [1, 1]} : vector<16x128xf32> to vector<8x128xf32>
      %c23 = arith.constant 23 : index
      %c0_101 = arith.constant 0 : index
      %c0_102 = arith.constant 0 : index
      %196 = vector.load %arg5[%c23, %c0_101, %c0_102] : memref<49x8x128xf32, #tpu.memory_space<vmem>>, vector<1x8x128xf32>
      %197 = vector.shape_cast %196 : vector<1x8x128xf32> to vector<8x128xf32>
      %198 = arith.mulf %195, %197 : vector<8x128xf32>
      %199 = arith.addf %193, %198 : vector<8x128xf32>
      %200 = vector.extract_strided_slice %179 {offsets = [8, 0], sizes = [8, 128], strides = [1, 1]} : vector<24x128xf32> to vector<8x128xf32>
      %c24 = arith.constant 24 : index
      %c0_103 = arith.constant 0 : index
      %c0_104 = arith.constant 0 : index
      %201 = vector.load %arg5[%c24, %c0_103, %c0_104] : memref<49x8x128xf32, #tpu.memory_space<vmem>>, vector<1x8x128xf32>
      %202 = vector.shape_cast %201 : vector<1x8x128xf32> to vector<8x128xf32>
      %203 = arith.mulf %200, %202 : vector<8x128xf32>
      %204 = arith.addf %199, %203 : vector<8x128xf32>
      %c15_i32_105 = arith.constant 15 : i32
      %205 = tpu.dynamic_rotate %181 by %c15_i32_105 dim 0 : vector<16x128xf32>, i32 -> vector<16x128xf32>
      %206 = vector.extract_strided_slice %205 {offsets = [0, 0], sizes = [8, 128], strides = [1, 1]} : vector<16x128xf32> to vector<8x128xf32>
      %c25 = arith.constant 25 : index
      %c0_106 = arith.constant 0 : index
      %c0_107 = arith.constant 0 : index
      %207 = vector.load %arg5[%c25, %c0_106, %c0_107] : memref<49x8x128xf32, #tpu.memory_space<vmem>>, vector<1x8x128xf32>
      %208 = vector.shape_cast %207 : vector<1x8x128xf32> to vector<8x128xf32>
      %209 = arith.mulf %206, %208 : vector<8x128xf32>
      %210 = arith.addf %204, %209 : vector<8x128xf32>
      %c14_i32_108 = arith.constant 14 : i32
      %211 = tpu.dynamic_rotate %181 by %c14_i32_108 dim 0 : vector<16x128xf32>, i32 -> vector<16x128xf32>
      %212 = vector.extract_strided_slice %211 {offsets = [0, 0], sizes = [8, 128], strides = [1, 1]} : vector<16x128xf32> to vector<8x128xf32>
      %c26 = arith.constant 26 : index
      %c0_109 = arith.constant 0 : index
      %c0_110 = arith.constant 0 : index
      %213 = vector.load %arg5[%c26, %c0_109, %c0_110] : memref<49x8x128xf32, #tpu.memory_space<vmem>>, vector<1x8x128xf32>
      %214 = vector.shape_cast %213 : vector<1x8x128xf32> to vector<8x128xf32>
      %215 = arith.mulf %212, %214 : vector<8x128xf32>
      %216 = arith.addf %210, %215 : vector<8x128xf32>
      %c13_i32_111 = arith.constant 13 : i32
      %217 = tpu.dynamic_rotate %181 by %c13_i32_111 dim 0 : vector<16x128xf32>, i32 -> vector<16x128xf32>
      %218 = vector.extract_strided_slice %217 {offsets = [0, 0], sizes = [8, 128], strides = [1, 1]} : vector<16x128xf32> to vector<8x128xf32>
      %c27 = arith.constant 27 : index
      %c0_112 = arith.constant 0 : index
      %c0_113 = arith.constant 0 : index
      %219 = vector.load %arg5[%c27, %c0_112, %c0_113] : memref<49x8x128xf32, #tpu.memory_space<vmem>>, vector<1x8x128xf32>
      %220 = vector.shape_cast %219 : vector<1x8x128xf32> to vector<8x128xf32>
      %221 = arith.mulf %218, %220 : vector<8x128xf32>
      %222 = arith.addf %216, %221 : vector<8x128xf32>
      %c4_i32 = arith.constant 4 : i32
      %223 = arith.addi %arg12, %c4_i32 : i32
      %224 = arith.index_cast %223 : i32 to index
      %c0_114 = arith.constant 0 : index
      %c0_115 = arith.constant 0 : index
      %225 = vector.load %arg10[%224, %c0_114, %c0_115] : memref<22x32x128xf32, #tpu.memory_space<vmem>>, vector<1x24x128xf32>
      %226 = vector.shape_cast %225 : vector<1x24x128xf32> to vector<24x128xf32>
      %227 = vector.extract_strided_slice %226 {offsets = [0, 0], sizes = [16, 128], strides = [1, 1]} : vector<24x128xf32> to vector<16x128xf32>
      %228 = vector.extract_strided_slice %226 {offsets = [8, 0], sizes = [16, 128], strides = [1, 1]} : vector<24x128xf32> to vector<16x128xf32>
      %c11_i32_116 = arith.constant 11 : i32
      %229 = tpu.dynamic_rotate %227 by %c11_i32_116 dim 0 : vector<16x128xf32>, i32 -> vector<16x128xf32>
      %230 = vector.extract_strided_slice %229 {offsets = [0, 0], sizes = [8, 128], strides = [1, 1]} : vector<16x128xf32> to vector<8x128xf32>
      %c28 = arith.constant 28 : index
      %c0_117 = arith.constant 0 : index
      %c0_118 = arith.constant 0 : index
      %231 = vector.load %arg5[%c28, %c0_117, %c0_118] : memref<49x8x128xf32, #tpu.memory_space<vmem>>, vector<1x8x128xf32>
      %232 = vector.shape_cast %231 : vector<1x8x128xf32> to vector<8x128xf32>
      %233 = arith.mulf %230, %232 : vector<8x128xf32>
      %234 = arith.addf %222, %233 : vector<8x128xf32>
      %c10_i32_119 = arith.constant 10 : i32
      %235 = tpu.dynamic_rotate %227 by %c10_i32_119 dim 0 : vector<16x128xf32>, i32 -> vector<16x128xf32>
      %236 = vector.extract_strided_slice %235 {offsets = [0, 0], sizes = [8, 128], strides = [1, 1]} : vector<16x128xf32> to vector<8x128xf32>
      %c29 = arith.constant 29 : index
      %c0_120 = arith.constant 0 : index
      %c0_121 = arith.constant 0 : index
      %237 = vector.load %arg5[%c29, %c0_120, %c0_121] : memref<49x8x128xf32, #tpu.memory_space<vmem>>, vector<1x8x128xf32>
      %238 = vector.shape_cast %237 : vector<1x8x128xf32> to vector<8x128xf32>
      %239 = arith.mulf %236, %238 : vector<8x128xf32>
      %240 = arith.addf %234, %239 : vector<8x128xf32>
      %c9_i32_122 = arith.constant 9 : i32
      %241 = tpu.dynamic_rotate %227 by %c9_i32_122 dim 0 : vector<16x128xf32>, i32 -> vector<16x128xf32>
      %242 = vector.extract_strided_slice %241 {offsets = [0, 0], sizes = [8, 128], strides = [1, 1]} : vector<16x128xf32> to vector<8x128xf32>
      %c30 = arith.constant 30 : index
      %c0_123 = arith.constant 0 : index
      %c0_124 = arith.constant 0 : index
      %243 = vector.load %arg5[%c30, %c0_123, %c0_124] : memref<49x8x128xf32, #tpu.memory_space<vmem>>, vector<1x8x128xf32>
      %244 = vector.shape_cast %243 : vector<1x8x128xf32> to vector<8x128xf32>
      %245 = arith.mulf %242, %244 : vector<8x128xf32>
      %246 = arith.addf %240, %245 : vector<8x128xf32>
      %247 = vector.extract_strided_slice %226 {offsets = [8, 0], sizes = [8, 128], strides = [1, 1]} : vector<24x128xf32> to vector<8x128xf32>
      %c31 = arith.constant 31 : index
      %c0_125 = arith.constant 0 : index
      %c0_126 = arith.constant 0 : index
      %248 = vector.load %arg5[%c31, %c0_125, %c0_126] : memref<49x8x128xf32, #tpu.memory_space<vmem>>, vector<1x8x128xf32>
      %249 = vector.shape_cast %248 : vector<1x8x128xf32> to vector<8x128xf32>
      %250 = arith.mulf %247, %249 : vector<8x128xf32>
      %251 = arith.addf %246, %250 : vector<8x128xf32>
      %c15_i32_127 = arith.constant 15 : i32
      %252 = tpu.dynamic_rotate %228 by %c15_i32_127 dim 0 : vector<16x128xf32>, i32 -> vector<16x128xf32>
      %253 = vector.extract_strided_slice %252 {offsets = [0, 0], sizes = [8, 128], strides = [1, 1]} : vector<16x128xf32> to vector<8x128xf32>
      %c32 = arith.constant 32 : index
      %c0_128 = arith.constant 0 : index
      %c0_129 = arith.constant 0 : index
      %254 = vector.load %arg5[%c32, %c0_128, %c0_129] : memref<49x8x128xf32, #tpu.memory_space<vmem>>, vector<1x8x128xf32>
      %255 = vector.shape_cast %254 : vector<1x8x128xf32> to vector<8x128xf32>
      %256 = arith.mulf %253, %255 : vector<8x128xf32>
      %257 = arith.addf %251, %256 : vector<8x128xf32>
      %c14_i32_130 = arith.constant 14 : i32
      %258 = tpu.dynamic_rotate %228 by %c14_i32_130 dim 0 : vector<16x128xf32>, i32 -> vector<16x128xf32>
      %259 = vector.extract_strided_slice %258 {offsets = [0, 0], sizes = [8, 128], strides = [1, 1]} : vector<16x128xf32> to vector<8x128xf32>
      %c33 = arith.constant 33 : index
      %c0_131 = arith.constant 0 : index
      %c0_132 = arith.constant 0 : index
      %260 = vector.load %arg5[%c33, %c0_131, %c0_132] : memref<49x8x128xf32, #tpu.memory_space<vmem>>, vector<1x8x128xf32>
      %261 = vector.shape_cast %260 : vector<1x8x128xf32> to vector<8x128xf32>
      %262 = arith.mulf %259, %261 : vector<8x128xf32>
      %263 = arith.addf %257, %262 : vector<8x128xf32>
      %c13_i32_133 = arith.constant 13 : i32
      %264 = tpu.dynamic_rotate %228 by %c13_i32_133 dim 0 : vector<16x128xf32>, i32 -> vector<16x128xf32>
      %265 = vector.extract_strided_slice %264 {offsets = [0, 0], sizes = [8, 128], strides = [1, 1]} : vector<16x128xf32> to vector<8x128xf32>
      %c34 = arith.constant 34 : index
      %c0_134 = arith.constant 0 : index
      %c0_135 = arith.constant 0 : index
      %266 = vector.load %arg5[%c34, %c0_134, %c0_135] : memref<49x8x128xf32, #tpu.memory_space<vmem>>, vector<1x8x128xf32>
      %267 = vector.shape_cast %266 : vector<1x8x128xf32> to vector<8x128xf32>
      %268 = arith.mulf %265, %267 : vector<8x128xf32>
      %269 = arith.addf %263, %268 : vector<8x128xf32>
      %c5_i32 = arith.constant 5 : i32
      %270 = arith.addi %arg12, %c5_i32 : i32
      %271 = arith.index_cast %270 : i32 to index
      %c0_136 = arith.constant 0 : index
      %c0_137 = arith.constant 0 : index
      %272 = vector.load %arg10[%271, %c0_136, %c0_137] : memref<22x32x128xf32, #tpu.memory_space<vmem>>, vector<1x24x128xf32>
      %273 = vector.shape_cast %272 : vector<1x24x128xf32> to vector<24x128xf32>
      %274 = vector.extract_strided_slice %273 {offsets = [0, 0], sizes = [16, 128], strides = [1, 1]} : vector<24x128xf32> to vector<16x128xf32>
      %275 = vector.extract_strided_slice %273 {offsets = [8, 0], sizes = [16, 128], strides = [1, 1]} : vector<24x128xf32> to vector<16x128xf32>
      %c11_i32_138 = arith.constant 11 : i32
      %276 = tpu.dynamic_rotate %274 by %c11_i32_138 dim 0 : vector<16x128xf32>, i32 -> vector<16x128xf32>
      %277 = vector.extract_strided_slice %276 {offsets = [0, 0], sizes = [8, 128], strides = [1, 1]} : vector<16x128xf32> to vector<8x128xf32>
      %c35 = arith.constant 35 : index
      %c0_139 = arith.constant 0 : index
      %c0_140 = arith.constant 0 : index
      %278 = vector.load %arg5[%c35, %c0_139, %c0_140] : memref<49x8x128xf32, #tpu.memory_space<vmem>>, vector<1x8x128xf32>
      %279 = vector.shape_cast %278 : vector<1x8x128xf32> to vector<8x128xf32>
      %280 = arith.mulf %277, %279 : vector<8x128xf32>
      %281 = arith.addf %269, %280 : vector<8x128xf32>
      %c10_i32_141 = arith.constant 10 : i32
      %282 = tpu.dynamic_rotate %274 by %c10_i32_141 dim 0 : vector<16x128xf32>, i32 -> vector<16x128xf32>
      %283 = vector.extract_strided_slice %282 {offsets = [0, 0], sizes = [8, 128], strides = [1, 1]} : vector<16x128xf32> to vector<8x128xf32>
      %c36 = arith.constant 36 : index
      %c0_142 = arith.constant 0 : index
      %c0_143 = arith.constant 0 : index
      %284 = vector.load %arg5[%c36, %c0_142, %c0_143] : memref<49x8x128xf32, #tpu.memory_space<vmem>>, vector<1x8x128xf32>
      %285 = vector.shape_cast %284 : vector<1x8x128xf32> to vector<8x128xf32>
      %286 = arith.mulf %283, %285 : vector<8x128xf32>
      %287 = arith.addf %281, %286 : vector<8x128xf32>
      %c9_i32_144 = arith.constant 9 : i32
      %288 = tpu.dynamic_rotate %274 by %c9_i32_144 dim 0 : vector<16x128xf32>, i32 -> vector<16x128xf32>
      %289 = vector.extract_strided_slice %288 {offsets = [0, 0], sizes = [8, 128], strides = [1, 1]} : vector<16x128xf32> to vector<8x128xf32>
      %c37 = arith.constant 37 : index
      %c0_145 = arith.constant 0 : index
      %c0_146 = arith.constant 0 : index
      %290 = vector.load %arg5[%c37, %c0_145, %c0_146] : memref<49x8x128xf32, #tpu.memory_space<vmem>>, vector<1x8x128xf32>
      %291 = vector.shape_cast %290 : vector<1x8x128xf32> to vector<8x128xf32>
      %292 = arith.mulf %289, %291 : vector<8x128xf32>
      %293 = arith.addf %287, %292 : vector<8x128xf32>
      %294 = vector.extract_strided_slice %273 {offsets = [8, 0], sizes = [8, 128], strides = [1, 1]} : vector<24x128xf32> to vector<8x128xf32>
      %c38 = arith.constant 38 : index
      %c0_147 = arith.constant 0 : index
      %c0_148 = arith.constant 0 : index
      %295 = vector.load %arg5[%c38, %c0_147, %c0_148] : memref<49x8x128xf32, #tpu.memory_space<vmem>>, vector<1x8x128xf32>
      %296 = vector.shape_cast %295 : vector<1x8x128xf32> to vector<8x128xf32>
      %297 = arith.mulf %294, %296 : vector<8x128xf32>
      %298 = arith.addf %293, %297 : vector<8x128xf32>
      %c15_i32_149 = arith.constant 15 : i32
      %299 = tpu.dynamic_rotate %275 by %c15_i32_149 dim 0 : vector<16x128xf32>, i32 -> vector<16x128xf32>
      %300 = vector.extract_strided_slice %299 {offsets = [0, 0], sizes = [8, 128], strides = [1, 1]} : vector<16x128xf32> to vector<8x128xf32>
      %c39 = arith.constant 39 : index
      %c0_150 = arith.constant 0 : index
      %c0_151 = arith.constant 0 : index
      %301 = vector.load %arg5[%c39, %c0_150, %c0_151] : memref<49x8x128xf32, #tpu.memory_space<vmem>>, vector<1x8x128xf32>
      %302 = vector.shape_cast %301 : vector<1x8x128xf32> to vector<8x128xf32>
      %303 = arith.mulf %300, %302 : vector<8x128xf32>
      %304 = arith.addf %298, %303 : vector<8x128xf32>
      %c14_i32_152 = arith.constant 14 : i32
      %305 = tpu.dynamic_rotate %275 by %c14_i32_152 dim 0 : vector<16x128xf32>, i32 -> vector<16x128xf32>
      %306 = vector.extract_strided_slice %305 {offsets = [0, 0], sizes = [8, 128], strides = [1, 1]} : vector<16x128xf32> to vector<8x128xf32>
      %c40 = arith.constant 40 : index
      %c0_153 = arith.constant 0 : index
      %c0_154 = arith.constant 0 : index
      %307 = vector.load %arg5[%c40, %c0_153, %c0_154] : memref<49x8x128xf32, #tpu.memory_space<vmem>>, vector<1x8x128xf32>
      %308 = vector.shape_cast %307 : vector<1x8x128xf32> to vector<8x128xf32>
      %309 = arith.mulf %306, %308 : vector<8x128xf32>
      %310 = arith.addf %304, %309 : vector<8x128xf32>
      %c13_i32_155 = arith.constant 13 : i32
      %311 = tpu.dynamic_rotate %275 by %c13_i32_155 dim 0 : vector<16x128xf32>, i32 -> vector<16x128xf32>
      %312 = vector.extract_strided_slice %311 {offsets = [0, 0], sizes = [8, 128], strides = [1, 1]} : vector<16x128xf32> to vector<8x128xf32>
      %c41 = arith.constant 41 : index
      %c0_156 = arith.constant 0 : index
      %c0_157 = arith.constant 0 : index
      %313 = vector.load %arg5[%c41, %c0_156, %c0_157] : memref<49x8x128xf32, #tpu.memory_space<vmem>>, vector<1x8x128xf32>
      %314 = vector.shape_cast %313 : vector<1x8x128xf32> to vector<8x128xf32>
      %315 = arith.mulf %312, %314 : vector<8x128xf32>
      %316 = arith.addf %310, %315 : vector<8x128xf32>
      %c6_i32 = arith.constant 6 : i32
      %317 = arith.addi %arg12, %c6_i32 : i32
      %318 = arith.index_cast %317 : i32 to index
      %c0_158 = arith.constant 0 : index
      %c0_159 = arith.constant 0 : index
      %319 = vector.load %arg10[%318, %c0_158, %c0_159] : memref<22x32x128xf32, #tpu.memory_space<vmem>>, vector<1x24x128xf32>
      %320 = vector.shape_cast %319 : vector<1x24x128xf32> to vector<24x128xf32>
      %321 = vector.extract_strided_slice %320 {offsets = [0, 0], sizes = [16, 128], strides = [1, 1]} : vector<24x128xf32> to vector<16x128xf32>
      %322 = vector.extract_strided_slice %320 {offsets = [8, 0], sizes = [16, 128], strides = [1, 1]} : vector<24x128xf32> to vector<16x128xf32>
      %c11_i32_160 = arith.constant 11 : i32
      %323 = tpu.dynamic_rotate %321 by %c11_i32_160 dim 0 : vector<16x128xf32>, i32 -> vector<16x128xf32>
      %324 = vector.extract_strided_slice %323 {offsets = [0, 0], sizes = [8, 128], strides = [1, 1]} : vector<16x128xf32> to vector<8x128xf32>
      %c42 = arith.constant 42 : index
      %c0_161 = arith.constant 0 : index
      %c0_162 = arith.constant 0 : index
      %325 = vector.load %arg5[%c42, %c0_161, %c0_162] : memref<49x8x128xf32, #tpu.memory_space<vmem>>, vector<1x8x128xf32>
      %326 = vector.shape_cast %325 : vector<1x8x128xf32> to vector<8x128xf32>
      %327 = arith.mulf %324, %326 : vector<8x128xf32>
      %328 = arith.addf %316, %327 : vector<8x128xf32>
      %c10_i32_163 = arith.constant 10 : i32
      %329 = tpu.dynamic_rotate %321 by %c10_i32_163 dim 0 : vector<16x128xf32>, i32 -> vector<16x128xf32>
      %330 = vector.extract_strided_slice %329 {offsets = [0, 0], sizes = [8, 128], strides = [1, 1]} : vector<16x128xf32> to vector<8x128xf32>
      %c43 = arith.constant 43 : index
      %c0_164 = arith.constant 0 : index
      %c0_165 = arith.constant 0 : index
      %331 = vector.load %arg5[%c43, %c0_164, %c0_165] : memref<49x8x128xf32, #tpu.memory_space<vmem>>, vector<1x8x128xf32>
      %332 = vector.shape_cast %331 : vector<1x8x128xf32> to vector<8x128xf32>
      %333 = arith.mulf %330, %332 : vector<8x128xf32>
      %334 = arith.addf %328, %333 : vector<8x128xf32>
      %c9_i32_166 = arith.constant 9 : i32
      %335 = tpu.dynamic_rotate %321 by %c9_i32_166 dim 0 : vector<16x128xf32>, i32 -> vector<16x128xf32>
      %336 = vector.extract_strided_slice %335 {offsets = [0, 0], sizes = [8, 128], strides = [1, 1]} : vector<16x128xf32> to vector<8x128xf32>
      %c44 = arith.constant 44 : index
      %c0_167 = arith.constant 0 : index
      %c0_168 = arith.constant 0 : index
      %337 = vector.load %arg5[%c44, %c0_167, %c0_168] : memref<49x8x128xf32, #tpu.memory_space<vmem>>, vector<1x8x128xf32>
      %338 = vector.shape_cast %337 : vector<1x8x128xf32> to vector<8x128xf32>
      %339 = arith.mulf %336, %338 : vector<8x128xf32>
      %340 = arith.addf %334, %339 : vector<8x128xf32>
      %341 = vector.extract_strided_slice %320 {offsets = [8, 0], sizes = [8, 128], strides = [1, 1]} : vector<24x128xf32> to vector<8x128xf32>
      %c45 = arith.constant 45 : index
      %c0_169 = arith.constant 0 : index
      %c0_170 = arith.constant 0 : index
      %342 = vector.load %arg5[%c45, %c0_169, %c0_170] : memref<49x8x128xf32, #tpu.memory_space<vmem>>, vector<1x8x128xf32>
      %343 = vector.shape_cast %342 : vector<1x8x128xf32> to vector<8x128xf32>
      %344 = arith.mulf %341, %343 : vector<8x128xf32>
      %345 = arith.addf %340, %344 : vector<8x128xf32>
      %c15_i32_171 = arith.constant 15 : i32
      %346 = tpu.dynamic_rotate %322 by %c15_i32_171 dim 0 : vector<16x128xf32>, i32 -> vector<16x128xf32>
      %347 = vector.extract_strided_slice %346 {offsets = [0, 0], sizes = [8, 128], strides = [1, 1]} : vector<16x128xf32> to vector<8x128xf32>
      %c46 = arith.constant 46 : index
      %c0_172 = arith.constant 0 : index
      %c0_173 = arith.constant 0 : index
      %348 = vector.load %arg5[%c46, %c0_172, %c0_173] : memref<49x8x128xf32, #tpu.memory_space<vmem>>, vector<1x8x128xf32>
      %349 = vector.shape_cast %348 : vector<1x8x128xf32> to vector<8x128xf32>
      %350 = arith.mulf %347, %349 : vector<8x128xf32>
      %351 = arith.addf %345, %350 : vector<8x128xf32>
      %c14_i32_174 = arith.constant 14 : i32
      %352 = tpu.dynamic_rotate %322 by %c14_i32_174 dim 0 : vector<16x128xf32>, i32 -> vector<16x128xf32>
      %353 = vector.extract_strided_slice %352 {offsets = [0, 0], sizes = [8, 128], strides = [1, 1]} : vector<16x128xf32> to vector<8x128xf32>
      %c47 = arith.constant 47 : index
      %c0_175 = arith.constant 0 : index
      %c0_176 = arith.constant 0 : index
      %354 = vector.load %arg5[%c47, %c0_175, %c0_176] : memref<49x8x128xf32, #tpu.memory_space<vmem>>, vector<1x8x128xf32>
      %355 = vector.shape_cast %354 : vector<1x8x128xf32> to vector<8x128xf32>
      %356 = arith.mulf %353, %355 : vector<8x128xf32>
      %357 = arith.addf %351, %356 : vector<8x128xf32>
      %c13_i32_177 = arith.constant 13 : i32
      %358 = tpu.dynamic_rotate %322 by %c13_i32_177 dim 0 : vector<16x128xf32>, i32 -> vector<16x128xf32>
      %359 = vector.extract_strided_slice %358 {offsets = [0, 0], sizes = [8, 128], strides = [1, 1]} : vector<16x128xf32> to vector<8x128xf32>
      %c48 = arith.constant 48 : index
      %c0_178 = arith.constant 0 : index
      %c0_179 = arith.constant 0 : index
      %360 = vector.load %arg5[%c48, %c0_178, %c0_179] : memref<49x8x128xf32, #tpu.memory_space<vmem>>, vector<1x8x128xf32>
      %361 = vector.shape_cast %360 : vector<1x8x128xf32> to vector<8x128xf32>
      %362 = arith.mulf %359, %361 : vector<8x128xf32>
      %363 = arith.addf %357, %362 : vector<8x128xf32>
      %364 = arith.index_cast %arg12 : i32 to index
      %c0_180 = arith.constant 0 : index
      %c0_181 = arith.constant 0 : index
      %365 = vector.load %arg11[%364, %c0_180, %c0_181] : memref<16x16x128xf32, #tpu.memory_space<vmem>>, vector<1x8x128xf32>
      %366 = vector.shape_cast %365 : vector<1x8x128xf32> to vector<8x128xf32>
      %367 = vector.shape_cast %363 : vector<8x128xf32> to vector<1x8x128xf32>
      tpu.vector_store %arg11[%364, %c0_180, %c0_181], %367 {strides = array<i32>} : memref<16x16x128xf32, #tpu.memory_space<vmem>>, vector<1x8x128xf32>,
      %cst_182 = arith.constant 0.000000e+00 : f32
      %368 = vector.broadcast %cst_182 : f32 to vector<8x128xf32>
      %c0_i32_183 = arith.constant 0 : i32
      %369 = arith.addi %arg12, %c0_i32_183 : i32
      %370 = arith.index_cast %369 : i32 to index
      %c8_184 = arith.constant 8 : index
      %c0_185 = arith.constant 0 : index
      %371 = vector.load %arg10[%370, %c8_184, %c0_185] : memref<22x32x128xf32, #tpu.memory_space<vmem>>, vector<1x24x128xf32>
      %372 = vector.shape_cast %371 : vector<1x24x128xf32> to vector<24x128xf32>
      %373 = vector.extract_strided_slice %372 {offsets = [0, 0], sizes = [16, 128], strides = [1, 1]} : vector<24x128xf32> to vector<16x128xf32>
      %374 = vector.extract_strided_slice %372 {offsets = [8, 0], sizes = [16, 128], strides = [1, 1]} : vector<24x128xf32> to vector<16x128xf32>
      %c11_i32_186 = arith.constant 11 : i32
      %375 = tpu.dynamic_rotate %373 by %c11_i32_186 dim 0 : vector<16x128xf32>, i32 -> vector<16x128xf32>
      %376 = vector.extract_strided_slice %375 {offsets = [0, 0], sizes = [8, 128], strides = [1, 1]} : vector<16x128xf32> to vector<8x128xf32>
      %c0_187 = arith.constant 0 : index
      %c0_188 = arith.constant 0 : index
      %c0_189 = arith.constant 0 : index
      %377 = vector.load %arg5[%c0_187, %c0_188, %c0_189] : memref<49x8x128xf32, #tpu.memory_space<vmem>>, vector<1x8x128xf32>
      %378 = vector.shape_cast %377 : vector<1x8x128xf32> to vector<8x128xf32>
      %379 = arith.mulf %376, %378 : vector<8x128xf32>
      %380 = arith.addf %368, %379 : vector<8x128xf32>
      %c10_i32_190 = arith.constant 10 : i32
      %381 = tpu.dynamic_rotate %373 by %c10_i32_190 dim 0 : vector<16x128xf32>, i32 -> vector<16x128xf32>
      %382 = vector.extract_strided_slice %381 {offsets = [0, 0], sizes = [8, 128], strides = [1, 1]} : vector<16x128xf32> to vector<8x128xf32>
      %c1_191 = arith.constant 1 : index
      %c0_192 = arith.constant 0 : index
      %c0_193 = arith.constant 0 : index
      %383 = vector.load %arg5[%c1_191, %c0_192, %c0_193] : memref<49x8x128xf32, #tpu.memory_space<vmem>>, vector<1x8x128xf32>
      %384 = vector.shape_cast %383 : vector<1x8x128xf32> to vector<8x128xf32>
      %385 = arith.mulf %382, %384 : vector<8x128xf32>
      %386 = arith.addf %380, %385 : vector<8x128xf32>
      %c9_i32_194 = arith.constant 9 : i32
      %387 = tpu.dynamic_rotate %373 by %c9_i32_194 dim 0 : vector<16x128xf32>, i32 -> vector<16x128xf32>
      %388 = vector.extract_strided_slice %387 {offsets = [0, 0], sizes = [8, 128], strides = [1, 1]} : vector<16x128xf32> to vector<8x128xf32>
      %c2_195 = arith.constant 2 : index
      %c0_196 = arith.constant 0 : index
      %c0_197 = arith.constant 0 : index
      %389 = vector.load %arg5[%c2_195, %c0_196, %c0_197] : memref<49x8x128xf32, #tpu.memory_space<vmem>>, vector<1x8x128xf32>
      %390 = vector.shape_cast %389 : vector<1x8x128xf32> to vector<8x128xf32>
      %391 = arith.mulf %388, %390 : vector<8x128xf32>
      %392 = arith.addf %386, %391 : vector<8x128xf32>
      %393 = vector.extract_strided_slice %372 {offsets = [8, 0], sizes = [8, 128], strides = [1, 1]} : vector<24x128xf32> to vector<8x128xf32>
      %c3_198 = arith.constant 3 : index
      %c0_199 = arith.constant 0 : index
      %c0_200 = arith.constant 0 : index
      %394 = vector.load %arg5[%c3_198, %c0_199, %c0_200] : memref<49x8x128xf32, #tpu.memory_space<vmem>>, vector<1x8x128xf32>
      %395 = vector.shape_cast %394 : vector<1x8x128xf32> to vector<8x128xf32>
      %396 = arith.mulf %393, %395 : vector<8x128xf32>
      %397 = arith.addf %392, %396 : vector<8x128xf32>
      %c15_i32_201 = arith.constant 15 : i32
      %398 = tpu.dynamic_rotate %374 by %c15_i32_201 dim 0 : vector<16x128xf32>, i32 -> vector<16x128xf32>
      %399 = vector.extract_strided_slice %398 {offsets = [0, 0], sizes = [8, 128], strides = [1, 1]} : vector<16x128xf32> to vector<8x128xf32>
      %c4_202 = arith.constant 4 : index
      %c0_203 = arith.constant 0 : index
      %c0_204 = arith.constant 0 : index
      %400 = vector.load %arg5[%c4_202, %c0_203, %c0_204] : memref<49x8x128xf32, #tpu.memory_space<vmem>>, vector<1x8x128xf32>
      %401 = vector.shape_cast %400 : vector<1x8x128xf32> to vector<8x128xf32>
      %402 = arith.mulf %399, %401 : vector<8x128xf32>
      %403 = arith.addf %397, %402 : vector<8x128xf32>
      %c14_i32_205 = arith.constant 14 : i32
      %404 = tpu.dynamic_rotate %374 by %c14_i32_205 dim 0 : vector<16x128xf32>, i32 -> vector<16x128xf32>
      %405 = vector.extract_strided_slice %404 {offsets = [0, 0], sizes = [8, 128], strides = [1, 1]} : vector<16x128xf32> to vector<8x128xf32>
      %c5_206 = arith.constant 5 : index
      %c0_207 = arith.constant 0 : index
      %c0_208 = arith.constant 0 : index
      %406 = vector.load %arg5[%c5_206, %c0_207, %c0_208] : memref<49x8x128xf32, #tpu.memory_space<vmem>>, vector<1x8x128xf32>
      %407 = vector.shape_cast %406 : vector<1x8x128xf32> to vector<8x128xf32>
      %408 = arith.mulf %405, %407 : vector<8x128xf32>
      %409 = arith.addf %403, %408 : vector<8x128xf32>
      %c13_i32_209 = arith.constant 13 : i32
      %410 = tpu.dynamic_rotate %374 by %c13_i32_209 dim 0 : vector<16x128xf32>, i32 -> vector<16x128xf32>
      %411 = vector.extract_strided_slice %410 {offsets = [0, 0], sizes = [8, 128], strides = [1, 1]} : vector<16x128xf32> to vector<8x128xf32>
      %c6_210 = arith.constant 6 : index
      %c0_211 = arith.constant 0 : index
      %c0_212 = arith.constant 0 : index
      %412 = vector.load %arg5[%c6_210, %c0_211, %c0_212] : memref<49x8x128xf32, #tpu.memory_space<vmem>>, vector<1x8x128xf32>
      %413 = vector.shape_cast %412 : vector<1x8x128xf32> to vector<8x128xf32>
      %414 = arith.mulf %411, %413 : vector<8x128xf32>
      %415 = arith.addf %409, %414 : vector<8x128xf32>
      %c1_i32_213 = arith.constant 1 : i32
      %416 = arith.addi %arg12, %c1_i32_213 : i32
      %417 = arith.index_cast %416 : i32 to index
      %c8_214 = arith.constant 8 : index
      %c0_215 = arith.constant 0 : index
      %418 = vector.load %arg10[%417, %c8_214, %c0_215] : memref<22x32x128xf32, #tpu.memory_space<vmem>>, vector<1x24x128xf32>
      %419 = vector.shape_cast %418 : vector<1x24x128xf32> to vector<24x128xf32>
      %420 = vector.extract_strided_slice %419 {offsets = [0, 0], sizes = [16, 128], strides = [1, 1]} : vector<24x128xf32> to vector<16x128xf32>
      %421 = vector.extract_strided_slice %419 {offsets = [8, 0], sizes = [16, 128], strides = [1, 1]} : vector<24x128xf32> to vector<16x128xf32>
      %c11_i32_216 = arith.constant 11 : i32
      %422 = tpu.dynamic_rotate %420 by %c11_i32_216 dim 0 : vector<16x128xf32>, i32 -> vector<16x128xf32>
      %423 = vector.extract_strided_slice %422 {offsets = [0, 0], sizes = [8, 128], strides = [1, 1]} : vector<16x128xf32> to vector<8x128xf32>
      %c7_217 = arith.constant 7 : index
      %c0_218 = arith.constant 0 : index
      %c0_219 = arith.constant 0 : index
      %424 = vector.load %arg5[%c7_217, %c0_218, %c0_219] : memref<49x8x128xf32, #tpu.memory_space<vmem>>, vector<1x8x128xf32>
      %425 = vector.shape_cast %424 : vector<1x8x128xf32> to vector<8x128xf32>
      %426 = arith.mulf %423, %425 : vector<8x128xf32>
      %427 = arith.addf %415, %426 : vector<8x128xf32>
      %c10_i32_220 = arith.constant 10 : i32
      %428 = tpu.dynamic_rotate %420 by %c10_i32_220 dim 0 : vector<16x128xf32>, i32 -> vector<16x128xf32>
      %429 = vector.extract_strided_slice %428 {offsets = [0, 0], sizes = [8, 128], strides = [1, 1]} : vector<16x128xf32> to vector<8x128xf32>
      %c8_221 = arith.constant 8 : index
      %c0_222 = arith.constant 0 : index
      %c0_223 = arith.constant 0 : index
      %430 = vector.load %arg5[%c8_221, %c0_222, %c0_223] : memref<49x8x128xf32, #tpu.memory_space<vmem>>, vector<1x8x128xf32>
      %431 = vector.shape_cast %430 : vector<1x8x128xf32> to vector<8x128xf32>
      %432 = arith.mulf %429, %431 : vector<8x128xf32>
      %433 = arith.addf %427, %432 : vector<8x128xf32>
      %c9_i32_224 = arith.constant 9 : i32
      %434 = tpu.dynamic_rotate %420 by %c9_i32_224 dim 0 : vector<16x128xf32>, i32 -> vector<16x128xf32>
      %435 = vector.extract_strided_slice %434 {offsets = [0, 0], sizes = [8, 128], strides = [1, 1]} : vector<16x128xf32> to vector<8x128xf32>
      %c9_225 = arith.constant 9 : index
      %c0_226 = arith.constant 0 : index
      %c0_227 = arith.constant 0 : index
      %436 = vector.load %arg5[%c9_225, %c0_226, %c0_227] : memref<49x8x128xf32, #tpu.memory_space<vmem>>, vector<1x8x128xf32>
      %437 = vector.shape_cast %436 : vector<1x8x128xf32> to vector<8x128xf32>
      %438 = arith.mulf %435, %437 : vector<8x128xf32>
      %439 = arith.addf %433, %438 : vector<8x128xf32>
      %440 = vector.extract_strided_slice %419 {offsets = [8, 0], sizes = [8, 128], strides = [1, 1]} : vector<24x128xf32> to vector<8x128xf32>
      %c10_228 = arith.constant 10 : index
      %c0_229 = arith.constant 0 : index
      %c0_230 = arith.constant 0 : index
      %441 = vector.load %arg5[%c10_228, %c0_229, %c0_230] : memref<49x8x128xf32, #tpu.memory_space<vmem>>, vector<1x8x128xf32>
      %442 = vector.shape_cast %441 : vector<1x8x128xf32> to vector<8x128xf32>
      %443 = arith.mulf %440, %442 : vector<8x128xf32>
      %444 = arith.addf %439, %443 : vector<8x128xf32>
      %c15_i32_231 = arith.constant 15 : i32
      %445 = tpu.dynamic_rotate %421 by %c15_i32_231 dim 0 : vector<16x128xf32>, i32 -> vector<16x128xf32>
      %446 = vector.extract_strided_slice %445 {offsets = [0, 0], sizes = [8, 128], strides = [1, 1]} : vector<16x128xf32> to vector<8x128xf32>
      %c11_232 = arith.constant 11 : index
      %c0_233 = arith.constant 0 : index
      %c0_234 = arith.constant 0 : index
      %447 = vector.load %arg5[%c11_232, %c0_233, %c0_234] : memref<49x8x128xf32, #tpu.memory_space<vmem>>, vector<1x8x128xf32>
      %448 = vector.shape_cast %447 : vector<1x8x128xf32> to vector<8x128xf32>
      %449 = arith.mulf %446, %448 : vector<8x128xf32>
      %450 = arith.addf %444, %449 : vector<8x128xf32>
      %c14_i32_235 = arith.constant 14 : i32
      %451 = tpu.dynamic_rotate %421 by %c14_i32_235 dim 0 : vector<16x128xf32>, i32 -> vector<16x128xf32>
      %452 = vector.extract_strided_slice %451 {offsets = [0, 0], sizes = [8, 128], strides = [1, 1]} : vector<16x128xf32> to vector<8x128xf32>
      %c12_236 = arith.constant 12 : index
      %c0_237 = arith.constant 0 : index
      %c0_238 = arith.constant 0 : index
      %453 = vector.load %arg5[%c12_236, %c0_237, %c0_238] : memref<49x8x128xf32, #tpu.memory_space<vmem>>, vector<1x8x128xf32>
      %454 = vector.shape_cast %453 : vector<1x8x128xf32> to vector<8x128xf32>
      %455 = arith.mulf %452, %454 : vector<8x128xf32>
      %456 = arith.addf %450, %455 : vector<8x128xf32>
      %c13_i32_239 = arith.constant 13 : i32
      %457 = tpu.dynamic_rotate %421 by %c13_i32_239 dim 0 : vector<16x128xf32>, i32 -> vector<16x128xf32>
      %458 = vector.extract_strided_slice %457 {offsets = [0, 0], sizes = [8, 128], strides = [1, 1]} : vector<16x128xf32> to vector<8x128xf32>
      %c13_240 = arith.constant 13 : index
      %c0_241 = arith.constant 0 : index
      %c0_242 = arith.constant 0 : index
      %459 = vector.load %arg5[%c13_240, %c0_241, %c0_242] : memref<49x8x128xf32, #tpu.memory_space<vmem>>, vector<1x8x128xf32>
      %460 = vector.shape_cast %459 : vector<1x8x128xf32> to vector<8x128xf32>
      %461 = arith.mulf %458, %460 : vector<8x128xf32>
      %462 = arith.addf %456, %461 : vector<8x128xf32>
      %c2_i32_243 = arith.constant 2 : i32
      %463 = arith.addi %arg12, %c2_i32_243 : i32
      %464 = arith.index_cast %463 : i32 to index
      %c8_244 = arith.constant 8 : index
      %c0_245 = arith.constant 0 : index
      %465 = vector.load %arg10[%464, %c8_244, %c0_245] : memref<22x32x128xf32, #tpu.memory_space<vmem>>, vector<1x24x128xf32>
      %466 = vector.shape_cast %465 : vector<1x24x128xf32> to vector<24x128xf32>
      %467 = vector.extract_strided_slice %466 {offsets = [0, 0], sizes = [16, 128], strides = [1, 1]} : vector<24x128xf32> to vector<16x128xf32>
      %468 = vector.extract_strided_slice %466 {offsets = [8, 0], sizes = [16, 128], strides = [1, 1]} : vector<24x128xf32> to vector<16x128xf32>
      %c11_i32_246 = arith.constant 11 : i32
      %469 = tpu.dynamic_rotate %467 by %c11_i32_246 dim 0 : vector<16x128xf32>, i32 -> vector<16x128xf32>
      %470 = vector.extract_strided_slice %469 {offsets = [0, 0], sizes = [8, 128], strides = [1, 1]} : vector<16x128xf32> to vector<8x128xf32>
      %c14_247 = arith.constant 14 : index
      %c0_248 = arith.constant 0 : index
      %c0_249 = arith.constant 0 : index
      %471 = vector.load %arg5[%c14_247, %c0_248, %c0_249] : memref<49x8x128xf32, #tpu.memory_space<vmem>>, vector<1x8x128xf32>
      %472 = vector.shape_cast %471 : vector<1x8x128xf32> to vector<8x128xf32>
      %473 = arith.mulf %470, %472 : vector<8x128xf32>
      %474 = arith.addf %462, %473 : vector<8x128xf32>
      %c10_i32_250 = arith.constant 10 : i32
      %475 = tpu.dynamic_rotate %467 by %c10_i32_250 dim 0 : vector<16x128xf32>, i32 -> vector<16x128xf32>
      %476 = vector.extract_strided_slice %475 {offsets = [0, 0], sizes = [8, 128], strides = [1, 1]} : vector<16x128xf32> to vector<8x128xf32>
      %c15_251 = arith.constant 15 : index
      %c0_252 = arith.constant 0 : index
      %c0_253 = arith.constant 0 : index
      %477 = vector.load %arg5[%c15_251, %c0_252, %c0_253] : memref<49x8x128xf32, #tpu.memory_space<vmem>>, vector<1x8x128xf32>
      %478 = vector.shape_cast %477 : vector<1x8x128xf32> to vector<8x128xf32>
      %479 = arith.mulf %476, %478 : vector<8x128xf32>
      %480 = arith.addf %474, %479 : vector<8x128xf32>
      %c9_i32_254 = arith.constant 9 : i32
      %481 = tpu.dynamic_rotate %467 by %c9_i32_254 dim 0 : vector<16x128xf32>, i32 -> vector<16x128xf32>
      %482 = vector.extract_strided_slice %481 {offsets = [0, 0], sizes = [8, 128], strides = [1, 1]} : vector<16x128xf32> to vector<8x128xf32>
      %c16_255 = arith.constant 16 : index
      %c0_256 = arith.constant 0 : index
      %c0_257 = arith.constant 0 : index
      %483 = vector.load %arg5[%c16_255, %c0_256, %c0_257] : memref<49x8x128xf32, #tpu.memory_space<vmem>>, vector<1x8x128xf32>
      %484 = vector.shape_cast %483 : vector<1x8x128xf32> to vector<8x128xf32>
      %485 = arith.mulf %482, %484 : vector<8x128xf32>
      %486 = arith.addf %480, %485 : vector<8x128xf32>
      %487 = vector.extract_strided_slice %466 {offsets = [8, 0], sizes = [8, 128], strides = [1, 1]} : vector<24x128xf32> to vector<8x128xf32>
      %c17_258 = arith.constant 17 : index
      %c0_259 = arith.constant 0 : index
      %c0_260 = arith.constant 0 : index
      %488 = vector.load %arg5[%c17_258, %c0_259, %c0_260] : memref<49x8x128xf32, #tpu.memory_space<vmem>>, vector<1x8x128xf32>
      %489 = vector.shape_cast %488 : vector<1x8x128xf32> to vector<8x128xf32>
      %490 = arith.mulf %487, %489 : vector<8x128xf32>
      %491 = arith.addf %486, %490 : vector<8x128xf32>
      %c15_i32_261 = arith.constant 15 : i32
      %492 = tpu.dynamic_rotate %468 by %c15_i32_261 dim 0 : vector<16x128xf32>, i32 -> vector<16x128xf32>
      %493 = vector.extract_strided_slice %492 {offsets = [0, 0], sizes = [8, 128], strides = [1, 1]} : vector<16x128xf32> to vector<8x128xf32>
      %c18_262 = arith.constant 18 : index
      %c0_263 = arith.constant 0 : index
      %c0_264 = arith.constant 0 : index
      %494 = vector.load %arg5[%c18_262, %c0_263, %c0_264] : memref<49x8x128xf32, #tpu.memory_space<vmem>>, vector<1x8x128xf32>
      %495 = vector.shape_cast %494 : vector<1x8x128xf32> to vector<8x128xf32>
      %496 = arith.mulf %493, %495 : vector<8x128xf32>
      %497 = arith.addf %491, %496 : vector<8x128xf32>
      %c14_i32_265 = arith.constant 14 : i32
      %498 = tpu.dynamic_rotate %468 by %c14_i32_265 dim 0 : vector<16x128xf32>, i32 -> vector<16x128xf32>
      %499 = vector.extract_strided_slice %498 {offsets = [0, 0], sizes = [8, 128], strides = [1, 1]} : vector<16x128xf32> to vector<8x128xf32>
      %c19_266 = arith.constant 19 : index
      %c0_267 = arith.constant 0 : index
      %c0_268 = arith.constant 0 : index
      %500 = vector.load %arg5[%c19_266, %c0_267, %c0_268] : memref<49x8x128xf32, #tpu.memory_space<vmem>>, vector<1x8x128xf32>
      %501 = vector.shape_cast %500 : vector<1x8x128xf32> to vector<8x128xf32>
      %502 = arith.mulf %499, %501 : vector<8x128xf32>
      %503 = arith.addf %497, %502 : vector<8x128xf32>
      %c13_i32_269 = arith.constant 13 : i32
      %504 = tpu.dynamic_rotate %468 by %c13_i32_269 dim 0 : vector<16x128xf32>, i32 -> vector<16x128xf32>
      %505 = vector.extract_strided_slice %504 {offsets = [0, 0], sizes = [8, 128], strides = [1, 1]} : vector<16x128xf32> to vector<8x128xf32>
      %c20_270 = arith.constant 20 : index
      %c0_271 = arith.constant 0 : index
      %c0_272 = arith.constant 0 : index
      %506 = vector.load %arg5[%c20_270, %c0_271, %c0_272] : memref<49x8x128xf32, #tpu.memory_space<vmem>>, vector<1x8x128xf32>
      %507 = vector.shape_cast %506 : vector<1x8x128xf32> to vector<8x128xf32>
      %508 = arith.mulf %505, %507 : vector<8x128xf32>
      %509 = arith.addf %503, %508 : vector<8x128xf32>
      %c3_i32_273 = arith.constant 3 : i32
      %510 = arith.addi %arg12, %c3_i32_273 : i32
      %511 = arith.index_cast %510 : i32 to index
      %c8_274 = arith.constant 8 : index
      %c0_275 = arith.constant 0 : index
      %512 = vector.load %arg10[%511, %c8_274, %c0_275] : memref<22x32x128xf32, #tpu.memory_space<vmem>>, vector<1x24x128xf32>
      %513 = vector.shape_cast %512 : vector<1x24x128xf32> to vector<24x128xf32>
      %514 = vector.extract_strided_slice %513 {offsets = [0, 0], sizes = [16, 128], strides = [1, 1]} : vector<24x128xf32> to vector<16x128xf32>
      %515 = vector.extract_strided_slice %513 {offsets = [8, 0], sizes = [16, 128], strides = [1, 1]} : vector<24x128xf32> to vector<16x128xf32>
      %c11_i32_276 = arith.constant 11 : i32
      %516 = tpu.dynamic_rotate %514 by %c11_i32_276 dim 0 : vector<16x128xf32>, i32 -> vector<16x128xf32>
      %517 = vector.extract_strided_slice %516 {offsets = [0, 0], sizes = [8, 128], strides = [1, 1]} : vector<16x128xf32> to vector<8x128xf32>
      %c21_277 = arith.constant 21 : index
      %c0_278 = arith.constant 0 : index
      %c0_279 = arith.constant 0 : index
      %518 = vector.load %arg5[%c21_277, %c0_278, %c0_279] : memref<49x8x128xf32, #tpu.memory_space<vmem>>, vector<1x8x128xf32>
      %519 = vector.shape_cast %518 : vector<1x8x128xf32> to vector<8x128xf32>
      %520 = arith.mulf %517, %519 : vector<8x128xf32>
      %521 = arith.addf %509, %520 : vector<8x128xf32>
      %c10_i32_280 = arith.constant 10 : i32
      %522 = tpu.dynamic_rotate %514 by %c10_i32_280 dim 0 : vector<16x128xf32>, i32 -> vector<16x128xf32>
      %523 = vector.extract_strided_slice %522 {offsets = [0, 0], sizes = [8, 128], strides = [1, 1]} : vector<16x128xf32> to vector<8x128xf32>
      %c22_281 = arith.constant 22 : index
      %c0_282 = arith.constant 0 : index
      %c0_283 = arith.constant 0 : index
      %524 = vector.load %arg5[%c22_281, %c0_282, %c0_283] : memref<49x8x128xf32, #tpu.memory_space<vmem>>, vector<1x8x128xf32>
      %525 = vector.shape_cast %524 : vector<1x8x128xf32> to vector<8x128xf32>
      %526 = arith.mulf %523, %525 : vector<8x128xf32>
      %527 = arith.addf %521, %526 : vector<8x128xf32>
      %c9_i32_284 = arith.constant 9 : i32
      %528 = tpu.dynamic_rotate %514 by %c9_i32_284 dim 0 : vector<16x128xf32>, i32 -> vector<16x128xf32>
      %529 = vector.extract_strided_slice %528 {offsets = [0, 0], sizes = [8, 128], strides = [1, 1]} : vector<16x128xf32> to vector<8x128xf32>
      %c23_285 = arith.constant 23 : index
      %c0_286 = arith.constant 0 : index
      %c0_287 = arith.constant 0 : index
      %530 = vector.load %arg5[%c23_285, %c0_286, %c0_287] : memref<49x8x128xf32, #tpu.memory_space<vmem>>, vector<1x8x128xf32>
      %531 = vector.shape_cast %530 : vector<1x8x128xf32> to vector<8x128xf32>
      %532 = arith.mulf %529, %531 : vector<8x128xf32>
      %533 = arith.addf %527, %532 : vector<8x128xf32>
      %534 = vector.extract_strided_slice %513 {offsets = [8, 0], sizes = [8, 128], strides = [1, 1]} : vector<24x128xf32> to vector<8x128xf32>
      %c24_288 = arith.constant 24 : index
      %c0_289 = arith.constant 0 : index
      %c0_290 = arith.constant 0 : index
      %535 = vector.load %arg5[%c24_288, %c0_289, %c0_290] : memref<49x8x128xf32, #tpu.memory_space<vmem>>, vector<1x8x128xf32>
      %536 = vector.shape_cast %535 : vector<1x8x128xf32> to vector<8x128xf32>
      %537 = arith.mulf %534, %536 : vector<8x128xf32>
      %538 = arith.addf %533, %537 : vector<8x128xf32>
      %c15_i32_291 = arith.constant 15 : i32
      %539 = tpu.dynamic_rotate %515 by %c15_i32_291 dim 0 : vector<16x128xf32>, i32 -> vector<16x128xf32>
      %540 = vector.extract_strided_slice %539 {offsets = [0, 0], sizes = [8, 128], strides = [1, 1]} : vector<16x128xf32> to vector<8x128xf32>
      %c25_292 = arith.constant 25 : index
      %c0_293 = arith.constant 0 : index
      %c0_294 = arith.constant 0 : index
      %541 = vector.load %arg5[%c25_292, %c0_293, %c0_294] : memref<49x8x128xf32, #tpu.memory_space<vmem>>, vector<1x8x128xf32>
      %542 = vector.shape_cast %541 : vector<1x8x128xf32> to vector<8x128xf32>
      %543 = arith.mulf %540, %542 : vector<8x128xf32>
      %544 = arith.addf %538, %543 : vector<8x128xf32>
      %c14_i32_295 = arith.constant 14 : i32
      %545 = tpu.dynamic_rotate %515 by %c14_i32_295 dim 0 : vector<16x128xf32>, i32 -> vector<16x128xf32>
      %546 = vector.extract_strided_slice %545 {offsets = [0, 0], sizes = [8, 128], strides = [1, 1]} : vector<16x128xf32> to vector<8x128xf32>
      %c26_296 = arith.constant 26 : index
      %c0_297 = arith.constant 0 : index
      %c0_298 = arith.constant 0 : index
      %547 = vector.load %arg5[%c26_296, %c0_297, %c0_298] : memref<49x8x128xf32, #tpu.memory_space<vmem>>, vector<1x8x128xf32>
      %548 = vector.shape_cast %547 : vector<1x8x128xf32> to vector<8x128xf32>
      %549 = arith.mulf %546, %548 : vector<8x128xf32>
      %550 = arith.addf %544, %549 : vector<8x128xf32>
      %c13_i32_299 = arith.constant 13 : i32
      %551 = tpu.dynamic_rotate %515 by %c13_i32_299 dim 0 : vector<16x128xf32>, i32 -> vector<16x128xf32>
      %552 = vector.extract_strided_slice %551 {offsets = [0, 0], sizes = [8, 128], strides = [1, 1]} : vector<16x128xf32> to vector<8x128xf32>
      %c27_300 = arith.constant 27 : index
      %c0_301 = arith.constant 0 : index
      %c0_302 = arith.constant 0 : index
      %553 = vector.load %arg5[%c27_300, %c0_301, %c0_302] : memref<49x8x128xf32, #tpu.memory_space<vmem>>, vector<1x8x128xf32>
      %554 = vector.shape_cast %553 : vector<1x8x128xf32> to vector<8x128xf32>
      %555 = arith.mulf %552, %554 : vector<8x128xf32>
      %556 = arith.addf %550, %555 : vector<8x128xf32>
      %c4_i32_303 = arith.constant 4 : i32
      %557 = arith.addi %arg12, %c4_i32_303 : i32
      %558 = arith.index_cast %557 : i32 to index
      %c8_304 = arith.constant 8 : index
      %c0_305 = arith.constant 0 : index
      %559 = vector.load %arg10[%558, %c8_304, %c0_305] : memref<22x32x128xf32, #tpu.memory_space<vmem>>, vector<1x24x128xf32>
      %560 = vector.shape_cast %559 : vector<1x24x128xf32> to vector<24x128xf32>
      %561 = vector.extract_strided_slice %560 {offsets = [0, 0], sizes = [16, 128], strides = [1, 1]} : vector<24x128xf32> to vector<16x128xf32>
      %562 = vector.extract_strided_slice %560 {offsets = [8, 0], sizes = [16, 128], strides = [1, 1]} : vector<24x128xf32> to vector<16x128xf32>
      %c11_i32_306 = arith.constant 11 : i32
      %563 = tpu.dynamic_rotate %561 by %c11_i32_306 dim 0 : vector<16x128xf32>, i32 -> vector<16x128xf32>
      %564 = vector.extract_strided_slice %563 {offsets = [0, 0], sizes = [8, 128], strides = [1, 1]} : vector<16x128xf32> to vector<8x128xf32>
      %c28_307 = arith.constant 28 : index
      %c0_308 = arith.constant 0 : index
      %c0_309 = arith.constant 0 : index
      %565 = vector.load %arg5[%c28_307, %c0_308, %c0_309] : memref<49x8x128xf32, #tpu.memory_space<vmem>>, vector<1x8x128xf32>
      %566 = vector.shape_cast %565 : vector<1x8x128xf32> to vector<8x128xf32>
      %567 = arith.mulf %564, %566 : vector<8x128xf32>
      %568 = arith.addf %556, %567 : vector<8x128xf32>
      %c10_i32_310 = arith.constant 10 : i32
      %569 = tpu.dynamic_rotate %561 by %c10_i32_310 dim 0 : vector<16x128xf32>, i32 -> vector<16x128xf32>
      %570 = vector.extract_strided_slice %569 {offsets = [0, 0], sizes = [8, 128], strides = [1, 1]} : vector<16x128xf32> to vector<8x128xf32>
      %c29_311 = arith.constant 29 : index
      %c0_312 = arith.constant 0 : index
      %c0_313 = arith.constant 0 : index
      %571 = vector.load %arg5[%c29_311, %c0_312, %c0_313] : memref<49x8x128xf32, #tpu.memory_space<vmem>>, vector<1x8x128xf32>
      %572 = vector.shape_cast %571 : vector<1x8x128xf32> to vector<8x128xf32>
      %573 = arith.mulf %570, %572 : vector<8x128xf32>
      %574 = arith.addf %568, %573 : vector<8x128xf32>
      %c9_i32_314 = arith.constant 9 : i32
      %575 = tpu.dynamic_rotate %561 by %c9_i32_314 dim 0 : vector<16x128xf32>, i32 -> vector<16x128xf32>
      %576 = vector.extract_strided_slice %575 {offsets = [0, 0], sizes = [8, 128], strides = [1, 1]} : vector<16x128xf32> to vector<8x128xf32>
      %c30_315 = arith.constant 30 : index
      %c0_316 = arith.constant 0 : index
      %c0_317 = arith.constant 0 : index
      %577 = vector.load %arg5[%c30_315, %c0_316, %c0_317] : memref<49x8x128xf32, #tpu.memory_space<vmem>>, vector<1x8x128xf32>
      %578 = vector.shape_cast %577 : vector<1x8x128xf32> to vector<8x128xf32>
      %579 = arith.mulf %576, %578 : vector<8x128xf32>
      %580 = arith.addf %574, %579 : vector<8x128xf32>
      %581 = vector.extract_strided_slice %560 {offsets = [8, 0], sizes = [8, 128], strides = [1, 1]} : vector<24x128xf32> to vector<8x128xf32>
      %c31_318 = arith.constant 31 : index
      %c0_319 = arith.constant 0 : index
      %c0_320 = arith.constant 0 : index
      %582 = vector.load %arg5[%c31_318, %c0_319, %c0_320] : memref<49x8x128xf32, #tpu.memory_space<vmem>>, vector<1x8x128xf32>
      %583 = vector.shape_cast %582 : vector<1x8x128xf32> to vector<8x128xf32>
      %584 = arith.mulf %581, %583 : vector<8x128xf32>
      %585 = arith.addf %580, %584 : vector<8x128xf32>
      %c15_i32_321 = arith.constant 15 : i32
      %586 = tpu.dynamic_rotate %562 by %c15_i32_321 dim 0 : vector<16x128xf32>, i32 -> vector<16x128xf32>
      %587 = vector.extract_strided_slice %586 {offsets = [0, 0], sizes = [8, 128], strides = [1, 1]} : vector<16x128xf32> to vector<8x128xf32>
      %c32_322 = arith.constant 32 : index
      %c0_323 = arith.constant 0 : index
      %c0_324 = arith.constant 0 : index
      %588 = vector.load %arg5[%c32_322, %c0_323, %c0_324] : memref<49x8x128xf32, #tpu.memory_space<vmem>>, vector<1x8x128xf32>
      %589 = vector.shape_cast %588 : vector<1x8x128xf32> to vector<8x128xf32>
      %590 = arith.mulf %587, %589 : vector<8x128xf32>
      %591 = arith.addf %585, %590 : vector<8x128xf32>
      %c14_i32_325 = arith.constant 14 : i32
      %592 = tpu.dynamic_rotate %562 by %c14_i32_325 dim 0 : vector<16x128xf32>, i32 -> vector<16x128xf32>
      %593 = vector.extract_strided_slice %592 {offsets = [0, 0], sizes = [8, 128], strides = [1, 1]} : vector<16x128xf32> to vector<8x128xf32>
      %c33_326 = arith.constant 33 : index
      %c0_327 = arith.constant 0 : index
      %c0_328 = arith.constant 0 : index
      %594 = vector.load %arg5[%c33_326, %c0_327, %c0_328] : memref<49x8x128xf32, #tpu.memory_space<vmem>>, vector<1x8x128xf32>
      %595 = vector.shape_cast %594 : vector<1x8x128xf32> to vector<8x128xf32>
      %596 = arith.mulf %593, %595 : vector<8x128xf32>
      %597 = arith.addf %591, %596 : vector<8x128xf32>
      %c13_i32_329 = arith.constant 13 : i32
      %598 = tpu.dynamic_rotate %562 by %c13_i32_329 dim 0 : vector<16x128xf32>, i32 -> vector<16x128xf32>
      %599 = vector.extract_strided_slice %598 {offsets = [0, 0], sizes = [8, 128], strides = [1, 1]} : vector<16x128xf32> to vector<8x128xf32>
      %c34_330 = arith.constant 34 : index
      %c0_331 = arith.constant 0 : index
      %c0_332 = arith.constant 0 : index
      %600 = vector.load %arg5[%c34_330, %c0_331, %c0_332] : memref<49x8x128xf32, #tpu.memory_space<vmem>>, vector<1x8x128xf32>
      %601 = vector.shape_cast %600 : vector<1x8x128xf32> to vector<8x128xf32>
      %602 = arith.mulf %599, %601 : vector<8x128xf32>
      %603 = arith.addf %597, %602 : vector<8x128xf32>
      %c5_i32_333 = arith.constant 5 : i32
      %604 = arith.addi %arg12, %c5_i32_333 : i32
      %605 = arith.index_cast %604 : i32 to index
      %c8_334 = arith.constant 8 : index
      %c0_335 = arith.constant 0 : index
      %606 = vector.load %arg10[%605, %c8_334, %c0_335] : memref<22x32x128xf32, #tpu.memory_space<vmem>>, vector<1x24x128xf32>
      %607 = vector.shape_cast %606 : vector<1x24x128xf32> to vector<24x128xf32>
      %608 = vector.extract_strided_slice %607 {offsets = [0, 0], sizes = [16, 128], strides = [1, 1]} : vector<24x128xf32> to vector<16x128xf32>
      %609 = vector.extract_strided_slice %607 {offsets = [8, 0], sizes = [16, 128], strides = [1, 1]} : vector<24x128xf32> to vector<16x128xf32>
      %c11_i32_336 = arith.constant 11 : i32
      %610 = tpu.dynamic_rotate %608 by %c11_i32_336 dim 0 : vector<16x128xf32>, i32 -> vector<16x128xf32>
      %611 = vector.extract_strided_slice %610 {offsets = [0, 0], sizes = [8, 128], strides = [1, 1]} : vector<16x128xf32> to vector<8x128xf32>
      %c35_337 = arith.constant 35 : index
      %c0_338 = arith.constant 0 : index
      %c0_339 = arith.constant 0 : index
      %612 = vector.load %arg5[%c35_337, %c0_338, %c0_339] : memref<49x8x128xf32, #tpu.memory_space<vmem>>, vector<1x8x128xf32>
      %613 = vector.shape_cast %612 : vector<1x8x128xf32> to vector<8x128xf32>
      %614 = arith.mulf %611, %613 : vector<8x128xf32>
      %615 = arith.addf %603, %614 : vector<8x128xf32>
      %c10_i32_340 = arith.constant 10 : i32
      %616 = tpu.dynamic_rotate %608 by %c10_i32_340 dim 0 : vector<16x128xf32>, i32 -> vector<16x128xf32>
      %617 = vector.extract_strided_slice %616 {offsets = [0, 0], sizes = [8, 128], strides = [1, 1]} : vector<16x128xf32> to vector<8x128xf32>
      %c36_341 = arith.constant 36 : index
      %c0_342 = arith.constant 0 : index
      %c0_343 = arith.constant 0 : index
      %618 = vector.load %arg5[%c36_341, %c0_342, %c0_343] : memref<49x8x128xf32, #tpu.memory_space<vmem>>, vector<1x8x128xf32>
      %619 = vector.shape_cast %618 : vector<1x8x128xf32> to vector<8x128xf32>
      %620 = arith.mulf %617, %619 : vector<8x128xf32>
      %621 = arith.addf %615, %620 : vector<8x128xf32>
      %c9_i32_344 = arith.constant 9 : i32
      %622 = tpu.dynamic_rotate %608 by %c9_i32_344 dim 0 : vector<16x128xf32>, i32 -> vector<16x128xf32>
      %623 = vector.extract_strided_slice %622 {offsets = [0, 0], sizes = [8, 128], strides = [1, 1]} : vector<16x128xf32> to vector<8x128xf32>
      %c37_345 = arith.constant 37 : index
      %c0_346 = arith.constant 0 : index
      %c0_347 = arith.constant 0 : index
      %624 = vector.load %arg5[%c37_345, %c0_346, %c0_347] : memref<49x8x128xf32, #tpu.memory_space<vmem>>, vector<1x8x128xf32>
      %625 = vector.shape_cast %624 : vector<1x8x128xf32> to vector<8x128xf32>
      %626 = arith.mulf %623, %625 : vector<8x128xf32>
      %627 = arith.addf %621, %626 : vector<8x128xf32>
      %628 = vector.extract_strided_slice %607 {offsets = [8, 0], sizes = [8, 128], strides = [1, 1]} : vector<24x128xf32> to vector<8x128xf32>
      %c38_348 = arith.constant 38 : index
      %c0_349 = arith.constant 0 : index
      %c0_350 = arith.constant 0 : index
      %629 = vector.load %arg5[%c38_348, %c0_349, %c0_350] : memref<49x8x128xf32, #tpu.memory_space<vmem>>, vector<1x8x128xf32>
      %630 = vector.shape_cast %629 : vector<1x8x128xf32> to vector<8x128xf32>
      %631 = arith.mulf %628, %630 : vector<8x128xf32>
      %632 = arith.addf %627, %631 : vector<8x128xf32>
      %c15_i32_351 = arith.constant 15 : i32
      %633 = tpu.dynamic_rotate %609 by %c15_i32_351 dim 0 : vector<16x128xf32>, i32 -> vector<16x128xf32>
      %634 = vector.extract_strided_slice %633 {offsets = [0, 0], sizes = [8, 128], strides = [1, 1]} : vector<16x128xf32> to vector<8x128xf32>
      %c39_352 = arith.constant 39 : index
      %c0_353 = arith.constant 0 : index
      %c0_354 = arith.constant 0 : index
      %635 = vector.load %arg5[%c39_352, %c0_353, %c0_354] : memref<49x8x128xf32, #tpu.memory_space<vmem>>, vector<1x8x128xf32>
      %636 = vector.shape_cast %635 : vector<1x8x128xf32> to vector<8x128xf32>
      %637 = arith.mulf %634, %636 : vector<8x128xf32>
      %638 = arith.addf %632, %637 : vector<8x128xf32>
      %c14_i32_355 = arith.constant 14 : i32
      %639 = tpu.dynamic_rotate %609 by %c14_i32_355 dim 0 : vector<16x128xf32>, i32 -> vector<16x128xf32>
      %640 = vector.extract_strided_slice %639 {offsets = [0, 0], sizes = [8, 128], strides = [1, 1]} : vector<16x128xf32> to vector<8x128xf32>
      %c40_356 = arith.constant 40 : index
      %c0_357 = arith.constant 0 : index
      %c0_358 = arith.constant 0 : index
      %641 = vector.load %arg5[%c40_356, %c0_357, %c0_358] : memref<49x8x128xf32, #tpu.memory_space<vmem>>, vector<1x8x128xf32>
      %642 = vector.shape_cast %641 : vector<1x8x128xf32> to vector<8x128xf32>
      %643 = arith.mulf %640, %642 : vector<8x128xf32>
      %644 = arith.addf %638, %643 : vector<8x128xf32>
      %c13_i32_359 = arith.constant 13 : i32
      %645 = tpu.dynamic_rotate %609 by %c13_i32_359 dim 0 : vector<16x128xf32>, i32 -> vector<16x128xf32>
      %646 = vector.extract_strided_slice %645 {offsets = [0, 0], sizes = [8, 128], strides = [1, 1]} : vector<16x128xf32> to vector<8x128xf32>
      %c41_360 = arith.constant 41 : index
      %c0_361 = arith.constant 0 : index
      %c0_362 = arith.constant 0 : index
      %647 = vector.load %arg5[%c41_360, %c0_361, %c0_362] : memref<49x8x128xf32, #tpu.memory_space<vmem>>, vector<1x8x128xf32>
      %648 = vector.shape_cast %647 : vector<1x8x128xf32> to vector<8x128xf32>
      %649 = arith.mulf %646, %648 : vector<8x128xf32>
      %650 = arith.addf %644, %649 : vector<8x128xf32>
      %c6_i32_363 = arith.constant 6 : i32
      %651 = arith.addi %arg12, %c6_i32_363 : i32
      %652 = arith.index_cast %651 : i32 to index
      %c8_364 = arith.constant 8 : index
      %c0_365 = arith.constant 0 : index
      %653 = vector.load %arg10[%652, %c8_364, %c0_365] : memref<22x32x128xf32, #tpu.memory_space<vmem>>, vector<1x24x128xf32>
      %654 = vector.shape_cast %653 : vector<1x24x128xf32> to vector<24x128xf32>
      %655 = vector.extract_strided_slice %654 {offsets = [0, 0], sizes = [16, 128], strides = [1, 1]} : vector<24x128xf32> to vector<16x128xf32>
      %656 = vector.extract_strided_slice %654 {offsets = [8, 0], sizes = [16, 128], strides = [1, 1]} : vector<24x128xf32> to vector<16x128xf32>
      %c11_i32_366 = arith.constant 11 : i32
      %657 = tpu.dynamic_rotate %655 by %c11_i32_366 dim 0 : vector<16x128xf32>, i32 -> vector<16x128xf32>
      %658 = vector.extract_strided_slice %657 {offsets = [0, 0], sizes = [8, 128], strides = [1, 1]} : vector<16x128xf32> to vector<8x128xf32>
      %c42_367 = arith.constant 42 : index
      %c0_368 = arith.constant 0 : index
      %c0_369 = arith.constant 0 : index
      %659 = vector.load %arg5[%c42_367, %c0_368, %c0_369] : memref<49x8x128xf32, #tpu.memory_space<vmem>>, vector<1x8x128xf32>
      %660 = vector.shape_cast %659 : vector<1x8x128xf32> to vector<8x128xf32>
      %661 = arith.mulf %658, %660 : vector<8x128xf32>
      %662 = arith.addf %650, %661 : vector<8x128xf32>
      %c10_i32_370 = arith.constant 10 : i32
      %663 = tpu.dynamic_rotate %655 by %c10_i32_370 dim 0 : vector<16x128xf32>, i32 -> vector<16x128xf32>
      %664 = vector.extract_strided_slice %663 {offsets = [0, 0], sizes = [8, 128], strides = [1, 1]} : vector<16x128xf32> to vector<8x128xf32>
      %c43_371 = arith.constant 43 : index
      %c0_372 = arith.constant 0 : index
      %c0_373 = arith.constant 0 : index
      %665 = vector.load %arg5[%c43_371, %c0_372, %c0_373] : memref<49x8x128xf32, #tpu.memory_space<vmem>>, vector<1x8x128xf32>
      %666 = vector.shape_cast %665 : vector<1x8x128xf32> to vector<8x128xf32>
      %667 = arith.mulf %664, %666 : vector<8x128xf32>
      %668 = arith.addf %662, %667 : vector<8x128xf32>
      %c9_i32_374 = arith.constant 9 : i32
      %669 = tpu.dynamic_rotate %655 by %c9_i32_374 dim 0 : vector<16x128xf32>, i32 -> vector<16x128xf32>
      %670 = vector.extract_strided_slice %669 {offsets = [0, 0], sizes = [8, 128], strides = [1, 1]} : vector<16x128xf32> to vector<8x128xf32>
      %c44_375 = arith.constant 44 : index
      %c0_376 = arith.constant 0 : index
      %c0_377 = arith.constant 0 : index
      %671 = vector.load %arg5[%c44_375, %c0_376, %c0_377] : memref<49x8x128xf32, #tpu.memory_space<vmem>>, vector<1x8x128xf32>
      %672 = vector.shape_cast %671 : vector<1x8x128xf32> to vector<8x128xf32>
      %673 = arith.mulf %670, %672 : vector<8x128xf32>
      %674 = arith.addf %668, %673 : vector<8x128xf32>
      %675 = vector.extract_strided_slice %654 {offsets = [8, 0], sizes = [8, 128], strides = [1, 1]} : vector<24x128xf32> to vector<8x128xf32>
      %c45_378 = arith.constant 45 : index
      %c0_379 = arith.constant 0 : index
      %c0_380 = arith.constant 0 : index
      %676 = vector.load %arg5[%c45_378, %c0_379, %c0_380] : memref<49x8x128xf32, #tpu.memory_space<vmem>>, vector<1x8x128xf32>
      %677 = vector.shape_cast %676 : vector<1x8x128xf32> to vector<8x128xf32>
      %678 = arith.mulf %675, %677 : vector<8x128xf32>
      %679 = arith.addf %674, %678 : vector<8x128xf32>
      %c15_i32_381 = arith.constant 15 : i32
      %680 = tpu.dynamic_rotate %656 by %c15_i32_381 dim 0 : vector<16x128xf32>, i32 -> vector<16x128xf32>
      %681 = vector.extract_strided_slice %680 {offsets = [0, 0], sizes = [8, 128], strides = [1, 1]} : vector<16x128xf32> to vector<8x128xf32>
      %c46_382 = arith.constant 46 : index
      %c0_383 = arith.constant 0 : index
      %c0_384 = arith.constant 0 : index
      %682 = vector.load %arg5[%c46_382, %c0_383, %c0_384] : memref<49x8x128xf32, #tpu.memory_space<vmem>>, vector<1x8x128xf32>
      %683 = vector.shape_cast %682 : vector<1x8x128xf32> to vector<8x128xf32>
      %684 = arith.mulf %681, %683 : vector<8x128xf32>
      %685 = arith.addf %679, %684 : vector<8x128xf32>
      %c14_i32_385 = arith.constant 14 : i32
      %686 = tpu.dynamic_rotate %656 by %c14_i32_385 dim 0 : vector<16x128xf32>, i32 -> vector<16x128xf32>
      %687 = vector.extract_strided_slice %686 {offsets = [0, 0], sizes = [8, 128], strides = [1, 1]} : vector<16x128xf32> to vector<8x128xf32>
      %c47_386 = arith.constant 47 : index
      %c0_387 = arith.constant 0 : index
      %c0_388 = arith.constant 0 : index
      %688 = vector.load %arg5[%c47_386, %c0_387, %c0_388] : memref<49x8x128xf32, #tpu.memory_space<vmem>>, vector<1x8x128xf32>
      %689 = vector.shape_cast %688 : vector<1x8x128xf32> to vector<8x128xf32>
      %690 = arith.mulf %687, %689 : vector<8x128xf32>
      %691 = arith.addf %685, %690 : vector<8x128xf32>
      %c13_i32_389 = arith.constant 13 : i32
      %692 = tpu.dynamic_rotate %656 by %c13_i32_389 dim 0 : vector<16x128xf32>, i32 -> vector<16x128xf32>
      %693 = vector.extract_strided_slice %692 {offsets = [0, 0], sizes = [8, 128], strides = [1, 1]} : vector<16x128xf32> to vector<8x128xf32>
      %c48_390 = arith.constant 48 : index
      %c0_391 = arith.constant 0 : index
      %c0_392 = arith.constant 0 : index
      %694 = vector.load %arg5[%c48_390, %c0_391, %c0_392] : memref<49x8x128xf32, #tpu.memory_space<vmem>>, vector<1x8x128xf32>
      %695 = vector.shape_cast %694 : vector<1x8x128xf32> to vector<8x128xf32>
      %696 = arith.mulf %693, %695 : vector<8x128xf32>
      %697 = arith.addf %691, %696 : vector<8x128xf32>
      %698 = arith.index_cast %arg12 : i32 to index
      %c8_393 = arith.constant 8 : index
      %c0_394 = arith.constant 0 : index
      %699 = vector.load %arg11[%698, %c8_393, %c0_394] : memref<16x16x128xf32, #tpu.memory_space<vmem>>, vector<1x8x128xf32>
      %700 = vector.shape_cast %699 : vector<1x8x128xf32> to vector<8x128xf32>
      %701 = vector.shape_cast %697 : vector<8x128xf32> to vector<1x8x128xf32>
      tpu.vector_store %arg11[%698, %c8_393, %c0_394], %701 {strides = array<i32>} : memref<16x16x128xf32, #tpu.memory_space<vmem>>, vector<1x8x128xf32>,
    }
    %c16_i32_15 = arith.constant 16 : i32
    %c0_16 = arith.constant 0 : index
    %c0_17 = arith.constant 0 : index
    %c0_18 = arith.constant 0 : index
    %26 = vector.load %arg11[%c0_16, %c0_17, %c0_18] : memref<16x16x128xf32, #tpu.memory_space<vmem>>, vector<16x16x128xf32>
    %27 = vector.shape_cast %26 : vector<16x16x128xf32> to vector<256x128xf32>
    %c0_19 = arith.constant 0 : index
    %c0_20 = arith.constant 0 : index
    %28 = vector.load %arg6[%c0_19, %c0_20] : memref<128x128xf32, #tpu.memory_space<vmem>>, vector<128x128xf32>
    %cst_21 = arith.constant dense<0.000000e+00> : vector<256x128xf32>
    %29 = tpu.matmul %27, %28, %cst_21 {dimension_numbers = #tpu.dot_dimension_numbers<[1], [0], [0], [1], [0, 0, 1, 1], [], []>} : vector<256x128xf32>, vector<128x128xf32>, vector<256x128xf32> -> vector<256x128xf32>
    %30 = vector.shape_cast %29 : vector<256x128xf32> to vector<16x16x128xf32>
    %c0_22 = arith.constant 0 : index
    %c0_23 = arith.constant 0 : index
    %c0_24 = arith.constant 0 : index
    %c0_25 = arith.constant 0 : index
    %31 = vector.load %arg9[%c0_22, %c0_23, %c0_24, %c0_25] : memref<1x16x16x128xf32, #tpu.memory_space<vmem>>, vector<1x16x16x128xf32>
    %32 = vector.shape_cast %31 : vector<1x16x16x128xf32> to vector<16x16x128xf32>
    %33 = vector.shape_cast %30 : vector<16x16x128xf32> to vector<1x16x16x128xf32>
    tpu.vector_store %arg9[%c0_22, %c0_23, %c0_24, %c0_25], %33 {strides = array<i32>} : memref<1x16x16x128xf32, #tpu.memory_space<vmem>>, vector<1x16x16x128xf32>,
    return
  }
  func.func @transform_0(%arg0: i32, %arg1: i32) -> (i32, i32, i32, i32) {
    %c0_i32 = arith.constant 0 : i32
    %c0_i32_0 = arith.constant 0 : i32
    %c0_i32_1 = arith.constant 0 : i32
    return %arg0, %arg1, %c0_i32, %c0_i32_0 : i32, i32, i32, i32
  }
  func.func @transform_1(%arg0: i32, %arg1: i32) -> (i32, i32, i32, i32) {
    %c0_i32 = arith.constant 0 : i32
    %c0_i32_0 = arith.constant 0 : i32
    %c0_i32_1 = arith.constant 0 : i32
    %c0_i32_2 = arith.constant 0 : i32
    return %arg0, %c0_i32, %c0_i32_0, %c0_i32_1 : i32, i32, i32, i32
  }
  func.func @transform_2(%arg0: i32, %arg1: i32) -> (i32, i32) {
    %c0_i32 = arith.constant 0 : i32
    %c0_i32_0 = arith.constant 0 : i32
    %c0_i32_1 = arith.constant 0 : i32
    return %c0_i32, %c0_i32_0 : i32, i32
  }
  func.func @transform_3(%arg0: i32, %arg1: i32) -> (i32, i32, i32) {
    %c0_i32 = arith.constant 0 : i32
    %c0_i32_0 = arith.constant 0 : i32
    %c0_i32_1 = arith.constant 0 : i32
    %c0_i32_2 = arith.constant 0 : i32
    return %c0_i32, %c0_i32_0, %c0_i32_1 : i32, i32, i32
  }
  func.func @transform_4(%arg0: i32, %arg1: i32) -> (i32, i32) {
    %c0_i32 = arith.constant 0 : i32
    %c0_i32_0 = arith.constant 0 : i32
    %c0_i32_1 = arith.constant 0 : i32
    return %c0_i32, %c0_i32_0 : i32, i32
  }
  func.func @transform_5(%arg0: i32, %arg1: i32) -> i32 {
    %c0_i32 = arith.constant 0 : i32
    %c0_i32_0 = arith.constant 0 : i32
    return %c0_i32 : i32
  }
  func.func @transform_6(%arg0: i32, %arg1: i32) -> i32 {
    %c0_i32 = arith.constant 0 : i32
    %c0_i32_0 = arith.constant 0 : i32
    return %c0_i32 : i32
  }
  func.func @transform_7(%arg0: i32, %arg1: i32) -> (i32, i32, i32, i32) {
    %c0_i32 = arith.constant 0 : i32
    %c0_i32_0 = arith.constant 0 : i32
    %c0_i32_1 = arith.constant 0 : i32
    return %arg0, %arg1, %c0_i32, %c0_i32_0 : i32, i32, i32, i32
  }
}

</mosaic_0001>

<bundles_post_ra>
// kernel: tpu_custom_call.1
= control target key start
LH: loop header
LB: loop body
LE: loop exit
PB: predicated region body
PF: predicated region fallthrough
CT: control target
= control target key end

     0   :  { %s4409_s0 = inlined_call_operand.hbm [shape: f32[2,16,16,128], index: 0, kind: input, shape index: {}]   ;;  %s4410_s1 = inlined_call_operand.hbm [shape: f32[2,3,16,128], index: 1, kind: input, shape index: {}]   ;;  %s4411_s2 = inlined_call_operand.hbm [shape: f32[128,128], index: 2, kind: input, shape index: {}]   ;;  %s4412_s3 = inlined_call_operand.hbm [shape: f32[49,8,128], index: 3, kind: input, shape index: {}]   ;;  %s4413_s4 = inlined_call_operand.hbm [shape: f32[128,128], index: 4, kind: input, shape index: {}]   ;;  %s4414_s5 = inlined_call_operand.<no memory space> [shape: f32[1], index: 5, kind: input, shape index: {}]   ;;  %s4415_s6 = inlined_call_operand.<no memory space> [shape: f32[1], index: 6, kind: input, shape index: {}]   ;;  %s4416_s7 = inlined_call_operand.hbm [shape: f32[2,16,16,128], index: 7, kind: output, shape index: {}]  }
   0x1   :  { %4459 = sst [smem:[#allocation25_spill]] %s4409_s0 }
   0x2   :  { %4460 = sst [smem:[#allocation26_spill]] %s4411_s2 }
   0x3   :  { %4461 = sst [smem:[#allocation27_spill]] %s4412_s3 }
   0x4   :  { %4462 = sst [smem:[#allocation28_spill]] %s4413_s4 }
   0x5   :  { %12 = sst [smem:[#allocation4]] %s4414_s5 }
   0x6   :  { %13 = sst [smem:[#allocation5]] %s4415_s6 }
   0x7   :  { %14 = vsyncpa [#allocation7], 0 }
   0x8   :  { %16 = vsyncpa [#allocation7 + $0x1], 0 }
   0x9   :  { %17 = vsyncpa [#allocation10], 0 }
   0xa   :  { %19 = vsyncpa [#allocation10 + $0x1], 0 }
   0xb   :  { %20 = vsyncpa [#allocation13], 0 }
   0xc   :  { %21 = vsyncpa [#allocation8], 0 }
   0xd   :  { %23 = vsyncpa [#allocation8 + $0x1], 0  ;;  %s3207_s28 = smov 0   ;;  %s3209_s29 = smov 0  }
   0xe   :  { %s3211_s30 = smov 0   ;;  %s3213_s8 = smov 0  }
   0xf   :  { %s3215_s5 = smov 0   ;;  %s3217_s9 = smov 0  }
  0x10 LB: > { %s3238_s6 = sadd.s32 4294967295, %s3144_s9   ;;  %s2290_s10 = sadd.s32 4294967294, %s3144_s9   ;;  %s3144_s9 = sphi %s3217_s9, %s29_s9   ;;  %s3140_s5 = sphi %s3215_s5, %s4537_s5   ;;  %s3136_s8 = sphi %s3213_s8, %s4536_s8   ;;  %s3132_s30 = sphi %s3211_s30, %s4535_s30   ;;  %s3128_s29 = sphi %s3209_s29, %s4534_s29   ;;  %s3124_s28 = sphi %s3207_s28, %s4533_s28  }
  0x11   : > { %p63_p0 = scmp.ne.s32.totalorder %s3128_s29, %s3124_s28  ;;  %p4417_p1 = scmp.eq.s32.totalorder %s3238_s6, 0 }
  0x12   : > { %p226_p3 = scmp.eq.s32.totalorder %s2290_s10, 1  ;;  %p2291_p5 = scmp.ge.s32.totalorder %s3144_s9, 1 }
  0x13   : > { %p3247_p4 = por %p4417_p1, %p63_p0  ;;  %p233_p7 = scmp.lt.s32.totalorder %s3144_s9, 3 }
  0x14   : > { %p3252_p6 = por %p226_p3, %p63_p0  ;;  %s3150_s14 = smov [#allocation11]  }
  0x15   : > { %s4463_s11 = scalar_select %p3247_p4, 1, 0 }
  0x16   : > { %s4464_s12 = scalar_select %p3252_p6, 1, 0 }
  0x17   : > { %p3257_p8 = pnand %p2291_p5, %p233_p7  ;;  %s245_s15 = sshll.u32 %s3150_s14, 4  ;;  %s3261_s15 = int_to_ptr.vmem [resolvable:$true] %s245_s15 }
  0x18   : > { %4465 = sst [smem:[#allocation21_spill]] %s4464_s12  ;;  %s3151_s17 = smov [#allocation12]  }
  0x19   : > { %s4466_s13 = scalar_select %p3257_p8, 1, 0 }
  0x1a   : > { %p2809_p9 = pneg %p3257_p8  ;;  %s258_s18 = sshll.u32 %s3151_s17, 4  ;;  %s3272_s18 = int_to_ptr.vmem [resolvable:$true] %s258_s18 }
  0x1b   : > { %s3152_s19 = smov [#allocation14]   ;;  %s4468_s2 = sld [smem:[#allocation26_spill]] }
  0x1c   : > { %p3268_p11 = pnand %p2809_p9, %p4417_p1  ;;  %s3274_s20 = sshll.u32 %s3152_s19, 4  ;;  %s272_s20 = int_to_ptr.vmem [resolvable:$true] %s3274_s20 }
  0x1e   : > { %p3284_p13 = pneg %p3268_p11 }
  0x21   : > { %s2902_s23 = scalar_lea.hbm %s4468_s2, 2048 }
  0x22   : > { %p2903_p12 = scmp.ne.s32.totalorder %s4468_s2, %s2902_s23  ;;  %p2909_p5 = scmp.lt.u32.totalorder %s2902_s23, %s4468_s2 }
  0x24   : > { %p2905_p0 = pnand %p3284_p13, %p2903_p12 }
  0x26   : > { %p2906_p3 = pneg %p2905_p0 }
  0x28   : > { %p2911_p7 = pnand %p2909_p5, %p2906_p3 }
  0x2a   : > { %2914 = shalt.err (!%p2911_p7)
}
  0x2b   : > { %s2915_s14 = scalar_lea.vmem %s3261_s15, 2048  ;;  %p2923_p2 = scmp.lt.s32.totalorder %s3261_s15, %s3261_s15 }
  0x2c   : > { %p2916_p9 = scmp.ne.s32.totalorder %s3261_s15, %s2915_s14  ;;  %p2924_p6 = scmp.lt.s32.totalorder %s2915_s14, %s2915_s14 }
  0x2e   : > { %p2918_p10 = pnand %p2916_p9, %p3284_p13  ;;  %p2925_p12 = por %p2924_p6, %p2923_p2 }
  0x30   : > { %p2919_p1 = pneg %p2918_p10 }
  0x32   : > { %p2926_p0 = pnand %p2925_p12, %p2919_p1 }
  0x34   : > { %2929 = shalt.err (!%p2926_p0)
}
  0x35   : > { %s4421_s17 = smov 128   ;;  %s4423_s19 = smov 8  }
  0x36   : > { %2812 = dma.hbm_to_vmem [thread:$0]  (!%p3268_p11), %s4468_s2, 2048, %s3261_s15, [#allocation10], %s4421_s17, %s4421_s17, %s4423_s19  }
  0x37   : > { %s4470_s3 = sld [smem:[#allocation27_spill]] }
  0x3d   : > { %s2930_s25 = scalar_lea.hbm %s4470_s3, 6272 }
  0x3e   : > { %p2931_p1 = scmp.ne.s32.totalorder %s4470_s3, %s2930_s25  ;;  %p2937_p10 = scmp.lt.u32.totalorder %s2930_s25, %s4470_s3 }
  0x40   : > { %p2933_p2 = pnand %p2931_p1, %p3284_p13 }
  0x42   : > { %p2934_p6 = pneg %p2933_p2 }
  0x44   : > { %p2939_p3 = pnand %p2937_p10, %p2934_p6 }
  0x46   : > { %2942 = shalt.err (!%p2939_p3)
}
  0x47   : > { %s2943_s15 = scalar_lea.vmem %s3272_s18, 6272  ;;  %p2951_p12 = scmp.lt.s32.totalorder %s3272_s18, %s3272_s18 }
  0x48   : > { %p2944_p5 = scmp.ne.s32.totalorder %s3272_s18, %s2943_s15  ;;  %p2952_p0 = scmp.lt.s32.totalorder %s2943_s15, %s2943_s15 }
  0x4a   : > { %p2946_p7 = pnand %p2944_p5, %p3284_p13  ;;  %p2953_p1 = por %p2952_p0, %p2951_p12 }
  0x4c   : > { %p2947_p9 = pneg %p2946_p7 }
  0x4e   : > { %p2954_p2 = pnand %p2953_p1, %p2947_p9 }
  0x50   : > { %2957 = shalt.err (!%p2954_p2)
}
  0x51   : > { %2815 = dma.hbm_to_vmem [thread:$0]  (!%p3268_p11), %s4470_s3, 6272, %s3272_s18, [#allocation13], %s4421_s17, %s4421_s17, %s4423_s19  }
  0x52   : > { %s4471_s4 = sld [smem:[#allocation28_spill]] }
  0x58   : > { %s2958_s24 = scalar_lea.hbm %s4471_s4, 2048 }
  0x59   : > { %p2959_p6 = scmp.ne.s32.totalorder %s4471_s4, %s2958_s24  ;;  %p2965_p5 = scmp.lt.u32.totalorder %s2958_s24, %s4471_s4 }
  0x5b   : > { %p2961_p10 = pnand %p2959_p6, %p3284_p13 }
  0x5d   : > { %p2962_p3 = pneg %p2961_p10 }
  0x5f   : > { %p2967_p7 = pnand %p2965_p5, %p2962_p3 }
  0x61   : > { %2970 = shalt.err (!%p2967_p7)
}
  0x62   : > { %s2971_s15 = scalar_lea.vmem %s272_s20, 2048  ;;  %p2979_p1 = scmp.lt.s32.totalorder %s272_s20, %s272_s20 }
  0x63   : > { %p2972_p9 = scmp.ne.s32.totalorder %s272_s20, %s2971_s15  ;;  %p2980_p2 = scmp.lt.s32.totalorder %s2971_s15, %s2971_s15 }
  0x65   : > { %p2974_p12 = pnand %p2972_p9, %p3284_p13  ;;  %p2981_p4 = por %p2980_p2, %p2979_p1 }
  0x67   : > { %p2975_p0 = pneg %p2974_p12 }
  0x69   : > { %p2982_p8 = pnand %p2981_p4, %p2975_p0 }
  0x6b   : > { %2985 = shalt.err (!%p2982_p8)
}
  0x6c   : > { %2818 = dma.hbm_to_vmem [thread:$0]  (!%p3268_p11), %s4471_s4, 2048, %s272_s20, [#allocation13], %s4421_s17, %s4421_s17, %s4423_s19  }
  0x6d   : > { %s50_s26 = sadd.s32 1, %s3132_s30  ;;  %s41_s16 = sadd.s32 1, %s3140_s5 }
  0x6e   : > { %p57_p4 = scmp.ne.s32.totalorder %s3132_s30, %s3128_s29  ;;  %p43_p8 = scmp.ge.s32.totalorder %s41_s16, 2 }
  0x6f   : > { %p58_p13 = scmp.eq.s32.totalorder %s3144_s9, 0  ;;  %p4472_p6 = scmp.eq.s32.totalorder %s3238_s6, 1 }
  0x70   : > { %p2833_p3 = scmp.lt.s32.totalorder %s3144_s9, 2  ;;  %s4539_s16 = smov (%p43_p8, %s41_s16), 0 }
  0x71   : > { %p3363_p10 = por %p4472_p6, %p57_p4  ;;  %p59_p5 = por %p58_p13, %p57_p4 }
  0x72   : > { %s3371_s22 = sand.u32 1, %s3132_s30   ;;  %s45_s20 = ssub.s32 %s3140_s5, %s4539_s16 }
  0x73   : > { %p48_p11 = scmp.eq.s32.totalorder %s45_s20, 0  ;;  %s2296_s23 = sshll.u32 %s3371_s22, 8 }
  0x74   : > { %s2355_s24 = sshll.u32 %s3140_s5, 12  ;;  %s4474_s0 = sld [smem:[#allocation25_spill]] }
  0x75   : > { %s3378_s25 = scalar_select %p48_p11, %s3132_s30, %s50_s26  }
  0x76   : > { %s295_s15 = scalar_lea.vmem [#allocation6], %s2296_s23  ;;  %p3389_p7 = pnand %p2833_p3, %p59_p5 }
  0x77   : > { %s305_s18 = sshll.u32 %s295_s15, 4  ;;  %s2788_s20 = smul.u32 48, %s3371_s22  ;;  %s3385_s18 = int_to_ptr.vmem [resolvable:$true] %s305_s18 }
  0x78   : > { %s292_s27 = scalar_lea.sflag [#allocation7], %s3371_s22  ;;  %p2988_p12 = pneg %p3389_p7 }
  0x7a   : > { %s3383_s14 = scalar_lea.hbm %s4474_s0, %s2355_s24  ;;  %s2991_s15 = scalar_lea.hbm %s4474_s0, 8192 }
  0x7b   : > { %s2986_s24 = scalar_lea.hbm %s3383_s14, 4096  ;;  %p2992_p2 = scmp.lt.u32.totalorder %s3383_s14, %s4474_s0 }
  0x7c   : > { %p2987_p9 = scmp.ne.s32.totalorder %s3383_s14, %s2986_s24  ;;  %p2993_p4 = scmp.lt.u32.totalorder %s2991_s15, %s2986_s24 }
  0x7d   : > { %p2995_p13 = scmp.lt.u32.totalorder %s2986_s24, %s3383_s14 }
  0x7e   : > { %p2989_p0 = pnand %p2988_p12, %p2987_p9  ;;  %p2994_p8 = por %p2993_p4, %p2992_p2 }
  0x80   : > { %p2990_p1 = pneg %p2989_p0  ;;  %p2996_p6 = por %p2995_p13, %p2994_p8 }
  0x82   : > { %p2997_p3 = pnand %p2996_p6, %p2990_p1 }
  0x84   : > { %3000 = shalt.err (!%p2997_p3)
}
  0x85   : > { %s3001_s26 = scalar_lea.vmem %s3385_s18, 4096  ;;  %s3155_s23 = smov [#allocation6]  }
  0x86   : > { %p3002_p5 = scmp.ne.s32.totalorder %s3385_s18, %s3001_s26  ;;  %s3006_s10 = sshll.u32 %s3155_s23, 4  ;;  %s3007_s10 = int_to_ptr.vmem [resolvable:$false] %s3006_s10 }
  0x87   : > { %s3008_s17 = scalar_lea.vmem %s3007_s10, 8192  ;;  %p3009_p0 = scmp.lt.s32.totalorder %s3385_s18, %s3007_s10 }
  0x88   : > { %p3004_p11 = pnand %p3002_p5, %p2988_p12  ;;  %p3010_p2 = scmp.lt.s32.totalorder %s3008_s17, %s3001_s26 }
  0x8a   : > { %p3005_p9 = pneg %p3004_p11  ;;  %p3011_p4 = por %p3010_p2, %p3009_p0 }
  0x8c   : > { %p3012_p8 = pnand %p3011_p4, %p3005_p9 }
  0x8e   : > { %3015 = shalt.err (!%p3012_p8)
}
  0x8f   : > { %s4476_s19 = smov 8   ;;  %s4477_s24 = smov 128  }
  0x90   : > { %2822 = dma.hbm_to_vmem [thread:$0]  (!%p3389_p7), %s3383_s14, 4096, %s3385_s18, %s292_s27, %s4477_s24, %s4477_s24, %s4476_s19  }
  0x91   : > { %s2789_s15 = smul.u32 768, %s3140_s5  ;;  %s319_s26 = scalar_lea.vmem [#allocation9], %s2788_s20 }
  0x92   : > { %s326_s23 = sshll.u32 %s319_s26, 4  ;;  %s4478_s2 = sand.u32 1, %s3144_s9   ;;  %s3434_s23 = int_to_ptr.vmem [resolvable:$true] %s326_s23 }
  0x93   : > { %s3432_s0 = scalar_lea.hbm %s4410_s1, %s2789_s15  ;;  %s3438_s3 = scalar_lea.sflag [#allocation10], %s4478_s2 }
  0x94   : > { %s3016_s4 = scalar_lea.hbm %s3432_s0, 768  ;;  %s3021_s18 = scalar_lea.hbm %s4410_s1, 1536 }
  0x95   : > { %p3017_p1 = scmp.ne.s32.totalorder %s3432_s0, %s3016_s4  ;;  %p3022_p3 = scmp.lt.u32.totalorder %s3432_s0, %s4410_s1 }
  0x96   : > { %p3023_p5 = scmp.lt.u32.totalorder %s3021_s18, %s3016_s4  ;;  %p3025_p9 = scmp.lt.u32.totalorder %s3016_s4, %s3432_s0 }
  0x97   : > { %p3019_p13 = pnand %p3017_p1, %p2988_p12 }
  0x98   : > { %p3024_p11 = por %p3023_p5, %p3022_p3 }
  0x99   : > { %p3020_p6 = pneg %p3019_p13 }
  0x9a   : > { %p3026_p0 = por %p3025_p9, %p3024_p11 }
  0x9c   : > { %p3027_p2 = pnand %p3026_p0, %p3020_p6 }
  0x9e   : > { %3030 = shalt.err (!%p3027_p2)
}
  0x9f   : > { %s3031_s2 = scalar_lea.vmem %s3434_s23, 768  ;;  %s3156_s15 = smov [#allocation9]  }
  0xa0   : > { %p3032_p4 = scmp.ne.s32.totalorder %s3434_s23, %s3031_s2  ;;  %s3036_s26 = sshll.u32 %s3156_s15, 4  ;;  %s3037_s26 = int_to_ptr.vmem [resolvable:$false] %s3036_s26 }
  0xa1   : > { %s3038_s10 = scalar_lea.vmem %s3037_s26, 1536  ;;  %p3039_p13 = scmp.lt.s32.totalorder %s3434_s23, %s3037_s26 }
  0xa2   : > { %p3034_p8 = pnand %p3032_p4, %p2988_p12  ;;  %p3040_p3 = scmp.lt.s32.totalorder %s3038_s10, %s3031_s2 }
  0xa4   : > { %p3035_p1 = pneg %p3034_p8  ;;  %p3041_p5 = por %p3040_p3, %p3039_p13 }
  0xa6   : > { %p3042_p11 = pnand %p3041_p5, %p3035_p1 }
  0xa8   : > { %3045 = shalt.err (!%p3042_p11)
}
  0xa9   : > { %2825 = dma.hbm_to_vmem [thread:$0]  (!%p3389_p7), %s3432_s0, 768, %s3434_s23, %s3438_s3, %s4477_s24, %s4477_s24, %s4476_s19  }
  0xaa   : > { %p4479_p12 = scmp.ne.s32.totalorder %s4466_s13, 0 }
  0xab   : > { %s3470_s4 = sand.u32 (!%p4479_p12), 1, %s3128_s29   ;;  %p4480_p6 = scmp.ne.s32.totalorder (!%p4479_p12), %s4463_s11, 0 }
  0xac   : > { %338 = sbr.rel (%p4479_p12) target bundleno = 935 (0x3a7), region = 48  ;;  %s2301_s17 = sshll.u32 (!%p4479_p12), %s3470_s4, 8 }
  0xad   : > { %s341_s22 = scalar_lea.sflag (!%p4479_p12), [#allocation7], %s3470_s4  ;;  %s3476_s12 = scalar_lea.vmem (!%p4479_p12), [#allocation6], %s2301_s17 }
  0xb3   : > { %3103 = dma.done.wait (%p4480_p6), %s341_s22, 4096  }
  0xb4   : > { %3105 = vsyncadd (%p4480_p6), %s341_s22, 4294963200  ;;  %s349_s0 = sand.u32 1, %s3238_s6   ;;  %s2790_s3 = smul.u32 48, %s3470_s4 }
  0xb5   : > { %s350_s13 = scalar_lea.sflag [#allocation10], %s349_s0 }
  0xb6   : > { %s3484_s19 = scalar_lea.vmem [#allocation9], %s2790_s3 }
  0xb7   : > { %3107 = dma.done.wait (%p4480_p6), %s350_s13, 768  }
  0xb8   : > { %3109 = vsyncadd (%p4480_p6), %s350_s13, 4294966528  ;;  %p4481_p7 = scmp.eq.s32.totalorder %s3238_s6, 0 }
  0xba   : > { %3111 = dma.done.wait (%p4481_p7), [#allocation10], 2048   ;;  %p4482_p9 = pmov %p4481_p7 }
  0xbb   : > { %p4483_p0 = pmov %p4481_p7 }
  0xbc   : > { %3113 = vsyncadd (%p4482_p9), [#allocation10], 4294965248 }
  0xbd   : > { %3115 = dma.done.wait (%p4483_p0), [#allocation13], 8320   ;;  %p4484_p2 = pmov %p4483_p0 }
  0xbe   : > { %v3157_v0 = vmov 0.0   ;;  %v708_v1 = vld [vmem:[#allocation11] sm:$0xff]  ;;  %v709_v2 = vld [vmem:[#allocation11 + $0x8] sm:$0xff]  ;;  %v710_v3 = vld [vmem:[#allocation11 + $0x10] sm:$0xff]  ;;  %s403_s6 = sld [smem:[#allocation4]]  ;;  %s3606_s24 = scalar_lea.vmem [#allocation15], %s2301_s17 }
  0xbf   : > { %3117 = vsyncadd (%p4484_p2), [#allocation13], 4294958976  ;;  %409 = vst [vmem:[#allocation2] sm:$0xff] %v3157_v0  ;;  %v2708_v4 = vpack.c.bf16 %v709_v2, %v708_v1  ;;  %v711_v5 = vld [vmem:[#allocation11 + $0x18] sm:$0xff]  ;;  %v712_v7 = vld [vmem:[#allocation11 + $0x20] sm:$0xff]  ;;  %s404_s11 = sld [smem:[#allocation5]] }
  0xc0   : > { %410 = vst [vmem:[#allocation2 + $0x8] sm:$0xff] %v3157_v0  ;;  %411 = vst [vmem:[#allocation2 + $0x10] sm:$0xff] %v3157_v0  ;;  %v2712_v6 = vpack.c.bf16 %v711_v5, %v710_v3  ;;  %v713_v8 = vld [vmem:[#allocation11 + $0x28] sm:$0xff]  ;;  %v676_v10 = vld [vmem:[%s3476_s12] sm:$0xff]  ;;  %s3608_s23 = smov 0  }
  0xc1   : > { %412 = vst [vmem:[#allocation2 + $0x18] sm:$0xff] %v3157_v0  ;;  %413 = vst [vmem:[#allocation2 + $0x20] sm:$0xff] %v3157_v0  ;;  %2709 = vmatprep.subr.bf16.mxu1 %v2708_v4  ;;  %2677 = vmatprep.subr.bf16.mxu0 %v2708_v4  ;;  %v2716_v9 = vpack.c.bf16 %v713_v8, %v712_v7  ;;  %v714_v11 = vld [vmem:[#allocation11 + $0x30] sm:$0xff]  ;;  %v715_v12 = vld [vmem:[#allocation11 + $0x38] sm:$0xff] }
  0xc2   : > { %414 = vst [vmem:[#allocation2 + $0x28] sm:$0xff] %v3157_v0  ;;  %415 = vst [vmem:[#allocation2 + $0x30] sm:$0xff] %v3157_v0  ;;  %2711 = vmatpush3.bf16.msra.mxu1 %v2708_v4  ;;  %2679 = vmatpush3.bf16.msra.mxu0 %v2708_v4  ;;  %v2720_v13 = vpack.c.bf16 %v715_v12, %v714_v11  ;;  %v716_v14 = vld [vmem:[#allocation11 + $0x40] sm:$0xff]  ;;  %v717_v15 = vld [vmem:[#allocation11 + $0x48] sm:$0xff] }
  0xc3   : > { %416 = vst [vmem:[#allocation2 + $0x38] sm:$0xff] %v3157_v0  ;;  %417 = vst [vmem:[#allocation2 + $0x40] sm:$0xff] %v3157_v0  ;;  %2713 = vmatprep.subr.bf16.mxu1 %v2712_v6  ;;  %2681 = vmatprep.subr.bf16.mxu0 %v2712_v6  ;;  %v2724_v16 = vpack.c.bf16 %v717_v15, %v716_v14  ;;  %v718_v17 = vld [vmem:[#allocation11 + $0x50] sm:$0xff]  ;;  %v719_v18 = vld [vmem:[#allocation11 + $0x58] sm:$0xff] }
  0xc4   : > { %418 = vst [vmem:[#allocation2 + $0x48] sm:$0xff] %v3157_v0  ;;  %419 = vst [vmem:[#allocation2 + $0x50] sm:$0xff] %v3157_v0  ;;  %2548 = vmatprep.mubr.f32.mxu1 %v676_v10  ;;  %v497_v19 = vld [vmem:[%s3484_s19] sm:$0xff]  ;;  %v2728_v20 = vpack.c.bf16 %v719_v18, %v718_v17  ;;  %v721_v22 = vld [vmem:[#allocation11 + $0x68] sm:$0xff]  ;;  %v3536_v63 = vstv %s403_s6 }
  0xc5   : > { %420 = vst [vmem:[#allocation2 + $0x58] sm:$0xff] %v3157_v0  ;;  %421 = vst [vmem:[#allocation2 + $0x60] sm:$0xff] %v3157_v0  ;;  %2507 = vmatprep.mubr.f32.mxu0 %v497_v19  ;;  %v720_v21 = vld [vmem:[#allocation11 + $0x60] sm:$0xff]  ;;  %v722_v24 = vld [vmem:[#allocation11 + $0x70] sm:$0xff]  ;;  %v3540_v10 = vstv %s404_s11 }
  0xc6   : > { %424 = vst [vmem:[#allocation2 + $0x78] sm:$0xff] %v3157_v0  ;;  %425 = vst [vmem:[#allocation2 + $0x80] sm:$0xff] %v3157_v0  ;;  %2715 = vmatpush3.bf16.msra.mxu1 %v2712_v6  ;;  %2683 = vmatpush3.bf16.msra.mxu0 %v2712_v6  ;;  %v2732_v23 = vpack.c.bf16 %v721_v22, %v720_v21  ;;  %v723_v25 = vld [vmem:[#allocation11 + $0x78] sm:$0xff]  ;;  %v677_v27 = vld [vmem:[%s3476_s12 + $0x8] sm:$0xff] }
  0xc7   : > { %428 = vst [vmem:[#allocation2 + $0x98] sm:$0xff] %v3157_v0  ;;  %429 = vst [vmem:[#allocation2 + $0xa0] sm:$0xff] %v3157_v0  ;;  %2717 = vmatprep.subr.bf16.mxu1 %v2716_v9  ;;  %2685 = vmatprep.subr.bf16.mxu0 %v2716_v9  ;;  %v2736_v26 = vpack.c.bf16 %v723_v25, %v722_v24  ;;  %v498_v28 = vld [vmem:[%s3484_s19 + $0x8] sm:$0xff]  ;;  %v678_v29 = vld [vmem:[%s3476_s12 + $0x10] sm:$0xff] }
  0xc8   : > { %432 = vst [vmem:[#allocation2 + $0xb8] sm:$0xff] %v3157_v0  ;;  %433 = vst [vmem:[#allocation2 + $0xc0] sm:$0xff] %v3157_v0  ;;  %v499_v30 = vld [vmem:[%s3484_s19 + $0x10] sm:$0xff]  ;;  %v679_v31 = vld [vmem:[%s3476_s12 + $0x18] sm:$0xff] }
  0xc9   : > { %436 = vst [vmem:[#allocation2 + $0xd8] sm:$0xff] %v3157_v0  ;;  %437 = vst [vmem:[#allocation2 + $0xe0] sm:$0xff] %v3157_v0  ;;  %v500_v32 = vld [vmem:[%s3484_s19 + $0x18] sm:$0xff]  ;;  %v680_v33 = vld [vmem:[%s3476_s12 + $0x20] sm:$0xff] }
  0xca   : > { %440 = vst [vmem:[#allocation2 + $0xf8] sm:$0xff] %v3157_v0  ;;  %441 = vst [vmem:[#allocation2 + $0x100] sm:$0xff] %v3157_v0  ;;  %2719 = vmatpush3.bf16.msra.mxu1 %v2716_v9  ;;  %2687 = vmatpush3.bf16.msra.mxu0 %v2716_v9  ;;  %v501_v34 = vld [vmem:[%s3484_s19 + $0x20] sm:$0xff]  ;;  %v681_v35 = vld [vmem:[%s3476_s12 + $0x28] sm:$0xff] }
  0xcb   : > { %444 = vst [vmem:[#allocation2 + $0x118] sm:$0xff] %v3157_v0  ;;  %445 = vst [vmem:[#allocation2 + $0x120] sm:$0xff] %v3157_v0  ;;  %2721 = vmatprep.subr.bf16.mxu1 %v2720_v13  ;;  %2689 = vmatprep.subr.bf16.mxu0 %v2720_v13  ;;  %v502_v36 = vld [vmem:[%s3484_s19 + $0x28] sm:$0xff]  ;;  %v682_v37 = vld [vmem:[%s3476_s12 + $0x30] sm:$0xff] }
  0xcc   : > { %448 = vst [vmem:[#allocation2 + $0x138] sm:$0xff] %v3157_v0  ;;  %449 = vst [vmem:[#allocation2 + $0x140] sm:$0xff] %v3157_v0  ;;  %v683_v38 = vld [vmem:[%s3476_s12 + $0x38] sm:$0xff]  ;;  %v684_v39 = vld [vmem:[%s3476_s12 + $0x40] sm:$0xff] }
  0xcd   : > { %452 = vst [vmem:[#allocation2 + $0x158] sm:$0xff] %v3157_v0  ;;  %453 = vst [vmem:[#allocation2 + $0x160] sm:$0xff] %v3157_v0  ;;  %v685_v40 = vld [vmem:[%s3476_s12 + $0x48] sm:$0xff]  ;;  %v686_v41 = vld [vmem:[%s3476_s12 + $0x50] sm:$0xff] }
  0xce   : > { %456 = vst [vmem:[#allocation2 + $0x178] sm:$0xff] %v3157_v0  ;;  %457 = vst [vmem:[#allocation2 + $0x180] sm:$0xff] %v3157_v0  ;;  %2723 = vmatpush3.bf16.msra.mxu1 %v2720_v13  ;;  %2691 = vmatpush3.bf16.msra.mxu0 %v2720_v13  ;;  %v687_v42 = vld [vmem:[%s3476_s12 + $0x58] sm:$0xff]  ;;  %v688_v43 = vld [vmem:[%s3476_s12 + $0x60] sm:$0xff] }
  0xcf   : > { %460 = vst [vmem:[#allocation2 + $0x198] sm:$0xff] %v3157_v0  ;;  %461 = vst [vmem:[#allocation2 + $0x1a0] sm:$0xff] %v3157_v0  ;;  %2725 = vmatprep.subr.bf16.mxu1 %v2724_v16  ;;  %2693 = vmatprep.subr.bf16.mxu0 %v2724_v16  ;;  %v689_v44 = vld [vmem:[%s3476_s12 + $0x68] sm:$0xff]  ;;  %v690_v45 = vld [vmem:[%s3476_s12 + $0x70] sm:$0xff] }
  0xd0   : > { %464 = vst [vmem:[#allocation2 + $0x1b8] sm:$0xff] %v3157_v0  ;;  %465 = vst [vmem:[#allocation2 + $0x1c0] sm:$0xff] %v3157_v0  ;;  %v691_v46 = vld [vmem:[%s3476_s12 + $0x78] sm:$0xff]  ;;  %v692_v47 = vld [vmem:[%s3476_s12 + $0x80] sm:$0xff] }
  0xd1   : > { %468 = vst [vmem:[#allocation2 + $0x1d8] sm:$0xff] %v3157_v0  ;;  %469 = vst [vmem:[#allocation2 + $0x1e0] sm:$0xff] %v3157_v0  ;;  %v693_v48 = vld [vmem:[%s3476_s12 + $0x88] sm:$0xff]  ;;  %v694_v49 = vld [vmem:[%s3476_s12 + $0x90] sm:$0xff] }
  0xd2   : > { %472 = vst [vmem:[#allocation2 + $0x1f8] sm:$0xff] %v3157_v0  ;;  %473 = vst [vmem:[#allocation2 + $0x200] sm:$0xff] %v3157_v0  ;;  %2727 = vmatpush3.bf16.msra.mxu1 %v2724_v16  ;;  %2695 = vmatpush3.bf16.msra.mxu0 %v2724_v16  ;;  %v695_v50 = vld [vmem:[%s3476_s12 + $0x98] sm:$0xff]  ;;  %v696_v51 = vld [vmem:[%s3476_s12 + $0xa0] sm:$0xff] }
  0xd3   : > { %476 = vst [vmem:[#allocation2 + $0x218] sm:$0xff] %v3157_v0  ;;  %477 = vst [vmem:[#allocation2 + $0x220] sm:$0xff] %v3157_v0  ;;  %2729 = vmatprep.subr.bf16.mxu1 %v2728_v20  ;;  %2697 = vmatprep.subr.bf16.mxu0 %v2728_v20  ;;  %v697_v52 = vld [vmem:[%s3476_s12 + $0xa8] sm:$0xff]  ;;  %v698_v53 = vld [vmem:[%s3476_s12 + $0xb0] sm:$0xff] }
  0xd4   : > { %480 = vst [vmem:[#allocation2 + $0x238] sm:$0xff] %v3157_v0  ;;  %481 = vst [vmem:[#allocation2 + $0x240] sm:$0xff] %v3157_v0  ;;  %v699_v54 = vld [vmem:[%s3476_s12 + $0xb8] sm:$0xff]  ;;  %v700_v55 = vld [vmem:[%s3476_s12 + $0xc0] sm:$0xff] }
  0xd5   : > { %484 = vst [vmem:[#allocation2 + $0x258] sm:$0xff] %v3157_v0  ;;  %1116 = vst [vmem:[#allocation2 + $0x260] sm:$0xff] %v3157_v0  ;;  %v701_v56 = vld [vmem:[%s3476_s12 + $0xc8] sm:$0xff]  ;;  %v702_v57 = vld [vmem:[%s3476_s12 + $0xd0] sm:$0xff] }
  0xd6   : > { %1119 = vst [vmem:[#allocation2 + $0x278] sm:$0xff] %v3157_v0  ;;  %1120 = vst [vmem:[#allocation2 + $0x280] sm:$0xff] %v3157_v0  ;;  %2731 = vmatpush3.bf16.msra.mxu1 %v2728_v20  ;;  %2699 = vmatpush3.bf16.msra.mxu0 %v2728_v20  ;;  %v703_v58 = vld [vmem:[%s3476_s12 + $0xd8] sm:$0xff]  ;;  %v704_v59 = vld [vmem:[%s3476_s12 + $0xe0] sm:$0xff] }
  0xd7   : > { %1123 = vst [vmem:[#allocation2 + $0x298] sm:$0xff] %v3157_v0  ;;  %1124 = vst [vmem:[#allocation2 + $0x2a0] sm:$0xff] %v3157_v0  ;;  %2733 = vmatprep.subr.bf16.mxu1 %v2732_v23  ;;  %2701 = vmatprep.subr.bf16.mxu0 %v2732_v23  ;;  %v705_v60 = vld [vmem:[%s3476_s12 + $0xe8] sm:$0xff]  ;;  %v706_v61 = vld [vmem:[%s3476_s12 + $0xf0] sm:$0xff] }
  0xd8   : > { %1127 = vst [vmem:[#allocation2 + $0x2b8] sm:$0xff] %v3157_v0  ;;  %1118 = vst [vmem:[#allocation2 + $0x270] sm:$0xff] %v3157_v0  ;;  %v707_v62 = vld [vmem:[%s3476_s12 + $0xf8] sm:$0xff] }
  0xd9   : > { %1117 = vst [vmem:[#allocation2 + $0x268] sm:$0xff] %v3157_v0  ;;  %1122 = vst [vmem:[#allocation2 + $0x290] sm:$0xff] %v3157_v0 }
  0xda   : > { %1121 = vst [vmem:[#allocation2 + $0x288] sm:$0xff] %v3157_v0  ;;  %1126 = vst [vmem:[#allocation2 + $0x2b0] sm:$0xff] %v3157_v0  ;;  %2735 = vmatpush3.bf16.msra.mxu1 %v2732_v23  ;;  %2703 = vmatpush3.bf16.msra.mxu0 %v2732_v23 }
  0xdb   : > { %1125 = vst [vmem:[#allocation2 + $0x2a8] sm:$0xff] %v3157_v0  ;;  %2737 = vmatprep.subr.bf16.mxu1 %v2736_v26  ;;  %2705 = vmatprep.subr.bf16.mxu0 %v2736_v26 }
  0xde   : > { %2739 = vmatpush3.bf16.msra.mxu1 %v2736_v26  ;;  %2707 = vmatpush3.bf16.msra.mxu0 %v2736_v26 }
  0xe1   : > { %2549 = vmatmul.mubr.f32.vlgmr.msra.gmra.mrb[0].mxu1 %v677_v27  ;;  %2508 = vmatmul.mubr.f32.vlgmr.msra.gmra.mrb[0].mxu0 %v498_v28 }
  0xe2   : > { %2551 = vmatprep.mubr.f32.mxu1 %v678_v29  ;;  %2510 = vmatprep.mubr.f32.mxu0 %v499_v30 }
  0xe5   : > { %2552 = vmatmul.mubr.f32.gmra.mrb[2].mxu1 %v679_v31  ;;  %2511 = vmatmul.mubr.f32.gmra.mrb[2].mxu0 %v500_v32 }
  0xe6   : > { %2554 = vmatprep.mubr.f32.mxu1 %v680_v33  ;;  %2513 = vmatprep.mubr.f32.mxu0 %v501_v34 }
  0xe9   : > { %2555 = vmatmul.mubr.f32.gmra.mrb[4].mxu1 %v681_v35  ;;  %2514 = vmatmul.mubr.f32.gmra.mrb[4].mxu0 %v502_v36 }
  0xea   : > { %2557 = vmatprep.mubr.f32.mxu1 %v682_v37 }
  0xed   : > { %2558 = vmatmul.mubr.f32.gmra.mrb[6].mxu1 %v683_v38 }
  0xee   : > { %2560 = vmatprep.mubr.f32.mxu1 %v684_v39 }
  0xf1   : > { %2561 = vmatmul.mubr.f32.gmra.mrb[8].mxu1 %v685_v40 }
  0xf2   : > { %2563 = vmatprep.mubr.f32.mxu1 %v686_v41 }
  0xf5   : > { %2564 = vmatmul.mubr.f32.gmra.mrb[10].mxu1 %v687_v42 }
  0xf6   : > { %2566 = vmatprep.mubr.f32.mxu1 %v688_v43 }
  0xf9   : > { %2567 = vmatmul.mubr.f32.gmra.mrb[12].mxu1 %v689_v44 }
  0xfa   : > { %2569 = vmatprep.mubr.f32.mxu1 %v690_v45 }
  0xfd   : > { %2570 = vmatmul.mubr.f32.gmra.mrb[14].mxu1 %v691_v46 }
  0xfe   : > { %2572 = vmatprep.mubr.f32.mxu1 %v692_v47 }
 0x101   : > { %2573 = vmatmul.mubr.f32.gmra.mrb[16].mxu1 %v693_v48 }
 0x102   : > { %2575 = vmatprep.mubr.f32.mxu1 %v694_v49 }
 0x105   : > { %2576 = vmatmul.mubr.f32.gmra.mrb[18].mxu1 %v695_v50 }
 0x106   : > { %2578 = vmatprep.mubr.f32.mxu1 %v696_v51 }
 0x109   : > { %2579 = vmatmul.mubr.f32.gmra.mrb[20].mxu1 %v697_v52 }
 0x10a   : > { %2581 = vmatprep.mubr.f32.mxu1 %v698_v53 }
 0x10d   : > { %2582 = vmatmul.mubr.f32.gmra.mrb[22].mxu1 %v699_v54 }
 0x10e   : > { %2584 = vmatprep.mubr.f32.mxu1 %v700_v55 }
 0x111   : > { %2585 = vmatmul.mubr.f32.gmra.mrb[24].mxu1 %v701_v56 }
 0x112   : > { %2587 = vmatprep.mubr.f32.mxu1 %v702_v57 }
 0x115   : > { %2588 = vmatmul.mubr.f32.gmra.mrb[26].mxu1 %v703_v58 }
 0x116   : > { %2590 = vmatprep.mubr.f32.mxu1 %v704_v59 }
 0x119   : > { %2591 = vmatmul.mubr.f32.gmra.mrb[28].mxu1 %v705_v60 }
 0x11a   : > { %2593 = vmatprep.mubr.f32.mxu1 %v706_v61 }
 0x11d   : > { %2594 = vmatmul.mubr.f32.gmra.mrb[30].mxu1 %v707_v62 }
 0x1b4   : > { %v2550_v0 = vpop.f32.mrb[0].mxu1  ;;  %v2509_v1 = vpop.f32.mrb[0].mxu0 }
 0x1b5   : > { %v950_v2 = vmax.f32 %v2550_v0, 0.0  ;;  %v790_v3 = vpop.f32.mrb[1].mxu1  ;;  %v615_v4 = vmax.f32 %v2509_v1, 0.0  ;;  %v585_v5 = vpop.f32.mrb[1].mxu0 }
 0x1b6   : > { %v949_v6 = vmax.f32 %v790_v3, 0.0  ;;  %v614_v7 = vmax.f32 %v585_v5, 0.0 }
 0x1b7   : > { %v983_v8 = vmul.f32 %v950_v2, %v3536_v63  ;;  %v622_v9 = vmul.f32 %v3536_v63, %v615_v4 }
 0x1b8   : > { %v982_v11 = vmul.f32 %v949_v6, %v3536_v63  ;;  %v2553_v12 = vpop.f32.mrb[2].mxu1  ;;  %v621_v13 = vmul.f32 %v3536_v63, %v614_v7  ;;  %v2512_v14 = vpop.f32.mrb[2].mxu0 }
 0x1b9   : > { %v1015_v15 = vmul.f32 %v983_v8, %v950_v2  ;;  %v952_v16 = vmax.f32 %v2553_v12, 0.0  ;;  %v800_v17 = vpop.f32.mrb[3].mxu1  ;;  %v628_v18 = vmul.f32 %v622_v9, %v615_v4  ;;  %v617_v19 = vmax.f32 %v2512_v14, 0.0  ;;  %v595_v20 = vpop.f32.mrb[3].mxu0 }
 0x1ba   : > { %v1014_v21 = vmul.f32 %v982_v11, %v949_v6  ;;  %v951_v22 = vmax.f32 %v800_v17, 0.0  ;;  %v627_v23 = vmul.f32 %v621_v13, %v614_v7  ;;  %v616_v24 = vmax.f32 %v595_v20, 0.0 }
 0x1bb   : > { %v1048_v25 = vadd.f32 %v1015_v15, %v3540_v10  ;;  %v985_v26 = vmul.f32 %v952_v16, %v3536_v63  ;;  %v635_v27 = vadd.f32 %v3540_v10, %v628_v18  ;;  %v624_v28 = vmul.f32 %v3536_v63, %v617_v19 }
 0x1bc   : > { %v1047_v29 = vadd.f32 %v1014_v21, %v3540_v10  ;;  %v984_v30 = vmul.f32 %v951_v22, %v3536_v63  ;;  %v2556_v31 = vpop.f32.mrb[4].mxu1  ;;  %v634_v32 = vadd.f32 %v3540_v10, %v627_v23  ;;  %v623_v33 = vmul.f32 %v3536_v63, %v616_v24  ;;  %v2515_v34 = vpop.f32.mrb[4].mxu0 }
 0x1bd   : > { %1081 = vst [vmem:[#allocation2 + $0xd0] sm:$0xff] %v1048_v25  ;;  %v1017_v35 = vmul.f32 %v985_v26, %v952_v16  ;;  %v954_v36 = vmax.f32 %v2556_v31, 0.0  ;;  %v810_v37 = vpop.f32.mrb[5].mxu1  ;;  %642 = vst [vmem:[#allocation2 + $0x70] sm:$0xff] %v635_v27  ;;  %v630_v38 = vmul.f32 %v624_v28, %v617_v19  ;;  %v619_v39 = vmax.f32 %v2515_v34, 0.0  ;;  %v605_v40 = vpop.f32.mrb[5].mxu0 }
 0x1be   : > { %1080 = vst [vmem:[#allocation2 + $0xc8] sm:$0xff] %v1047_v29  ;;  %v1016_v41 = vmul.f32 %v984_v30, %v951_v22  ;;  %v953_v42 = vmax.f32 %v810_v37, 0.0  ;;  %641 = vst [vmem:[#allocation2 + $0x68] sm:$0xff] %v634_v32  ;;  %v629_v43 = vmul.f32 %v623_v33, %v616_v24  ;;  %v618_v44 = vmax.f32 %v605_v40, 0.0 }
 0x1bf   : > { %v1050_v45 = vadd.f32 %v1017_v35, %v3540_v10  ;;  %v987_v46 = vmul.f32 %v954_v36, %v3536_v63  ;;  %v637_v47 = vadd.f32 %v3540_v10, %v630_v38  ;;  %v626_v48 = vmul.f32 %v3536_v63, %v619_v39 }
 0x1c0   : > { %v1049_v49 = vadd.f32 %v1016_v41, %v3540_v10  ;;  %v986_v50 = vmul.f32 %v953_v42, %v3536_v63  ;;  %v2559_v51 = vpop.f32.mrb[6].mxu1  ;;  %v636_v52 = vadd.f32 %v3540_v10, %v629_v43  ;;  %v625_v53 = vmul.f32 %v3536_v63, %v618_v44 }
 0x1c1   : > { %1083 = vst [vmem:[#allocation2 + $0xf0] sm:$0xff] %v1050_v45  ;;  %v1019_v54 = vmul.f32 %v987_v46, %v954_v36  ;;  %v956_v55 = vmax.f32 %v2559_v51, 0.0  ;;  %v820_v56 = vpop.f32.mrb[7].mxu1  ;;  %644 = vst [vmem:[#allocation2 + $0x90] sm:$0xff] %v637_v47  ;;  %v632_v57 = vmul.f32 %v626_v48, %v619_v39 }
 0x1c2   : > { %1082 = vst [vmem:[#allocation2 + $0xe8] sm:$0xff] %v1049_v49  ;;  %v1018_v58 = vmul.f32 %v986_v50, %v953_v42  ;;  %v955_v59 = vmax.f32 %v820_v56, 0.0  ;;  %643 = vst [vmem:[#allocation2 + $0x88] sm:$0xff] %v636_v52  ;;  %v631_v60 = vmul.f32 %v625_v53, %v618_v44 }
 0x1c3   : > { %v1052_v61 = vadd.f32 %v1019_v54, %v3540_v10  ;;  %v989_v62 = vmul.f32 %v956_v55, %v3536_v63  ;;  %v639_v0 = vadd.f32 %v3540_v10, %v632_v57 }
 0x1c4   : > { %v1051_v1 = vadd.f32 %v1018_v58, %v3540_v10  ;;  %v988_v2 = vmul.f32 %v955_v59, %v3536_v63  ;;  %v2562_v3 = vpop.f32.mrb[8].mxu1  ;;  %v638_v4 = vadd.f32 %v3540_v10, %v631_v60 }
 0x1c5   : > { %1085 = vst [vmem:[#allocation2 + $0x110] sm:$0xff] %v1052_v61  ;;  %v1021_v5 = vmul.f32 %v989_v62, %v956_v55  ;;  %v958_v6 = vmax.f32 %v2562_v3, 0.0  ;;  %v830_v7 = vpop.f32.mrb[9].mxu1  ;;  %646 = vst [vmem:[#allocation2 + $0xb0] sm:$0xff] %v639_v0 }
 0x1c6   : > { %1084 = vst [vmem:[#allocation2 + $0x108] sm:$0xff] %v1051_v1  ;;  %v1020_v8 = vmul.f32 %v988_v2, %v955_v59  ;;  %v957_v9 = vmax.f32 %v830_v7, 0.0  ;;  %645 = vst [vmem:[#allocation2 + $0xa8] sm:$0xff] %v638_v4 }
 0x1c7   : > { %v1054_v11 = vadd.f32 %v1021_v5, %v3540_v10  ;;  %v991_v12 = vmul.f32 %v958_v6, %v3536_v63 }
 0x1c8   : > { %v1053_v13 = vadd.f32 %v1020_v8, %v3540_v10  ;;  %v990_v14 = vmul.f32 %v957_v9, %v3536_v63  ;;  %v2565_v15 = vpop.f32.mrb[10].mxu1 }
 0x1c9   : > { %1087 = vst [vmem:[#allocation2 + $0x130] sm:$0xff] %v1054_v11  ;;  %v1023_v16 = vmul.f32 %v991_v12, %v958_v6  ;;  %v960_v17 = vmax.f32 %v2565_v15, 0.0  ;;  %v840_v18 = vpop.f32.mrb[11].mxu1 }
 0x1ca   : > { %1086 = vst [vmem:[#allocation2 + $0x128] sm:$0xff] %v1053_v13  ;;  %v1022_v19 = vmul.f32 %v990_v14, %v957_v9  ;;  %v959_v20 = vmax.f32 %v840_v18, 0.0 }
 0x1cb   : > { %v1056_v21 = vadd.f32 %v1023_v16, %v3540_v10  ;;  %v993_v22 = vmul.f32 %v960_v17, %v3536_v63 }
 0x1cc   : > { %v1055_v23 = vadd.f32 %v1022_v19, %v3540_v10  ;;  %v992_v24 = vmul.f32 %v959_v20, %v3536_v63  ;;  %v2568_v25 = vpop.f32.mrb[12].mxu1 }
 0x1cd   : > { %1089 = vst [vmem:[#allocation2 + $0x150] sm:$0xff] %v1056_v21  ;;  %v1025_v26 = vmul.f32 %v993_v22, %v960_v17  ;;  %v962_v27 = vmax.f32 %v2568_v25, 0.0  ;;  %v850_v28 = vpop.f32.mrb[13].mxu1 }
 0x1ce   : > { %1088 = vst [vmem:[#allocation2 + $0x148] sm:$0xff] %v1055_v23  ;;  %v1024_v29 = vmul.f32 %v992_v24, %v959_v20  ;;  %v961_v30 = vmax.f32 %v850_v28, 0.0 }
 0x1cf   : > { %v1058_v31 = vadd.f32 %v1025_v26, %v3540_v10  ;;  %v995_v32 = vmul.f32 %v962_v27, %v3536_v63 }
 0x1d0   : > { %v1057_v33 = vadd.f32 %v1024_v29, %v3540_v10  ;;  %v994_v34 = vmul.f32 %v961_v30, %v3536_v63  ;;  %v2571_v35 = vpop.f32.mrb[14].mxu1 }
 0x1d1   : > { %1091 = vst [vmem:[#allocation2 + $0x170] sm:$0xff] %v1058_v31  ;;  %v1027_v36 = vmul.f32 %v995_v32, %v962_v27  ;;  %v964_v37 = vmax.f32 %v2571_v35, 0.0  ;;  %v860_v38 = vpop.f32.mrb[15].mxu1 }
 0x1d2   : > { %1090 = vst [vmem:[#allocation2 + $0x168] sm:$0xff] %v1057_v33  ;;  %v1026_v39 = vmul.f32 %v994_v34, %v961_v30  ;;  %v963_v40 = vmax.f32 %v860_v38, 0.0 }
 0x1d3   : > { %v1060_v41 = vadd.f32 %v1027_v36, %v3540_v10  ;;  %v997_v42 = vmul.f32 %v964_v37, %v3536_v63 }
 0x1d4   : > { %v1059_v43 = vadd.f32 %v1026_v39, %v3540_v10  ;;  %v996_v44 = vmul.f32 %v963_v40, %v3536_v63  ;;  %v2574_v45 = vpop.f32.mrb[16].mxu1 }
 0x1d5   : > { %1093 = vst [vmem:[#allocation2 + $0x190] sm:$0xff] %v1060_v41  ;;  %v1029_v46 = vmul.f32 %v997_v42, %v964_v37  ;;  %v966_v47 = vmax.f32 %v2574_v45, 0.0  ;;  %v870_v48 = vpop.f32.mrb[17].mxu1 }
 0x1d6   : > { %1092 = vst [vmem:[#allocation2 + $0x188] sm:$0xff] %v1059_v43  ;;  %v1028_v49 = vmul.f32 %v996_v44, %v963_v40  ;;  %v965_v50 = vmax.f32 %v870_v48, 0.0 }
 0x1d7   : > { %v1062_v51 = vadd.f32 %v1029_v46, %v3540_v10  ;;  %v999_v52 = vmul.f32 %v966_v47, %v3536_v63 }
 0x1d8   : > { %v1061_v53 = vadd.f32 %v1028_v49, %v3540_v10  ;;  %v998_v54 = vmul.f32 %v965_v50, %v3536_v63  ;;  %v2577_v55 = vpop.f32.mrb[18].mxu1 }
 0x1d9   : > { %1095 = vst [vmem:[#allocation2 + $0x1b0] sm:$0xff] %v1062_v51  ;;  %v1031_v56 = vmul.f32 %v999_v52, %v966_v47  ;;  %v968_v57 = vmax.f32 %v2577_v55, 0.0  ;;  %v880_v58 = vpop.f32.mrb[19].mxu1 }
 0x1da   : > { %1094 = vst [vmem:[#allocation2 + $0x1a8] sm:$0xff] %v1061_v53  ;;  %v1030_v59 = vmul.f32 %v998_v54, %v965_v50  ;;  %v967_v60 = vmax.f32 %v880_v58, 0.0 }
 0x1db   : > { %v1064_v61 = vadd.f32 %v1031_v56, %v3540_v10  ;;  %v1001_v62 = vmul.f32 %v968_v57, %v3536_v63 }
 0x1dc   : > { %v1063_v0 = vadd.f32 %v1030_v59, %v3540_v10  ;;  %v1000_v1 = vmul.f32 %v967_v60, %v3536_v63  ;;  %v2580_v2 = vpop.f32.mrb[20].mxu1 }
 0x1dd   : > { %1097 = vst [vmem:[#allocation2 + $0x1d0] sm:$0xff] %v1064_v61  ;;  %v1033_v3 = vmul.f32 %v1001_v62, %v968_v57  ;;  %v970_v4 = vmax.f32 %v2580_v2, 0.0  ;;  %v890_v5 = vpop.f32.mrb[21].mxu1 }
 0x1de   : > { %1096 = vst [vmem:[#allocation2 + $0x1c8] sm:$0xff] %v1063_v0  ;;  %v1032_v6 = vmul.f32 %v1000_v1, %v967_v60  ;;  %v969_v7 = vmax.f32 %v890_v5, 0.0 }
 0x1df   : > { %v1066_v8 = vadd.f32 %v1033_v3, %v3540_v10  ;;  %v1003_v9 = vmul.f32 %v970_v4, %v3536_v63 }
 0x1e0   : > { %v1065_v11 = vadd.f32 %v1032_v6, %v3540_v10  ;;  %v1002_v12 = vmul.f32 %v969_v7, %v3536_v63  ;;  %v2583_v13 = vpop.f32.mrb[22].mxu1 }
 0x1e1   : > { %1099 = vst [vmem:[#allocation2 + $0x1f0] sm:$0xff] %v1066_v8  ;;  %v1035_v14 = vmul.f32 %v1003_v9, %v970_v4  ;;  %v972_v15 = vmax.f32 %v2583_v13, 0.0  ;;  %v900_v16 = vpop.f32.mrb[23].mxu1 }
 0x1e2   : > { %1098 = vst [vmem:[#allocation2 + $0x1e8] sm:$0xff] %v1065_v11  ;;  %v1034_v17 = vmul.f32 %v1002_v12, %v969_v7  ;;  %v971_v18 = vmax.f32 %v900_v16, 0.0 }
 0x1e3   : > { %v1068_v19 = vadd.f32 %v1035_v14, %v3540_v10  ;;  %v1005_v20 = vmul.f32 %v972_v15, %v3536_v63 }
 0x1e4   : > { %v1067_v21 = vadd.f32 %v1034_v17, %v3540_v10  ;;  %v1004_v22 = vmul.f32 %v971_v18, %v3536_v63  ;;  %v2586_v23 = vpop.f32.mrb[24].mxu1 }
 0x1e5   : > { %1101 = vst [vmem:[#allocation2 + $0x210] sm:$0xff] %v1068_v19  ;;  %v1037_v24 = vmul.f32 %v1005_v20, %v972_v15  ;;  %v974_v25 = vmax.f32 %v2586_v23, 0.0  ;;  %v910_v26 = vpop.f32.mrb[25].mxu1 }
 0x1e6   : > { %1100 = vst [vmem:[#allocation2 + $0x208] sm:$0xff] %v1067_v21  ;;  %v1036_v27 = vmul.f32 %v1004_v22, %v971_v18  ;;  %v973_v28 = vmax.f32 %v910_v26, 0.0 }
 0x1e7   : > { %v1070_v29 = vadd.f32 %v1037_v24, %v3540_v10  ;;  %v1007_v30 = vmul.f32 %v974_v25, %v3536_v63 }
 0x1e8   : > { %v1069_v31 = vadd.f32 %v1036_v27, %v3540_v10  ;;  %v1006_v32 = vmul.f32 %v973_v28, %v3536_v63  ;;  %v2589_v33 = vpop.f32.mrb[26].mxu1 }
 0x1e9   : > { %1103 = vst [vmem:[#allocation2 + $0x230] sm:$0xff] %v1070_v29  ;;  %v1039_v34 = vmul.f32 %v1007_v30, %v974_v25  ;;  %v920_v35 = vpop.f32.mrb[27].mxu1 }
 0x1ea   : > { %1102 = vst [vmem:[#allocation2 + $0x228] sm:$0xff] %v1069_v31  ;;  %v1038_v36 = vmul.f32 %v1006_v32, %v973_v28 }
 0x1eb   : > { %v1072_v37 = vadd.f32 %v1039_v34, %v3540_v10 }
 0x1ec   : > { %v1071_v38 = vadd.f32 %v1038_v36, %v3540_v10  ;;  %v2592_v39 = vpop.f32.mrb[28].mxu1 }
 0x1ed   : > { %1105 = vst [vmem:[#allocation2 + $0x250] sm:$0xff] %v1072_v37  ;;  %v930_v40 = vpop.f32.mrb[29].mxu1 }
 0x1ee   : > { %1104 = vst [vmem:[#allocation2 + $0x248] sm:$0xff] %v1071_v38 }
 0x1f0   : > { %v2595_v41 = vpop.f32.mrb[30].mxu1 }
 0x1f1   : > { %v940_v42 = vpop.f32.mrb[31].mxu1 }
 0x1f2 LB: >> { %v1141_v63 = vlaneseq  ;;  %s2306_s14 = sshll.u32 %s3148_s23, 5  ;;  %v3626_v47 = vld [vmem:[#allocation12] sm:$0xff]  ;;  %v3629_v50 = vld [vmem:[#allocation12 + $0x8] sm:$0xff]  ;;  %v3635_v54 = vld [vmem:[#allocation12 + $0x10] sm:$0xff]  ;;  %s2331_s20 = sshll.u32 %s3148_s23, 4  ;;  %s3148_s23 = sphi %s3608_s23, %s1133_s23  }
 0x1f3   : >> { %s3616_s18 = scalar_lea.vmem [#allocation2], %s2306_s14  ;;  %v3646_v58 = vld [vmem:[#allocation12 + $0x18] sm:$0xff]  ;;  %v3666_v5 = vld [vmem:[#allocation12 + $0x20] sm:$0xff]  ;;  %v3678_v13 = vld [vmem:[#allocation12 + $0x28] sm:$0xff]  ;;  %s4207_s27 = scalar_lea.vmem [#allocation3], %s2331_s20 }
 0x1f4   : >> { %v3614_v10 = vshrl.u32 %v1141_v63, 7  ;;  %v3687_v19 = vld [vmem:[#allocation12 + $0x30] sm:$0xff]  ;;  %v3695_v25 = vld [vmem:[#allocation12 + $0x38] sm:$0xff]  ;;  %v3703_v31 = vld [vmem:[#allocation12 + $0x40] sm:$0xff]  ;;  %s1133_s23 = sadd.s32 1, %s3148_s23  }
 0x1f5   : >> { %v1136_v43 = vld [vmem:[%s3616_s18] sm:$0xff]  ;;  %v3620_v44 = vld [vmem:[%s3616_s18 + $0x8] sm:$0xff]  ;;  %v3632_v51 = vld [vmem:[%s3616_s18 + $0x10] sm:$0xff]  ;;  %p1130_p4 = scmp.ge.s32.totalorder %s1133_s23, 16  }
 0x1f6   : >> { %vm1143_vm0 = vcmp.lt.s32.totalorder %v3614_v10, 3  ;;  %vm1150_vm1 = vcmp.lt.s32.totalorder %v3614_v10, 2  ;;  %vm1158_vm2 = vcmp.lt.s32.totalorder %v3614_v10, 1  ;;  %v1139_v45 = vrot.slane %v1136_v43, 5  ;;  %v2308_v1 = vld [vmem:[%s3616_s18 + $0x20] sm:$0xff]  ;;  %v3659_v2 = vld [vmem:[%s3616_s18 + $0x28] sm:$0xff] }
 0x1f7   : >> { %v1140_v46 = vrot.slane %v3620_v44, 5  ;;  %v1148_v48 = vrot.slane %v1136_v43, 6  ;;  %v4448_v49 = vrot.slane %v3620_v44, 6  ;;  %v1156_v52 = vrot.slane %v1136_v43, 7  ;;  %v3706_v33 = vld [vmem:[%s3616_s18 + $0x30] sm:$0xff]  ;;  %v3713_v36 = vld [vmem:[#allocation12 + $0x48] sm:$0xff] }
 0x1f8   : >> { %v4447_v53 = vrot.slane %v3620_v44, 7  ;;  %v1168_v55 = vrot.slane %v3620_v44, 1  ;;  %v4446_v59 = vrot.slane %v3632_v51, 1  ;;  %vm1170_vm3 = vcmp.lt.s32.totalorder %v3614_v10, 7  ;;  %v3718_v41 = vld [vmem:[#allocation12 + $0x50] sm:$0xff]  ;;  %s2356_s2 = sshll.u32 (%p1130_p4), %s3136_s8, 12 }
 0x1f9   : >> { %v1144_v56 = vsel %vm1143_vm0, %v1139_v45, %v1140_v46  ;;  %v1151_v57 = vsel %vm1150_vm1, %v1148_v48, %v4448_v49  ;;  %v1176_v0 = vrot.slane %v3620_v44, 2  ;;  %v4445_v6 = vrot.slane %v3632_v51, 2  ;;  %v2312_v48 = vld [vmem:[%s3616_s18 + $0x40] sm:$0xff]  ;;  %s2124_s15 = sshll.u32 (%p1130_p4), %s3606_s24, 4  ;;  %s4356_s17 = scalar_lea.hbm (%p1130_p4), %s4416_s7, %s2356_s2  ;;  %s4358_s15 = int_to_ptr.vmem [resolvable:$true] %s2124_s15 }
 0x1fa   : >> { %v1146_v60 = vmul.f32 %v3626_v47, %v1144_v56  ;;  %v1154_v61 = vmul.f32 %v3629_v50, %v1151_v57  ;;  %v1159_v62 = vsel %vm1158_vm2, %v1156_v52, %v4447_v53  ;;  %v1171_v4 = vsel %vm1170_vm3, %v1168_v55, %v4446_v59  ;;  %v3725_v52 = vld [vmem:[%s3616_s18 + $0x48] sm:$0xff]  ;;  %v3731_v56 = vld [vmem:[#allocation12 + $0x58] sm:$0xff]  ;;  %s2108_s22 = scalar_lea.sflag (%p1130_p4), [#allocation8], %s3470_s4  ;;  %s3046_s8 = scalar_lea.vmem (%p1130_p4), %s4358_s15, 4096 }
 0x1fb   : >> { %v1162_v3 = vmul.f32 %v3635_v54, %v1159_v62  ;;  %vm1178_vm4 = vcmp.lt.s32.totalorder %v3614_v10, 6  ;;  %v1166_v8 = vmul.f32 %v3646_v58, %v3620_v44  ;;  %v1184_v9 = vrot.slane %v3620_v44, 3  ;;  %p3047_p8 = scmp.ne.s32.totalorder (%p1130_p4), %s4358_s15, %s3046_s8  ;;  %s3158_s12 = smov (%p1130_p4), [#allocation15]  }
 0x1fc   : >> { %v1155_v7 = vadd.f32 %v1154_v61, %v1146_v60  ;;  %v4444_v11 = vrot.slane %v3632_v51, 3  ;;  %v1179_v12 = vsel %vm1178_vm4, %v1176_v0, %v4445_v6  ;;  %vm1186_vm5 = vcmp.lt.s32.totalorder %v3614_v10, 5  ;;  %s3050_s0 = sshll.u32 (%p1130_p4), %s3158_s12, 4  ;;  %s3051_s0 = int_to_ptr.vmem [resolvable:$false] %s3050_s0 }
 0x1fd   : >> { %v1198_v14 = vrot.slane %v2308_v1, 5  ;;  %v4442_v15 = vrot.slane %v3659_v2, 5  ;;  %v1174_v17 = vmul.f32 %v3666_v5, %v1171_v4  ;;  %v1205_v20 = vrot.slane %v2308_v1, 6  ;;  %p3048_p1 = pnand (%p1130_p4), %p3047_p8, %p3363_p10  ;;  %s3052_s3 = scalar_lea.vmem (%p1130_p4), %s3051_s0, 8192 }
 0x1fe   : >> { %v1163_v16 = vadd.f32 %v1162_v3, %v1155_v7  ;;  %v1187_v18 = vsel %vm1186_vm5, %v1184_v9, %v4444_v11  ;;  %v4440_v21 = vrot.slane %v3659_v2, 6  ;;  %v1182_v23 = vmul.f32 %v3678_v13, %v1179_v12  ;;  %v3749_v12 = vld [vmem:[#allocation12 + $0x68] sm:$0xff]  ;;  %p3053_p3 = scmp.lt.s32.totalorder (%p1130_p4), %s4358_s15, %s3051_s0  ;;  %p3054_p5 = scmp.lt.s32.totalorder (%p1130_p4), %s3052_s3, %s3046_s8 }
 0x1ff   : >> { %v1200_v24 = vsel %vm1143_vm0, %v1198_v14, %v4442_v15  ;;  %v1212_v26 = vrot.slane %v2308_v1, 7  ;;  %v4436_v27 = vrot.slane %v3659_v2, 7  ;;  %v1190_v29 = vmul.f32 %v3687_v19, %v1187_v18  ;;  %v3741_v1 = vld [vmem:[#allocation12 + $0x60] sm:$0xff]  ;;  %p3049_p13 = pneg (%p1130_p4), %p3048_p1 }
 0x200   : >> { %v1167_v22 = vadd.f32 %v1166_v8, %v1163_v16  ;;  %v1207_v30 = vsel %vm1150_vm1, %v1205_v20, %v4440_v21  ;;  %v1203_v34 = vmul.f32 %v3695_v25, %v1200_v24  ;;  %v1223_v37 = vrot.slane %v3659_v2, 1  ;;  %v3758_v24 = vld [vmem:[#allocation12 + $0x70] sm:$0xff]  ;;  %p3055_p11 = por (%p1130_p4), %p3054_p5, %p3053_p3 }
 0x201   : >> { %v1214_v35 = vsel %vm1158_vm2, %v1212_v26, %v4436_v27  ;;  %v4435_v38 = vrot.slane %v3706_v33, 1  ;;  %v1210_v40 = vmul.f32 %v3703_v31, %v1207_v30  ;;  %v1230_v42 = vrot.slane %v3659_v2, 2 }
 0x202   : >> { %v1175_v28 = vadd.f32 %v1174_v17, %v1167_v22  ;;  %v4434_v63 = vrot.slane %v3706_v33, 2  ;;  %v1217_v45 = vmul.f32 %v3713_v36, %v1214_v35  ;;  %v1237_v57 = vrot.slane %v3659_v2, 3  ;;  %p3056_p12 = pnand (%p1130_p4), %p3055_p11, %p3049_p13 }
 0x203   : >> { %v1225_v55 = vsel %vm1170_vm3, %v1223_v37, %v4435_v38  ;;  %v4433_v60 = vrot.slane %v3706_v33, 3  ;;  %v1221_v62 = vmul.f32 %v3659_v2, %v3718_v41  ;;  %v1250_v3 = vrot.slane %v2312_v48, 5  ;;  %v3851_v38 = vld [vmem:[#allocation12 + $0xc0] sm:$0xff] }
 0x204   : >> { %v1183_v32 = vadd.f32 %v1182_v23, %v1175_v28  ;;  %v1232_v0 = vsel %vm1178_vm4, %v1230_v42, %v4434_v63  ;;  %v4432_v4 = vrot.slane %v3725_v52, 5  ;;  %v1228_v8 = vmul.f32 %v3731_v56, %v1225_v55  ;;  %v3777_v42 = vld [vmem:[#allocation12 + $0x80] sm:$0xff] }
 0x205   : >> { %v1239_v9 = vsel %vm1186_vm5, %v1237_v57, %v4433_v60  ;;  %v1257_v14 = vrot.slane %v2312_v48, 6  ;;  %v4430_v16 = vrot.slane %v3725_v52, 6  ;;  %v1235_v18 = vmul.f32 %v3741_v1, %v1232_v0 }
 0x206   : >> { %v1191_v39 = vadd.f32 %v1190_v29, %v1183_v32  ;;  %v1264_v20 = vrot.slane %v2312_v48, 7  ;;  %v4428_v22 = vrot.slane %v3725_v52, 7  ;;  %v1252_v23 = vsel %vm1143_vm0, %v1250_v3, %v4432_v4  ;;  %v3762_v29 = vld [vmem:[%s3616_s18 + $0x50] sm:$0xff]  ;;  %v3768_v32 = vld [vmem:[#allocation12 + $0x78] sm:$0xff] }
 0x207   : >> { %v1242_v28 = vmul.f32 %v3749_v12, %v1239_v9  ;;  %v1259_v30 = vsel %vm1150_vm1, %v1257_v14, %v4430_v16  ;;  %v4427_v35 = vrot.slane %v3762_v29, 1  ;;  %v1282_v57 = vrot.slane %v3725_v52, 2  ;;  %v3794_v9 = vld [vmem:[#allocation12 + $0x90] sm:$0xff] }
 0x208   : >> { %v1204_v43 = vadd.f32 %v1203_v34, %v1191_v39  ;;  %v1275_v34 = vrot.slane %v3725_v52, 1  ;;  %v1255_v39 = vmul.f32 %v3758_v24, %v1252_v23  ;;  %v1262_v55 = vmul.f32 %v3768_v32, %v1259_v30  ;;  %v3805_v30 = vld [vmem:[#allocation12 + $0x98] sm:$0xff] }
 0x209   : >> { %v4425_v3 = vrot.slane %v3762_v29, 2  ;;  %v4426_v14 = vrot.slane %v3762_v29, 3 }
 0x20a   : >> { %v1211_v61 = vadd.f32 %v1210_v40, %v1204_v43  ;;  %v1266_v40 = vsel %vm1158_vm2, %v1264_v20, %v4428_v22  ;;  %v2316_v43 = vld [vmem:[%s3616_s18 + $0x60] sm:$0xff]  ;;  %v1277_v0 = vsel %vm1170_vm3, %v1275_v34, %v4427_v35  ;;  %v3829_v22 = vld [vmem:[%s3616_s18 + $0x88] sm:$0xff] }
 0x20b   : >> { %v1309_v34 = vrot.slane %v2316_v43, 6  ;;  %v2320_v35 = vld [vmem:[%s3616_s18 + $0x80] sm:$0xff]  ;;  %v4443_v4 = vrot.slane %v3829_v22, 5  ;;  %v1379_v59 = vrot.slane %v3829_v22, 1  ;;  %v1386_v49 = vrot.slane %v3829_v22, 2 }
 0x20c   : >> { %v1218_v7 = vadd.f32 %v1217_v45, %v1211_v61  ;;  %v3781_v45 = vld [vmem:[%s3616_s18 + $0x68] sm:$0xff]  ;;  %v1269_v61 = vmul.f32 %v3777_v42, %v1266_v40  ;;  %v3811_v40 = vld [vmem:[#allocation12 + $0xa0] sm:$0xff] }
 0x20d   : >> { %v1325_v21 = vmul.f32 %v3781_v45, %v3851_v38 }
 0x20e   : >> { %v1222_v17 = vadd.f32 %v1221_v62, %v1218_v7  ;;  %v3786_v62 = vld [vmem:[#allocation12 + $0x88] sm:$0xff]  ;;  %v1289_v7 = vrot.slane %v3725_v52, 3 }
 0x20f   : >> { %v1273_v23 = vmul.f32 %v3725_v52, %v3786_v62 }
 0x210   : >> { %v1229_v26 = vadd.f32 %v1228_v8, %v1222_v17  ;;  %v1302_v17 = vrot.slane %v2316_v43, 5 }
 0x212   : >> { %v1236_v37 = vadd.f32 %v1235_v18, %v1229_v26  ;;  %v4429_v18 = vrot.slane %v3781_v45, 5  ;;  %v1280_v26 = vmul.f32 %v3794_v9, %v1277_v0 }
 0x214   : >> { %v1243_v48 = vadd.f32 %v1242_v28, %v1236_v37  ;;  %v1284_v28 = vsel %vm1178_vm4, %v1282_v57, %v4425_v3  ;;  %v4431_v57 = vrot.slane %v3781_v45, 6 }
 0x216   : >> { %v1256_v8 = vadd.f32 %v1255_v39, %v1243_v48  ;;  %v1291_v39 = vsel %vm1186_vm5, %v1289_v7, %v4426_v14  ;;  %v1304_v48 = vsel %vm1143_vm0, %v1302_v17, %v4429_v18  ;;  %v3824_v7 = vld [vmem:[%s3616_s18 + $0x70] sm:$0xff] }
 0x217   : >> { %v1294_v3 = vmul.f32 %v3811_v40, %v1291_v39  ;;  %v1334_v39 = vrot.slane %v3781_v45, 2  ;;  %v4439_v18 = vrot.slane %v3824_v7, 2  ;;  %v4441_v16 = vrot.slane %v3824_v7, 3 }
 0x218   : >> { %v1263_v20 = vadd.f32 %v1262_v55, %v1256_v8  ;;  %v3817_v55 = vld [vmem:[#allocation12 + $0xa8] sm:$0xff]  ;;  %v1287_v8 = vmul.f32 %v3805_v30, %v1284_v28  ;;  %v1327_v28 = vrot.slane %v3781_v45, 1 }
 0x219   : >> { %v1307_v14 = vmul.f32 %v3817_v55, %v1304_v48  ;;  %v1341_v48 = vrot.slane %v3781_v45, 3 }
 0x21a   : >> { %v1270_v37 = vadd.f32 %v1269_v61, %v1263_v20  ;;  %v1316_v61 = vrot.slane %v2316_v43, 7  ;;  %v4437_v20 = vrot.slane %v3781_v45, 7  ;;  %v4438_v43 = vrot.slane %v3824_v7, 1 }
 0x21c   : >> { %v1274_v0 = vadd.f32 %v1273_v23, %v1270_v37  ;;  %v1311_v23 = vsel %vm1150_vm1, %v1309_v34, %v4431_v57  ;;  %v3837_v37 = vld [vmem:[#allocation12 + $0xb0] sm:$0xff]  ;;  %v1318_v34 = vsel %vm1158_vm2, %v1316_v61, %v4437_v20  ;;  %v1354_v57 = vrot.slane %v2320_v35, 5 }
 0x21d   : >> { %v1314_v63 = vmul.f32 %v3837_v37, %v1311_v23  ;;  %v1336_v61 = vsel %vm1178_vm4, %v1334_v39, %v4439_v18  ;;  %v3864_v20 = vld [vmem:[#allocation12 + $0xd0] sm:$0xff]  ;;  %v3870_v23 = vld [vmem:[#allocation12 + $0xd8] sm:$0xff]  ;;  %v4449_v39 = vrot.slane %v3829_v22, 6 }
 0x21e   : >> { %v1281_v17 = vadd.f32 %v1280_v26, %v1274_v0  ;;  %v3847_v0 = vld [vmem:[#allocation12 + $0xb8] sm:$0xff]  ;;  %4485 = vst [vmem:[#allocation22_spill] sm:$0xff] %v3870_v23  ;;  %v1339_v15 = vmul.f32 %v3864_v20, %v1336_v61 }
 0x21f   : >> { %v1321_v27 = vmul.f32 %v3847_v0, %v1318_v34  ;;  %v3876_v34 = vld [vmem:[#allocation12 + $0xe0] sm:$0xff]  ;;  %v3879_v18 = vld [vmem:[#allocation12 + $0xf8] sm:$0xff] }
 0x220   : >> { %v1288_v26 = vadd.f32 %v1287_v8, %v1281_v17  ;;  %v1329_v8 = vsel %vm1170_vm3, %v1327_v28, %v4438_v43  ;;  %v3858_v17 = vld [vmem:[#allocation12 + $0xc8] sm:$0xff]  ;;  %v1356_v28 = vsel %vm1143_vm0, %v1354_v57, %v4443_v4  ;;  %4486 = vst [vmem:[#allocation23_spill] sm:$0xff] %v3876_v34  ;;  %v1361_v43 = vrot.slane %v2320_v35, 6  ;;  %4487 = vst [vmem:[#allocation24_spill] sm:$0xff] %v3879_v18  ;;  %v3888_v4 = vld [vmem:[%s3616_s18 + $0x90] sm:$0xff] }
 0x221   : >> { %v1359_v11 = vmul.f32 %v3876_v34, %v1356_v28  ;;  %v3893_v6 = vmul.f32 %v3829_v22, %v3879_v18  ;;  %v4488_v18 = vrot.slane %v3620_v44, 6 }
 0x222   : >> { %v1295_v60 = vadd.f32 %v1294_v3, %v1288_v26  ;;  %v1343_v3 = vsel %vm1186_vm5, %v1341_v48, %v4441_v16  ;;  %v1368_v48 = vrot.slane %v2320_v35, 7  ;;  %v4452_v16 = vrot.slane %v3829_v22, 7 }
 0x223   : >> { %v1346_v57 = vmul.f32 %v3870_v23, %v1343_v3  ;;  %v1511_v35 = vrot.slane %v3632_v51, 5  ;;  %v1509_v3 = vld [vmem:[%s3616_s18 + $0x18] sm:$0xff] }
 0x224   : >> { %v1308_v26 = vadd.f32 %v1307_v14, %v1295_v60  ;;  %v1332_v14 = vmul.f32 %v3858_v17, %v1329_v8  ;;  %v3901_v8 = vld [vmem:[#allocation12 + $0xe8] sm:$0xff]  ;;  %v1370_v28 = vsel %vm1158_vm2, %v1368_v48, %v4452_v16  ;;  %v1544_v23 = vrot.slane %v1509_v3, 3 }
 0x226   : >> { %v1315_v60 = vadd.f32 %v1314_v63, %v1308_v26  ;;  %v1363_v63 = vsel %vm1150_vm1, %v1361_v43, %v4449_v39  ;;  %v1517_v26 = vrot.slane %v3632_v51, 6  ;;  %v1523_v43 = vrot.slane %v3632_v51, 7  ;;  %v3928_v39 = vld [vmem:[#allocation12 + $0xf0] sm:$0xff] }
 0x227   : >> { %v1366_v48 = vmul.f32 %v3901_v8, %v1363_v63  ;;  %v1529_v63 = vmul.f32 %v3646_v58, %v3632_v51  ;;  %v1373_v58 = vmul.f32 %v3928_v39, %v1370_v28 }
 0x228   : >> { %v1322_v53 = vadd.f32 %v1321_v27, %v1315_v60  ;;  %v1512_v27 = vsel %vm1143_vm0, %v1140_v46, %v1511_v35  ;;  %v1518_v34 = vsel %vm1150_vm1, %v4488_v18, %v1517_v26  ;;  %v4489_v46 = vrot.slane %v3620_v44, 7 }
 0x229   : >> { %v1514_v61 = vmul.f32 %v1512_v27, %v3626_v47  ;;  %v1520_v16 = vmul.f32 %v1518_v34, %v3629_v50  ;;  %v1538_v27 = vrot.slane %v1509_v3, 2  ;;  %v1393_v18 = vrot.slane %v3829_v22, 3 }
 0x22a   : >> { %v1326_v60 = vadd.f32 %v1325_v21, %v1322_v53  ;;  %v1524_v53 = vsel %vm1158_vm2, %v4489_v46, %v1523_v43  ;;  %v1532_v21 = vrot.slane %v1509_v3, 1  ;;  %v4490_v50 = vrot.slane %v3632_v51, 1  ;;  %v2324_v43 = vld [vmem:[%s3616_s18 + $0xa0] sm:$0xff] }
 0x22b   : >> { %v1526_v47 = vmul.f32 %v1524_v53, %v3635_v54  ;;  %v1521_v26 = vadd.f32 %v1520_v16, %v1514_v61  ;;  %v4491_v54 = vrot.slane %v3632_v51, 2  ;;  %v1553_v16 = vrot.slane %v3706_v33, 5 }
 0x22c   : >> { %v1333_v35 = vadd.f32 %v1332_v14, %v1326_v60  ;;  %v1533_v44 = vsel %vm1170_vm3, %v4490_v50, %v1532_v21  ;;  %v3941_v60 = vld [vmem:[%s3616_s18 + $0xa8] sm:$0xff]  ;;  %v4492_v61 = vrot.slane %v3888_v4, 1  ;;  %v1406_v14 = vrot.slane %v2324_v43, 5 }
 0x22d   : >> { %v1539_v3 = vsel %vm1178_vm4, %v4491_v54, %v1538_v27  ;;  %v1535_v53 = vmul.f32 %v1533_v44, %v3666_v5  ;;  %v4494_v27 = vrot.slane %v3632_v51, 3  ;;  %v1559_v54 = vrot.slane %v3706_v33, 6 }
 0x22e   : >> { %v1340_v34 = vadd.f32 %v1339_v15, %v1333_v35  ;;  %v1381_v46 = vsel %vm1170_vm3, %v1379_v59, %v4492_v61  ;;  %v1527_v15 = vadd.f32 %v1526_v47, %v1521_v26  ;;  %v4493_v35 = vrot.slane %v3888_v4, 2  ;;  %v3965_v26 = vld [vmem:[#allocation12 + $0x100] sm:$0xff] }
 0x22f   : >> { %v1545_v28 = vsel %vm1186_vm5, %v4494_v27, %v1544_v23  ;;  %v1407_v59 = vrot.slane %v3941_v60, 5  ;;  %v1541_v5 = vmul.f32 %v1539_v3, %v3678_v13  ;;  %v4495_v44 = vrot.slane %v3888_v4, 3  ;;  %v2334_v13 = vld [vmem:[%s3616_s18 + $0x38] sm:$0xff] }
 0x230   : >> { %v1347_v21 = vadd.f32 %v1346_v57, %v1340_v34  ;;  %v1388_v50 = vsel %vm1178_vm4, %v1386_v49, %v4493_v35  ;;  %v1530_v47 = vadd.f32 %v1529_v63, %v1527_v15  ;;  %v4496_v51 = vrot.slane %v3659_v2, 5  ;;  %v3981_v35 = vld [vmem:[#allocation12 + $0x110] sm:$0xff] }
 0x231   : >> { %v1395_v49 = vsel %vm1186_vm5, %v1393_v18, %v4495_v44  ;;  %v1565_v34 = vrot.slane %v3706_v33, 7  ;;  %v1413_v61 = vrot.slane %v2324_v43, 6  ;;  %v1420_v18 = vrot.slane %v2324_v43, 7  ;;  %v3994_v43 = vld [vmem:[#allocation12 + $0x118] sm:$0xff] }
 0x232   : >> { %v1360_v57 = vadd.f32 %v1359_v11, %v1347_v21  ;;  %v1554_v23 = vsel %vm1143_vm0, %v4496_v51, %v1553_v16  ;;  %v1536_v15 = vadd.f32 %v1535_v53, %v1530_v47  ;;  %v1547_v11 = vmul.f32 %v1545_v28, %v3687_v19  ;;  %v3979_v21 = vld [vmem:[#allocation12 + $0x108] sm:$0xff] }
 0x233   : >> { %v4455_v27 = vrot.slane %v3941_v60, 7  ;;  %v4497_v44 = vrot.slane %v3659_v2, 6  ;;  %v1384_v51 = vmul.f32 %v3965_v26, %v1381_v46  ;;  %v1556_v53 = vmul.f32 %v1554_v23, %v3695_v25 }
 0x234   : >> { %v1367_v3 = vadd.f32 %v1366_v48, %v1360_v57  ;;  %v1542_v63 = vadd.f32 %v1541_v5, %v1536_v15  ;;  %v1408_v48 = vsel %vm1143_vm0, %v1406_v14, %v1407_v59  ;;  %v4498_v28 = vrot.slane %v3659_v2, 7  ;;  %v4008_v15 = vld [vmem:[#allocation12 + $0x120] sm:$0xff] }
 0x235   : >> { %v1560_v16 = vsel %vm1150_vm1, %v4497_v44, %v1559_v54  ;;  %v1574_v54 = vrot.slane %v2334_v13, 1  ;;  %v1391_v46 = vmul.f32 %v3979_v21, %v1388_v50  ;;  %v1398_v5 = vmul.f32 %v3981_v35, %v1395_v49  ;;  %v4014_v50 = vld [vmem:[#allocation12 + $0x128] sm:$0xff] }
 0x236   : >> { %v1374_v19 = vadd.f32 %v1373_v58, %v1367_v3  ;;  %v1566_v47 = vsel %vm1158_vm2, %v4498_v28, %v1565_v34  ;;  %v1548_v25 = vadd.f32 %v1547_v11, %v1542_v63  ;;  %v1562_v58 = vmul.f32 %v1560_v16, %v3703_v31  ;;  %v4017_v34 = vld [vmem:[%s3616_s18 + $0xb0] sm:$0xff] }
 0x237   : >> { %v4499_v23 = vrot.slane %v3941_v60, 6  ;;  %v1422_v2 = vsel %vm1158_vm2, %v1420_v18, %v4455_v27  ;;  %v1580_v49 = vrot.slane %v2334_v13, 2  ;;  %v1431_v31 = vrot.slane %v3941_v60, 1 }
 0x238   : >> { %v1378_v57 = vadd.f32 %v3893_v6, %v1374_v19  ;;  %v1411_v6 = vmul.f32 %v3994_v43, %v1408_v48  ;;  %v1557_v63 = vadd.f32 %v1556_v53, %v1548_v25  ;;  %v4454_v3 = vrot.slane %v4017_v34, 1 }
 0x239   : >> { %v1415_v14 = vsel %vm1150_vm1, %v1413_v61, %v4499_v23  ;;  %v1568_v61 = vmul.f32 %v1566_v47, %v3713_v36  ;;  %v4500_v44 = vrot.slane %v3706_v33, 1  ;;  %v1586_v16 = vrot.slane %v2334_v13, 3 }
 0x23a   : >> { %v1385_v11 = vadd.f32 %v1384_v51, %v1378_v57  ;;  %v1418_v19 = vmul.f32 %v4008_v15, %v1415_v14  ;;  %v1425_v28 = vmul.f32 %v4014_v50, %v1422_v2  ;;  %v1563_v48 = vadd.f32 %v1562_v58, %v1557_v63  ;;  %v2328_v51 = vld [vmem:[%s3616_s18 + $0xc0] sm:$0xff]  ;;  %v4041_v14 = vld [vmem:[%s3616_s18 + $0xc8] sm:$0xff]  ;;  %v4044_v2 = vld [vmem:[#allocation12 + $0x130] sm:$0xff] }
 0x23b   : >> { %v1575_v18 = vsel %vm1170_vm3, %v4500_v44, %v1574_v54  ;;  %v1571_v53 = vmul.f32 %v3706_v33, %v3718_v41  ;;  %v1438_v36 = vrot.slane %v3941_v60, 2  ;;  %v4501_v47 = vrot.slane %v3706_v33, 2 }
 0x23c   : >> { %v1392_v25 = vadd.f32 %v1391_v46, %v1385_v11  ;;  %v1595_v54 = vrot.slane %v3762_v29, 5  ;;  %v4458_v13 = vrot.slane %v4017_v34, 2  ;;  %v1445_v23 = vrot.slane %v3941_v60, 3 }
 0x23d   : >> { %v1581_v57 = vsel %vm1178_vm4, %v4501_v47, %v1580_v49  ;;  %v1569_v58 = vadd.f32 %v1568_v61, %v1563_v48  ;;  %v1577_v41 = vmul.f32 %v1575_v18, %v3731_v56  ;;  %v1433_v63 = vsel %vm1170_vm3, %v1431_v31, %v4454_v3  ;;  %v4050_v49 = vld [vmem:[#allocation12 + $0x138] sm:$0xff] }
 0x23e   : >> { %v1399_v46 = vadd.f32 %v1398_v5, %v1392_v25  ;;  %v4502_v11 = vrot.slane %v3706_v33, 3  ;;  %v1601_v61 = vrot.slane %v3762_v29, 6  ;;  %v4456_v56 = vrot.slane %v4017_v34, 3 }
 0x23f   : >> { %v1458_v5 = vrot.slane %v2328_v51, 5  ;;  %v1572_v18 = vadd.f32 %v1571_v53, %v1569_v58  ;;  %v1583_v48 = vmul.f32 %v1581_v57, %v3741_v1  ;;  %v4457_v47 = vrot.slane %v4041_v14, 5  ;;  %v2337_v58 = vld [vmem:[%s3616_s18 + $0x58] sm:$0xff] }
 0x240   : >> { %v1587_v44 = vsel %vm1186_vm5, %v4502_v11, %v1586_v16  ;;  %v1412_v25 = vadd.f32 %v1411_v6, %v1399_v46  ;;  %v4503_v31 = vrot.slane %v3725_v52, 5  ;;  %v1607_v33 = vrot.slane %v3762_v29, 7 }
 0x241   : >> { %v1429_v16 = vmul.f32 %v3941_v60, %v4044_v2  ;;  %v1436_v11 = vmul.f32 %v4050_v49, %v1433_v63  ;;  %v1578_v27 = vadd.f32 %v1577_v41, %v1572_v18  ;;  %v1589_v53 = vmul.f32 %v1587_v44, %v3749_v12  ;;  %v4092_v18 = vld [vmem:[#allocation12 + $0x150] sm:$0xff] }
 0x242   : >> { %v1596_v3 = vsel %vm1143_vm0, %v4503_v31, %v1595_v54  ;;  %v1419_v1 = vadd.f32 %v1418_v19, %v1412_v25  ;;  %v1440_v6 = vsel %vm1178_vm4, %v1438_v36, %v4458_v13  ;;  %v1465_v57 = vrot.slane %v2328_v51, 6  ;;  %v4078_v31 = vld [vmem:[#allocation12 + $0x140] sm:$0xff]  ;;  %v4086_v36 = vld [vmem:[#allocation12 + $0x148] sm:$0xff] }
 0x243   : >> { %v4504_v54 = vrot.slane %v3725_v52, 6  ;;  %v1447_v12 = vsel %vm1186_vm5, %v1445_v23, %v4456_v56  ;;  %v1466_v19 = vrot.slane %v4041_v14, 6  ;;  %v1584_v41 = vadd.f32 %v1583_v48, %v1578_v27 }
 0x244   : >> { %v1598_v63 = vmul.f32 %v1596_v3, %v3758_v24  ;;  %v1426_v44 = vadd.f32 %v1425_v28, %v1419_v1  ;;  %v4505_v25 = vrot.slane %v3725_v52, 7  ;;  %v1472_v56 = vrot.slane %v2328_v51, 7 }
 0x245   : >> { %v1602_v46 = vsel %vm1150_vm1, %v4504_v54, %v1601_v61  ;;  %v1460_v61 = vsel %vm1143_vm0, %v1458_v5, %v4457_v47  ;;  %v1616_v54 = vrot.slane %v2337_v58, 1  ;;  %v1473_v24 = vrot.slane %v4041_v14, 7 }
 0x246   : >> { %v1608_v23 = vsel %vm1158_vm2, %v4505_v25, %v1607_v33  ;;  %v1590_v27 = vadd.f32 %v1589_v53, %v1584_v41  ;;  %v1604_v3 = vmul.f32 %v1602_v46, %v3768_v32  ;;  %v1430_v28 = vadd.f32 %v1429_v16, %v1426_v44  ;;  %v4108_v53 = vld [vmem:[#allocation12 + $0x158] sm:$0xff]  ;;  %v4115_v46 = vld [vmem:[%s3616_s18 + $0xd0] sm:$0xff] }
 0x247   : >> { %v1443_v48 = vmul.f32 %v4078_v31, %v1440_v6  ;;  %v1622_v1 = vrot.slane %v2337_v58, 2  ;;  %v1450_v5 = vmul.f32 %v4086_v36, %v1447_v12  ;;  %v1463_v47 = vmul.f32 %v4092_v18, %v1460_v61 }
 0x248   : >> { %v1599_v52 = vadd.f32 %v1598_v63, %v1590_v27  ;;  %v1610_v13 = vmul.f32 %v1608_v23, %v3777_v42  ;;  %v1437_v33 = vadd.f32 %v1436_v11, %v1430_v28  ;;  %v1467_v51 = vsel %vm1150_vm1, %v1465_v57, %v1466_v19  ;;  %v4121_v11 = vld [vmem:[#allocation12 + $0x160] sm:$0xff] }
 0x249   : >> { %v4506_v32 = vrot.slane %v3762_v29, 1  ;;  %v1628_v6 = vrot.slane %v2337_v58, 3  ;;  %v1474_v42 = vsel %vm1158_vm2, %v1472_v56, %v1473_v24  ;;  %v1483_v12 = vrot.slane %v4041_v14, 1 }
 0x24a   : >> { %v1605_v57 = vadd.f32 %v1604_v3, %v1599_v52  ;;  %v1613_v41 = vmul.f32 %v3762_v29, %v3786_v62  ;;  %v1444_v63 = vadd.f32 %v1443_v48, %v1437_v33  ;;  %v1484_v44 = vrot.slane %v4115_v46, 1  ;;  %v4140_v52 = vld [vmem:[#allocation12 + $0x168] sm:$0xff] }
 0x24b   : >> { %v1617_v16 = vsel %vm1170_vm3, %v4506_v32, %v1616_v54  ;;  %v4507_v58 = vrot.slane %v3762_v29, 2  ;;  %v1637_v25 = vrot.slane %v3824_v7, 5  ;;  %v1470_v56 = vmul.f32 %v4108_v53, %v1467_v51 }
 0x24c   : >> { %v1611_v23 = vadd.f32 %v1610_v13, %v1605_v57  ;;  %v1619_v54 = vmul.f32 %v1617_v16, %v3794_v9  ;;  %v1451_v27 = vadd.f32 %v1450_v5, %v1444_v63  ;;  %v1477_v3 = vmul.f32 %v4121_v11, %v1474_v42 }
 0x24d   : >> { %v1623_v61 = vsel %vm1178_vm4, %v4507_v58, %v1622_v1  ;;  %v4508_v62 = vrot.slane %v3762_v29, 3  ;;  %v1643_v48 = vrot.slane %v3824_v7, 6  ;;  %v1490_v1 = vrot.slane %v4041_v14, 2 }
 0x24e   : >> { %v1491_v33 = vrot.slane %v4115_v46, 2  ;;  %v1614_v13 = vadd.f32 %v1613_v41, %v1611_v23  ;;  %v1625_v9 = vmul.f32 %v1623_v61, %v3805_v30  ;;  %v1464_v5 = vadd.f32 %v1463_v47, %v1451_v27  ;;  %v2340_v41 = vld [vmem:[%s3616_s18 + $0x78] sm:$0xff] }
 0x24f   : >> { %v1629_v28 = vsel %vm1186_vm5, %v4508_v62, %v1628_v6  ;;  %v1485_v29 = vsel %vm1170_vm3, %v1483_v12, %v1484_v44  ;;  %v4509_v51 = vrot.slane %v3781_v45, 5  ;;  %v1649_v16 = vrot.slane %v3824_v7, 7  ;;  %v4154_v6 = vld [vmem:[#allocation12 + $0x170] sm:$0xff]  ;;  %v4170_v23 = vld [vmem:[#allocation12 + $0x178] sm:$0xff] }
 0x250   : >> { %v1497_v42 = vrot.slane %v4041_v14, 3  ;;  %v1498_v57 = vrot.slane %v4115_v46, 3  ;;  %v1620_v30 = vadd.f32 %v1619_v54, %v1614_v13  ;;  %v1631_v47 = vmul.f32 %v1629_v28, %v3811_v40  ;;  %v4182_v13 = vld [vmem:[#allocation12 + $0x180] sm:$0xff] }
 0x251   : >> { %v1638_v32 = vsel %vm1143_vm0, %v4509_v51, %v1637_v25  ;;  %v1471_v63 = vadd.f32 %v1470_v56, %v1464_v5  ;;  %v1481_v12 = vmul.f32 %v4041_v14, %v4140_v52  ;;  %v4510_v58 = vrot.slane %v3781_v45, 6 }
 0x252   : >> { %v1492_v25 = vsel %vm1178_vm4, %v1490_v1, %v1491_v33  ;;  %v1626_v54 = vadd.f32 %v1625_v9, %v1620_v30  ;;  %v1640_v40 = vmul.f32 %v1638_v32, %v3817_v55  ;;  %v1488_v27 = vmul.f32 %v4154_v6, %v1485_v29 }
 0x253   : >> { %v1644_v61 = vsel %vm1150_vm1, %v4510_v58, %v1643_v48  ;;  %v1478_v56 = vadd.f32 %v1477_v3, %v1471_v63  ;;  %v4511_v62 = vrot.slane %v3781_v45, 7  ;;  %v1658_v48 = vrot.slane %v2340_v41, 1 }
 0x254   : >> { %v1499_v1 = vsel %vm1186_vm5, %v1497_v42, %v1498_v57  ;;  %v1632_v9 = vadd.f32 %v1631_v47, %v1626_v54  ;;  %v1646_v55 = vmul.f32 %v1644_v61, %v3837_v37  ;;  %v1495_v3 = vmul.f32 %v4170_v23, %v1492_v25 }
 0x255   : >> { %v1650_v28 = vsel %vm1158_vm2, %v4511_v62, %v1649_v16  ;;  %v1482_v5 = vadd.f32 %v1481_v12, %v1478_v56  ;;  %v1664_v29 = vrot.slane %v2340_v41, 2  ;;  %v1502_v16 = vmul.f32 %v4182_v13, %v1499_v1  ;;  %v4516_v1 = vld [vmem:[#allocation22_spill] sm:$0xff] }
 0x256   : >> { %v1641_v51 = vadd.f32 %v1640_v40, %v1632_v9  ;;  %v1652_v45 = vmul.f32 %v1650_v28, %v3847_v0  ;;  %v4512_v30 = vrot.slane %v3824_v7, 1  ;;  %v1670_v63 = vrot.slane %v2340_v41, 3 }
 0x257   : >> { %v1489_v32 = vadd.f32 %v1488_v27, %v1482_v5  ;;  %v1655_v37 = vmul.f32 %v3824_v7, %v3851_v38  ;;  %v4513_v58 = vrot.slane %v3824_v7, 2  ;;  %v1679_v61 = vrot.slane %v3888_v4, 5 }
 0x258   : >> { %v1659_v42 = vsel %vm1170_vm3, %v4512_v30, %v1658_v48  ;;  %v1647_v47 = vadd.f32 %v1646_v55, %v1641_v51  ;;  %v4514_v56 = vrot.slane %v3824_v7, 3  ;;  %v1685_v38 = vrot.slane %v3888_v4, 6  ;;  %v2343_v55 = vld [vmem:[%s3616_s18 + $0x98] sm:$0xff] }
 0x259   : >> { %v1496_v12 = vadd.f32 %v1495_v3, %v1489_v32  ;;  %v1665_v0 = vsel %vm1178_vm4, %v4513_v58, %v1664_v29  ;;  %v1661_v54 = vmul.f32 %v1659_v42, %v3858_v17  ;;  %v4515_v28 = vrot.slane %v3829_v22, 5  ;;  %v4518_v29 = vld [vmem:[#allocation23_spill] sm:$0xff] }
 0x25a   : >> { %v1653_v25 = vadd.f32 %v1652_v45, %v1647_v47  ;;  %v1671_v41 = vsel %vm1186_vm5, %v4514_v56, %v1670_v63  ;;  %v1667_v62 = vmul.f32 %v1665_v0, %v3864_v20  ;;  %v1691_v48 = vrot.slane %v3888_v4, 7 }
 0x25b   : >> { %v1503_v40 = vadd.f32 %v1502_v16, %v1496_v12  ;;  %v1680_v17 = vsel %vm1143_vm0, %v4515_v28, %v1679_v61  ;;  %v1673_v9 = vmul.f32 %v1671_v41, %v4516_v1  ;;  %v4517_v5 = vrot.slane %v3829_v22, 6  ;;  %v2346_v1 = vld [vmem:[%s3616_s18 + $0xb8] sm:$0xff] }
 0x25c   : >> { %v1656_v27 = vadd.f32 %v1655_v37, %v1653_v25  ;;  %v1682_v51 = vmul.f32 %v1680_v17, %v4518_v29  ;;  %v4519_v45 = vrot.slane %v3829_v22, 7  ;;  %v1700_v16 = vrot.slane %v2343_v55, 1  ;;  %v4521_v22 = vld [vmem:[#allocation24_spill] sm:$0xff] }
 0x25d   : >> { %1506 = vst [vmem:[%s4207_s27] sm:$0xff] %v1503_v40  ;;  %v1686_v20 = vsel %vm1150_vm1, %v4517_v5, %v1685_v38  ;;  %v1706_v63 = vrot.slane %v2343_v55, 2  ;;  %v4520_v12 = vrot.slane %v3888_v4, 1  ;;  %v1712_v0 = vrot.slane %v2343_v55, 3 }
 0x25e   : >> { %v1662_v7 = vadd.f32 %v1661_v54, %v1656_v27  ;;  %v1692_v32 = vsel %vm1158_vm2, %v4519_v45, %v1691_v48  ;;  %v1688_v42 = vmul.f32 %v1686_v20, %v3901_v8  ;;  %v1697_v25 = vmul.f32 %v3888_v4, %v4521_v22 }
 0x25f   : >> { %v1694_v37 = vmul.f32 %v1692_v32, %v3928_v39  ;;  %v1701_v58 = vsel %vm1170_vm3, %v4520_v12, %v1700_v16  ;;  %v4522_v54 = vrot.slane %v3888_v4, 2  ;;  %v1721_v40 = vrot.slane %v4017_v34, 5 }
 0x260   : >> { %v1668_v3 = vadd.f32 %v1667_v62, %v1662_v7  ;;  %v1703_v39 = vmul.f32 %v1701_v58, %v3965_v26  ;;  %v4523_v41 = vrot.slane %v3888_v4, 3  ;;  %v1727_v27 = vrot.slane %v4017_v34, 6 }
 0x261   : >> { %v1707_v8 = vsel %vm1178_vm4, %v4522_v54, %v1706_v63  ;;  %v1722_v17 = vsel %vm1143_vm0, %v1407_v59, %v1721_v40  ;;  %v1733_v48 = vrot.slane %v4017_v34, 7  ;;  %v4524_v4 = vrot.slane %v3941_v60, 6 }
 0x262   : >> { %v1674_v30 = vadd.f32 %v1673_v9, %v1668_v3  ;;  %v1713_v38 = vsel %vm1186_vm5, %v4523_v41, %v1712_v0  ;;  %v1709_v28 = vmul.f32 %v1707_v8, %v3979_v21  ;;  %v1724_v5 = vmul.f32 %v1722_v17, %v3994_v43  ;;  %v2349_v8 = vld [vmem:[%s3616_s18 + $0xd8] sm:$0xff] }
 0x263   : >> { %v1715_v26 = vmul.f32 %v1713_v38, %v3981_v35  ;;  %v1728_v9 = vsel %vm1150_vm1, %v4524_v4, %v1727_v27  ;;  %v4525_v21 = vrot.slane %v3941_v60, 7  ;;  %v1742_v59 = vrot.slane %v2346_v1, 1 }
 0x264   : >> { %v1683_v47 = vadd.f32 %v1682_v51, %v1674_v30  ;;  %v1730_v29 = vmul.f32 %v1728_v9, %v4008_v15  ;;  %v1748_v51 = vrot.slane %v2346_v1, 2  ;;  %v4526_v32 = vrot.slane %v4017_v34, 1  ;;  %v1838_v9 = vld [vmem:[#allocation14 + $0x20] sm:$0xff] (%p1130_p4) }
 0x265   : >> { %v1734_v20 = vsel %vm1158_vm2, %v4525_v21, %v1733_v48  ;;  %v1754_v43 = vrot.slane %v2346_v1, 3  ;;  %v1739_v60 = vmul.f32 %v4017_v34, %v4044_v2  ;;  %v1763_v63 = vrot.slane %v4115_v46, 5  ;;  %v1841_v21 = vld [vmem:[#allocation14 + $0x38] sm:$0xff] (%p1130_p4) }
 0x266   : >> { %v1689_v61 = vadd.f32 %v1688_v42, %v1683_v47  ;;  %v1736_v45 = vmul.f32 %v1734_v20, %v4014_v50  ;;  %v1743_v16 = vsel %vm1170_vm3, %v4526_v32, %v1742_v59  ;;  %v4527_v42 = vrot.slane %v4017_v34, 2  ;;  %v1842_v59 = vld [vmem:[#allocation14 + $0x40] sm:$0xff] (%p1130_p4) }
 0x267   : >> { %v1745_v50 = vmul.f32 %v1743_v16, %v4050_v49  ;;  %v1769_v58 = vrot.slane %v4115_v46, 6  ;;  %v1790_v27 = vrot.slane %v2349_v8, 2  ;;  %v1846_v16 = vld [vmem:[#allocation14 + $0x60] sm:$0xff] (%p1130_p4) }
 0x268   : >> { %v1695_v56 = vadd.f32 %v1694_v37, %v1689_v61  ;;  %v1749_v15 = vsel %vm1178_vm4, %v4527_v42, %v1748_v51  ;;  %v4528_v37 = vrot.slane %v4017_v34, 3  ;;  %v4529_v61 = vrot.slane %v4041_v14, 5  ;;  %v1849_v42 = vld [vmem:[#allocation14 + $0x78] sm:$0xff] (%p1130_p4) }
 0x269   : >> { %v1751_v2 = vmul.f32 %v1749_v15, %v4078_v31  ;;  %v1770_v34 = vsel %vm1150_vm1, %v1466_v19, %v1769_v58  ;;  %v1781_v14 = vmul.f32 %v4115_v46, %v4140_v52 }
 0x26a   : >> { %v1698_v62 = vadd.f32 %v1697_v25, %v1695_v56  ;;  %v1755_v12 = vsel %vm1186_vm5, %v4528_v37, %v1754_v43  ;;  %v1764_v22 = vsel %vm1143_vm0, %v4529_v61, %v1763_v63  ;;  %v1775_v25 = vrot.slane %v4115_v46, 7  ;;  %v1835_v46 = vld [vmem:[#allocation14 + $0x8] sm:$0xff] (%p1130_p4) }
 0x26b   : >> { %v1757_v49 = vmul.f32 %v1755_v12, %v4086_v36  ;;  %v1766_v56 = vmul.f32 %v1764_v22, %v4092_v18  ;;  %v1772_v38 = vmul.f32 %v1770_v34, %v4108_v53  ;;  %v1796_v18 = vrot.slane %v2349_v8, 3  ;;  %v1847_v43 = vld [vmem:[#allocation14 + $0x68] sm:$0xff] (%p1130_p4) }
 0x26c   : >> { %v1704_v7 = vadd.f32 %v1703_v39, %v1698_v62  ;;  %v1776_v31 = vsel %vm1158_vm2, %v1473_v24, %v1775_v25  ;;  %v1784_v39 = vrot.slane %v2349_v8, 1  ;;  %v1791_v24 = vsel %vm1178_vm4, %v1491_v33, %v1790_v27  ;;  %v1834_v33 = vld [vmem:[#allocation14] sm:$0xff] (%p1130_p4) }
 0x26d   : >> { %v1778_v62 = vmul.f32 %v1776_v31, %v4121_v11  ;;  %v1797_v11 = vsel %vm1186_vm5, %v1498_v57, %v1796_v18  ;;  %v2740_v10 = vpack.c.bf16 (%p1130_p4), %v1835_v46, %v1834_v33  ;;  %v1837_v57 = vld [vmem:[#allocation14 + $0x18] sm:$0xff] (%p1130_p4) }
 0x26e   : >> { %v1710_v55 = vadd.f32 %v1709_v28, %v1704_v7  ;;  %v1785_v19 = vsel %vm1170_vm3, %v1484_v44, %v1784_v39  ;;  %v1793_v44 = vmul.f32 %v1791_v24, %v4170_v23  ;;  %v1839_v23 = vld [vmem:[#allocation14 + $0x28] sm:$0xff] (%p1130_p4) }
 0x26f   : >> { %v1787_v17 = vmul.f32 %v1785_v19, %v4154_v6  ;;  %v1836_v6 = vld [vmem:[#allocation14 + $0x10] sm:$0xff] (%p1130_p4)  ;;  %2741 = vmatprep.subr.bf16.mxu0 (%p1130_p4), %v2740_v10  ;;  %2772 = vmatprep.subr.bf16.mxu1 (%p1130_p4), %v2740_v10 }
 0x270   : >> { %v1716_v3 = vadd.f32 %v1715_v26, %v1710_v55  ;;  %v1799_v26 = vmul.f32 %v1797_v11, %v4182_v13  ;;  %v2744_v4 = vpack.c.bf16 (%p1130_p4), %v1837_v57, %v1836_v6  ;;  %2743 = vmatpush3.bf16.msra.mxu0 (%p1130_p4), %v2740_v10  ;;  %2780 = vmatpush3.bf16.msra.mxu1 (%p1130_p4), %v2740_v10 }
 0x271   : > { %v2748_v13 = vpack.c.bf16 (%p1130_p4), %v1839_v23, %v1838_v9 }
 0x272   : >> { %v1725_v35 = vadd.f32 %v1724_v5, %v1716_v3  ;;  %2745 = vmatprep.subr.bf16.mxu0 (%p1130_p4), %v2744_v4  ;;  %2773 = vmatprep.subr.bf16.mxu1 (%p1130_p4), %v2744_v4  ;;  %v1840_v5 = vld [vmem:[#allocation14 + $0x30] sm:$0xff] (%p1130_p4)  ;;  %v1843_v3 = vld [vmem:[#allocation14 + $0x48] sm:$0xff] (%p1130_p4) }
 0x273   : > { %v2752_v20 = vpack.c.bf16 (%p1130_p4), %v1841_v21, %v1840_v5  ;;  %v2756_v51 = vpack.c.bf16 (%p1130_p4), %v1843_v3, %v1842_v59 }
 0x274   : >> { %v1731_v30 = vadd.f32 %v1730_v29, %v1725_v35  ;;  %2747 = vmatpush3.bf16.msra.mxu0 (%p1130_p4), %v2744_v4  ;;  %2781 = vmatpush3.bf16.msra.mxu1 (%p1130_p4), %v2744_v4  ;;  %v1844_v35 = vld [vmem:[#allocation14 + $0x50] sm:$0xff] (%p1130_p4) }
 0x275   : > { %2749 = vmatprep.subr.bf16.mxu0 (%p1130_p4), %v2748_v13  ;;  %2774 = vmatprep.subr.bf16.mxu1 (%p1130_p4), %v2748_v13 }
 0x276   : >> { %v1737_v47 = vadd.f32 %v1736_v45, %v1731_v30  ;;  %v1845_v45 = vld [vmem:[#allocation14 + $0x58] sm:$0xff] (%p1130_p4)  ;;  %v2764_v30 = vpack.c.bf16 (%p1130_p4), %v1847_v43, %v1846_v16 }
 0x277   : > { %v2760_v32 = vpack.c.bf16 (%p1130_p4), %v1845_v45, %v1844_v35 }
 0x278   : >> { %v1740_v0 = vadd.f32 %v1739_v60, %v1737_v47  ;;  %2751 = vmatpush3.bf16.msra.mxu0 (%p1130_p4), %v2748_v13  ;;  %2782 = vmatpush3.bf16.msra.mxu1 (%p1130_p4), %v2748_v13  ;;  %v1848_v60 = vld [vmem:[#allocation14 + $0x70] sm:$0xff] (%p1130_p4) }
 0x279   : > { %2753 = vmatprep.subr.bf16.mxu0 (%p1130_p4), %v2752_v20  ;;  %2775 = vmatprep.subr.bf16.mxu1 (%p1130_p4), %v2752_v20  ;;  %v2768_v15 = vpack.c.bf16 (%p1130_p4), %v1849_v42, %v1848_v60 }
 0x27a   : >> { %v1746_v54 = vadd.f32 %v1745_v50, %v1740_v0 }
 0x27c   : >> { %v1752_v40 = vadd.f32 %v1751_v2, %v1746_v54  ;;  %2755 = vmatpush3.bf16.msra.mxu0 (%p1130_p4), %v2752_v20  ;;  %2783 = vmatpush3.bf16.msra.mxu1 (%p1130_p4), %v2752_v20 }
 0x27d   : > { %2757 = vmatprep.subr.bf16.mxu0 (%p1130_p4), %v2756_v51  ;;  %2776 = vmatprep.subr.bf16.mxu1 (%p1130_p4), %v2756_v51 }
 0x27e   : >> { %v1758_v41 = vadd.f32 %v1757_v49, %v1752_v40 }
 0x280   : >> { %v1767_v36 = vadd.f32 %v1766_v56, %v1758_v41  ;;  %2759 = vmatpush3.bf16.msra.mxu0 (%p1130_p4), %v2756_v51  ;;  %2784 = vmatpush3.bf16.msra.mxu1 (%p1130_p4), %v2756_v51 }
 0x281   : > { %2761 = vmatprep.subr.bf16.mxu0 (%p1130_p4), %v2760_v32  ;;  %2777 = vmatprep.subr.bf16.mxu1 (%p1130_p4), %v2760_v32 }
 0x282   : >> { %v1773_v28 = vadd.f32 %v1772_v38, %v1767_v36 }
 0x284   : >> { %v1779_v53 = vadd.f32 %v1778_v62, %v1773_v28  ;;  %2763 = vmatpush3.bf16.msra.mxu0 (%p1130_p4), %v2760_v32  ;;  %2785 = vmatpush3.bf16.msra.mxu1 (%p1130_p4), %v2760_v32 }
 0x285   : > { %2765 = vmatprep.subr.bf16.mxu0 (%p1130_p4), %v2764_v30  ;;  %2778 = vmatprep.subr.bf16.mxu1 (%p1130_p4), %v2764_v30 }
 0x286   : >> { %v1782_v48 = vadd.f32 %v1781_v14, %v1779_v53 }
 0x288   : >> { %v1788_v7 = vadd.f32 %v1787_v17, %v1782_v48  ;;  %1132 = sbr.rel (!%p1130_p4) target bundleno = 498 (0x1f2), region = 197  ;;  %2767 = vmatpush3.bf16.msra.mxu0 (%p1130_p4), %v2764_v30  ;;  %2786 = vmatpush3.bf16.msra.mxu1 (%p1130_p4), %v2764_v30 }
 0x289   : > { %2769 = vmatprep.subr.bf16.mxu0 (%p1130_p4), %v2768_v15  ;;  %2779 = vmatprep.subr.bf16.mxu1 (%p1130_p4), %v2768_v15 }
 0x28a   : >> { %v1794_v52 = vadd.f32 %v1793_v44, %v1788_v7 }
 0x28c   : >> { %v1800_v1 = vadd.f32 %v1799_v26, %v1794_v52  ;;  %2771 = vmatpush3.bf16.msra.mxu0 (%p1130_p4), %v2768_v15  ;;  %2787 = vmatpush3.bf16.msra.mxu1 (%p1130_p4), %v2768_v15 }
 0x28e   : >> { %1801 = vst [vmem:[%s4207_s27 + $0x8] sm:$0xff] %v1800_v1 }
 0x295   : > { %v1802_v55 = vld [vmem:[#allocation3] sm:$0xff]  ;;  %v1803_v63 = vld [vmem:[#allocation3 + $0x8] sm:$0xff]  ;;  %v1804_v50 = vld [vmem:[#allocation3 + $0x10] sm:$0xff] }
 0x296   : > { %2628 = vmatprep.mubr.f32.mxu0 %v1802_v55  ;;  %v1826_v29 = vld [vmem:[#allocation3 + $0xc0] sm:$0xff]  ;;  %v1827_v47 = vld [vmem:[#allocation3 + $0xc8] sm:$0xff]  ;;  %v1828_v37 = vld [vmem:[#allocation3 + $0xd0] sm:$0xff] }
 0x297   : > { %2664 = vmatprep.mubr.f32.mxu1 %v1826_v29  ;;  %2629 = vmatmul.mubr.f32.vlgmr.msra.gmra.mrb[6].mxu0 %v1803_v63  ;;  %v1805_v12 = vld [vmem:[#allocation3 + $0x18] sm:$0xff]  ;;  %v1806_v0 = vld [vmem:[#allocation3 + $0x20] sm:$0xff]  ;;  %v1807_v61 = vld [vmem:[#allocation3 + $0x28] sm:$0xff] }
 0x298   : > { %2665 = vmatmul.mubr.f32.vlgmr.msra.gmra.mrb[32].mxu1 %v1827_v47  ;;  %2631 = vmatprep.mubr.f32.mxu0 %v1804_v50  ;;  %v1829_v58 = vld [vmem:[#allocation3 + $0xd8] sm:$0xff]  ;;  %v1830_v2 = vld [vmem:[#allocation3 + $0xe0] sm:$0xff]  ;;  %v1831_v22 = vld [vmem:[#allocation3 + $0xe8] sm:$0xff] }
 0x299   : > { %2667 = vmatprep.mubr.f32.mxu1 %v1828_v37  ;;  %v1808_v25 = vld [vmem:[#allocation3 + $0x30] sm:$0xff]  ;;  %v1809_v49 = vld [vmem:[#allocation3 + $0x38] sm:$0xff]  ;;  %v1810_v34 = vld [vmem:[#allocation3 + $0x40] sm:$0xff] }
 0x29a   : > { %v1832_v54 = vld [vmem:[#allocation3 + $0xf0] sm:$0xff]  ;;  %v1833_v8 = vld [vmem:[#allocation3 + $0xf8] sm:$0xff]  ;;  %v1811_v40 = vld [vmem:[#allocation3 + $0x48] sm:$0xff] }
 0x29b   : > { %2632 = vmatmul.mubr.f32.gmra.mrb[8].mxu0 %v1805_v12  ;;  %v1812_v56 = vld [vmem:[#allocation3 + $0x50] sm:$0xff]  ;;  %v1813_v31 = vld [vmem:[#allocation3 + $0x58] sm:$0xff]  ;;  %v1814_v39 = vld [vmem:[#allocation3 + $0x60] sm:$0xff] }
 0x29c   : > { %2668 = vmatmul.mubr.f32.gmra.mrb[34].mxu1 %v1829_v58  ;;  %2634 = vmatprep.mubr.f32.mxu0 %v1806_v0  ;;  %v1815_v41 = vld [vmem:[#allocation3 + $0x68] sm:$0xff]  ;;  %v1816_v38 = vld [vmem:[#allocation3 + $0x70] sm:$0xff]  ;;  %v1817_v27 = vld [vmem:[#allocation3 + $0x78] sm:$0xff] }
 0x29d   : > { %2670 = vmatprep.mubr.f32.mxu1 %v1830_v2  ;;  %v1818_v36 = vld [vmem:[#allocation3 + $0x80] sm:$0xff]  ;;  %v1819_v62 = vld [vmem:[#allocation3 + $0x88] sm:$0xff]  ;;  %v1820_v19 = vld [vmem:[#allocation3 + $0x90] sm:$0xff] }
 0x29e   : > { %v1821_v18 = vld [vmem:[#allocation3 + $0x98] sm:$0xff]  ;;  %v1822_v28 = vld [vmem:[#allocation3 + $0xa0] sm:$0xff]  ;;  %v1823_v14 = vld [vmem:[#allocation3 + $0xa8] sm:$0xff] }
 0x29f   : > { %2635 = vmatmul.mubr.f32.gmra.mrb[10].mxu0 %v1807_v61  ;;  %v1824_v24 = vld [vmem:[#allocation3 + $0xb0] sm:$0xff]  ;;  %v1825_v53 = vld [vmem:[#allocation3 + $0xb8] sm:$0xff] }
 0x2a0   : > { %2671 = vmatmul.mubr.f32.gmra.mrb[36].mxu1 %v1831_v22  ;;  %2637 = vmatprep.mubr.f32.mxu0 %v1808_v25 }
 0x2a1   : > { %2673 = vmatprep.mubr.f32.mxu1 %v1832_v54 }
 0x2a3   : > { %2638 = vmatmul.mubr.f32.gmra.mrb[12].mxu0 %v1809_v49 }
 0x2a4   : > { %2674 = vmatmul.mubr.f32.gmra.mrb[38].mxu1 %v1833_v8  ;;  %2640 = vmatprep.mubr.f32.mxu0 %v1810_v34 }
 0x2a7   : > { %2641 = vmatmul.mubr.f32.gmra.mrb[14].mxu0 %v1811_v40 }
 0x2a8   : > { %2643 = vmatprep.mubr.f32.mxu0 %v1812_v56 }
 0x2ab   : > { %2644 = vmatmul.mubr.f32.gmra.mrb[16].mxu0 %v1813_v31 }
 0x2ac   : > { %2646 = vmatprep.mubr.f32.mxu0 %v1814_v39 }
 0x2af   : > { %2647 = vmatmul.mubr.f32.gmra.mrb[18].mxu0 %v1815_v41 }
 0x2b0   : > { %2649 = vmatprep.mubr.f32.mxu0 %v1816_v38 }
 0x2b3   : > { %2650 = vmatmul.mubr.f32.gmra.mrb[20].mxu0 %v1817_v27 }
 0x2b4   : > { %2652 = vmatprep.mubr.f32.mxu0 %v1818_v36 }
 0x2b7   : > { %2653 = vmatmul.mubr.f32.gmra.mrb[22].mxu0 %v1819_v62 }
 0x2b8   : > { %2655 = vmatprep.mubr.f32.mxu0 %v1820_v19 }
 0x2bb   : > { %2656 = vmatmul.mubr.f32.gmra.mrb[24].mxu0 %v1821_v18 }
 0x2bc   : > { %2658 = vmatprep.mubr.f32.mxu0 %v1822_v28 }
 0x2bf   : > { %2659 = vmatmul.mubr.f32.gmra.mrb[26].mxu0 %v1823_v14 }
 0x2c0   : > { %2661 = vmatprep.mubr.f32.mxu0 %v1824_v24 }
 0x2c3   : > { %2662 = vmatmul.mubr.f32.gmra.mrb[28].mxu0 %v1825_v53 }
 0x36a   : > { %v2630_v17 = vpop.f32.mrb[6].mxu0 }
 0x36b   : > { %v2666_v11 = vpop.f32.mrb[32].mxu1  ;;  %2076 = vst [vmem:[%s3606_s24 + $0x8] sm:$0xff] %v2630_v17  ;;  %v1916_v48 = vpop.f32.mrb[7].mxu0 }
 0x36c   : > { %2100 = vst [vmem:[%s3606_s24 + $0xc8] sm:$0xff] %v2666_v11  ;;  %v2036_v44 = vpop.f32.mrb[33].mxu1  ;;  %2075 = vst [vmem:[%s3606_s24] sm:$0xff] %v1916_v48 }
 0x36d   : > { %2099 = vst [vmem:[%s3606_s24 + $0xc0] sm:$0xff] %v2036_v44 }
 0x36e   : > { %v2633_v7 = vpop.f32.mrb[8].mxu0 }
 0x36f   : > { %v2669_v26 = vpop.f32.mrb[34].mxu1  ;;  %2078 = vst [vmem:[%s3606_s24 + $0x18] sm:$0xff] %v2633_v7  ;;  %v1926_v52 = vpop.f32.mrb[9].mxu0 }
 0x370   : > { %2102 = vst [vmem:[%s3606_s24 + $0xd8] sm:$0xff] %v2669_v26  ;;  %v2046_v1 = vpop.f32.mrb[35].mxu1  ;;  %2077 = vst [vmem:[%s3606_s24 + $0x10] sm:$0xff] %v1926_v52 }
 0x371   : > { %2101 = vst [vmem:[%s3606_s24 + $0xd0] sm:$0xff] %v2046_v1 }
 0x372   : > { %v2636_v33 = vpop.f32.mrb[10].mxu0 }
 0x373   : > { %v2672_v46 = vpop.f32.mrb[36].mxu1  ;;  %2080 = vst [vmem:[%s3606_s24 + $0x28] sm:$0xff] %v2636_v33  ;;  %v1936_v6 = vpop.f32.mrb[11].mxu0 }
 0x374   : > { %2104 = vst [vmem:[%s3606_s24 + $0xe8] sm:$0xff] %v2672_v46  ;;  %v2056_v10 = vpop.f32.mrb[37].mxu1  ;;  %2079 = vst [vmem:[%s3606_s24 + $0x20] sm:$0xff] %v1936_v6 }
 0x375   : > { %2103 = vst [vmem:[%s3606_s24 + $0xe0] sm:$0xff] %v2056_v10 }
 0x376   : > { %v2639_v57 = vpop.f32.mrb[12].mxu0 }
 0x377   : > { %v2675_v4 = vpop.f32.mrb[38].mxu1  ;;  %2082 = vst [vmem:[%s3606_s24 + $0x38] sm:$0xff] %v2639_v57  ;;  %v1946_v9 = vpop.f32.mrb[13].mxu0 }
 0x378   : > { %2106 = vst [vmem:[%s3606_s24 + $0xf8] sm:$0xff] %v2675_v4  ;;  %v2066_v23 = vpop.f32.mrb[39].mxu1  ;;  %2081 = vst [vmem:[%s3606_s24 + $0x30] sm:$0xff] %v1946_v9 }
 0x379   : > { %2105 = vst [vmem:[%s3606_s24 + $0xf0] sm:$0xff] %v2066_v23 }
 0x37a   : > { %v2642_v13 = vpop.f32.mrb[14].mxu0 }
 0x37b   : > { %2084 = vst [vmem:[%s3606_s24 + $0x48] sm:$0xff] %v2642_v13  ;;  %v1956_v55 = vpop.f32.mrb[15].mxu0 }
 0x37c   : > { %2083 = vst [vmem:[%s3606_s24 + $0x40] sm:$0xff] %v1956_v55 }
 0x37e   : > { %v2645_v5 = vpop.f32.mrb[16].mxu0 }
 0x37f   : > { %2086 = vst [vmem:[%s3606_s24 + $0x58] sm:$0xff] %v2645_v5  ;;  %v1966_v21 = vpop.f32.mrb[17].mxu0 }
 0x380   : > { %2085 = vst [vmem:[%s3606_s24 + $0x50] sm:$0xff] %v1966_v21 }
 0x382   : > { %v2648_v20 = vpop.f32.mrb[18].mxu0 }
 0x383   : > { %2088 = vst [vmem:[%s3606_s24 + $0x68] sm:$0xff] %v2648_v20  ;;  %v1976_v59 = vpop.f32.mrb[19].mxu0 }
 0x384   : > { %2087 = vst [vmem:[%s3606_s24 + $0x60] sm:$0xff] %v1976_v59 }
 0x386   : > { %v2651_v3 = vpop.f32.mrb[20].mxu0 }
 0x387   : > { %2090 = vst [vmem:[%s3606_s24 + $0x78] sm:$0xff] %v2651_v3  ;;  %v1986_v29 = vpop.f32.mrb[21].mxu0 }
 0x388   : > { %2089 = vst [vmem:[%s3606_s24 + $0x70] sm:$0xff] %v1986_v29 }
 0x38a   : > { %v2654_v51 = vpop.f32.mrb[22].mxu0 }
 0x38b   : > { %2092 = vst [vmem:[%s3606_s24 + $0x88] sm:$0xff] %v2654_v51  ;;  %v1996_v35 = vpop.f32.mrb[23].mxu0 }
 0x38c   : > { %2091 = vst [vmem:[%s3606_s24 + $0x80] sm:$0xff] %v1996_v35 }
 0x38e   : > { %v2657_v45 = vpop.f32.mrb[24].mxu0 }
 0x38f   : > { %2094 = vst [vmem:[%s3606_s24 + $0x98] sm:$0xff] %v2657_v45  ;;  %v2006_v32 = vpop.f32.mrb[25].mxu0 }
 0x390   : > { %2093 = vst [vmem:[%s3606_s24 + $0x90] sm:$0xff] %v2006_v32 }
 0x392   : > { %v2660_v16 = vpop.f32.mrb[26].mxu0 }
 0x393   : > { %2096 = vst [vmem:[%s3606_s24 + $0xa8] sm:$0xff] %v2660_v16  ;;  %v2016_v43 = vpop.f32.mrb[27].mxu0 }
 0x394   : > { %2095 = vst [vmem:[%s3606_s24 + $0xa0] sm:$0xff] %v2016_v43 }
 0x396   : > { %v2663_v30 = vpop.f32.mrb[28].mxu0 }
 0x397   : > { %2098 = vst [vmem:[%s3606_s24 + $0xb8] sm:$0xff] %v2663_v30  ;;  %v2026_v60 = vpop.f32.mrb[29].mxu0 }
 0x398   : > { %2097 = vst [vmem:[%s3606_s24 + $0xb0] sm:$0xff] %v2026_v60 }
 0x399   : > { %3059 = shalt.err (!%p3056_p12)
}
 0x39a   : > { %s3060_s13 = scalar_lea.hbm %s4356_s17, 4096  ;;  %s3064_s11 = scalar_lea.hbm %s4416_s7, 8192 }
 0x39b   : > { %p3061_p6 = scmp.ne.s32.totalorder %s4356_s17, %s3060_s13  ;;  %p3065_p0 = scmp.lt.u32.totalorder %s4356_s17, %s4416_s7 }
 0x39c   : > { %p3066_p2 = scmp.lt.u32.totalorder %s3064_s11, %s3060_s13  ;;  %p3068_p8 = scmp.lt.u32.totalorder %s3060_s13, %s4356_s17 }
 0x39d   : > { %p3062_p7 = pnand %p3061_p6, %p3363_p10 }
 0x39e   : > { %p3067_p4 = por %p3066_p2, %p3065_p0 }
 0x39f   : > { %p3063_p9 = pneg %p3062_p7 }
 0x3a0   : > { %p3069_p1 = por %p3068_p8, %p3067_p4 }
 0x3a2   : > { %p3070_p13 = pnand %p3069_p1, %p3063_p9 }
 0x3a4   : > { %3073 = shalt.err (!%p3070_p13)
}
 0x3a5   : > { %s3159_s14 = smov 128   ;;  %s3160_s18 = smov 8  }
 0x3a6   : > { %2807 = dma.vmem_to_hbm [thread:$0]  (%p3363_p10), %s4358_s15, 4096, %s4356_s17, %s2108_s22, %s3159_s14, %s3159_s14, %s3160_s18  }
 0x3a7 PF: > { %s4530_s20 = sld [smem:[#allocation21_spill]]  ;;  %s2139_s27 = sand.u32 1, %s3124_s28  }
 0x3a8   : > { %p4532_p5 = scmp.ge.s32.totalorder %s3144_s9, 2  ;;  %s2140_s2 = scalar_lea.sflag [#allocation8], %s2139_s27 }
 0x3ad   : > { %p4531_p3 = scmp.ne.s32.totalorder %s4530_s20, 0 }
 0x3af   : > { %p2827_p11 = pnand %p4532_p5, %p4531_p3 }
 0x3b1   : > { %3119 = dma.done.wait (!%p2827_p11), %s2140_s2, 4096  }
 0x3b2   : > { %3121 = vsyncadd (!%p2827_p11), %s2140_s2, 4294963200  ;;  %s29_s9 = sadd.s32 1, %s3144_s9   ;;  %s4533_s28 = smov %s3128_s29 }
 0x3b3   : > { %p26_p12 = scmp.ge.s32.totalorder %s29_s9, 4   ;;  %s4534_s29 = smov %s3132_s30 }
 0x3b4   : > { %s4535_s30 = smov %s3378_s25  ;;  %s4536_s8 = smov %s3140_s5 }
 0x3b5   : > { %s4537_s5 = smov %s4539_s16  ;;  %28 = sbr.rel (!%p26_p12) target bundleno = 16 (0x10), region = 208 }
 0x3bc   :  { %2145 = vsyncpa [#allocation7], 1 }
 0x3bd   :  { %2147 = vsyncpa [#allocation7 + $0x1], 1 }
 0x3be   :  { %2148 = vsyncpa [#allocation10], 1 }
 0x3bf   :  { %2150 = vsyncpa [#allocation10 + $0x1], 1 }
 0x3c0   :  { %2151 = vsyncpa [#allocation13], 1 }
 0x3c1   :  { %2152 = vsyncpa [#allocation8], 1 }
 0x3c2   :  { %2154 = vsyncpa [#allocation8 + $0x1], 1 }

</bundles_post_ra>
